<compile_context>
chip_gen: v6e
topology: v6e:2x2x1
jax: 0.10.0
libtpu: 0.0.40
codegen_flags: <defaults>
</compile_context>

<pallas_src>
import math

import numpy as np
import jax
import jax.numpy as jnp
from jax.experimental import pallas as pl
from jax.experimental.pallas import tpu as pltpu

# ---------------- configuration (small, forward-consistent shapes) ----------------
B = 2              # batch
C_IN = 3           # in_channels
H_IN = W_IN = 16   # raw image spatial size
IMG = 32           # resize target (stands in for 224)
PATCH = 8          # patch size (stands in for 32)
GRID = IMG // PATCH
N_PATCH = GRID * GRID          # 16
SEQ = N_PATCH + 1              # 17 (+1 CLS token)
SEQ_PAD = 24                   # padded to a multiple of 8 (sublane alignment)
WIDTH = 64                     # transformer width (stands in for 768)
HEADS = 4
DH = WIDTH // HEADS            # 16
LAYERS = 2                     # stands in for 12
MLP_HIDDEN = 4 * WIDTH         # 256
FEAT_DIM = 32                  # CLIP visual projection dim (stands in for 512)
OUT_DIM = 16                   # fc output dim (stands in for 256)
CHW = C_IN * H_IN * W_IN       # 768
LN_EPS = 1e-5
NEG_INF = -1e30
ATTN_SCALE = 1.0 / math.sqrt(DH)   # folded into wqkv/bqkv at pack time


# ------------------------------ shared numerics ------------------------------------
def _layernorm(x, g, b):
    mu = jnp.mean(x, axis=-1, keepdims=True)
    xc = x - mu
    var = jnp.mean(xc * xc, axis=-1, keepdims=True)
    return xc * jax.lax.rsqrt(var + LN_EPS) * g + b


# ------------------------- bilinear interpolation matrix ---------------------------
def bilinear_matrix(out_size, in_size):
    """Row-stochastic (out, in) matrix matching F.interpolate(mode='bilinear',
    align_corners=False) along one axis."""
    i = np.arange(out_size, dtype=np.float64)
    src = (i + 0.5) * (in_size / out_size) - 0.5
    src = np.clip(src, 0.0, None)
    i0 = np.minimum(np.floor(src).astype(np.int64), in_size - 1)
    i1 = np.minimum(i0 + 1, in_size - 1)
    w1 = src - i0
    w0 = 1.0 - w1
    M = np.zeros((out_size, in_size), dtype=np.float32)
    M[np.arange(out_size), i0] += w0.astype(np.float32)
    M[np.arange(out_size), i1] += w1.astype(np.float32)
    return M


# --------------- stem: resize + conv1 folded into one weight matrix ----------------
def build_patch_embed_matrix(conv1_w, rh, rw):
    """E2[(c,h,w), patch*WIDTH + d] so that  img_flat @ E2  ==  conv1(resize(img))
    flattened to tokens (patch, d). Pure init-time weight preprocessing."""
    wc = np.asarray(conv1_w, np.float32).reshape(C_IN, PATCH, PATCH, WIDTH)   # [c,p,q,d]
    rh_p = np.asarray(rh, np.float32).reshape(GRID, PATCH, H_IN)              # [gi,p,h]
    rw_p = np.asarray(rw, np.float32).reshape(GRID, PATCH, W_IN)              # [gj,q,w]
    e = np.einsum("cpqd,iph,jqw->ijchwd", wc, rh_p, rw_p, optimize=True)
    e2 = e.reshape(N_PATCH, CHW, WIDTH)
    e2 = np.transpose(e2, (1, 0, 2)).reshape(CHW, N_PATCH * WIDTH)
    return jnp.asarray(e2)


# ------------------- fully fused CLIP encoder (one pallas_call) --------------------
def _clip_fused_kernel(
    # per-batch / replicated prologue inputs
    img_ref, emb_ref, base_ref, lnpre_g_ref, lnpre_b_ref, kmask_ref,
    # per-layer weights, stacked along a leading layer axis (selected by index_map)
    ln1g_ref, ln1b_ref, wqkv_ref, bqkv_ref, wo_ref, bo_ref,
    ln2g_ref, ln2b_ref, w1_ref, b1_ref, w2_ref, b2_ref,
    # epilogue inputs
    lnpost_g_ref, lnpost_b_ref, proj_ref, fcw_ref, fcb_ref,
    # output + VMEM-resident activation scratch
    out_ref, x_ref,
):
    l = pl.program_id(1)

    # ---- prologue (once per batch element): stem matmul + CLS/pos + ln_pre ----
    @pl.when(l == 0)
    def _():
        img = img_ref[...].reshape(1, CHW).astype(jnp.bfloat16)
        tok = jnp.dot(img, emb_ref[...],
                      preferred_element_type=jnp.float32)          # (1, N_PATCH*WIDTH)
        x_ref[...] = jnp.zeros((SEQ_PAD, WIDTH), jnp.float32)
        # scatter the lane-dense stem result into per-patch rows (prologue only)
        for s in range(N_PATCH):
            x_ref[1 + s:2 + s, :] = tok[:, s * WIDTH:(s + 1) * WIDTH]
        # base holds cls+pos[0] in row 0, pos[1:] in rows 1..16, zeros in pad rows
        x0 = x_ref[...] + base_ref[...]
        x_ref[...] = _layernorm(x0, lnpre_g_ref[...], lnpre_b_ref[...])

    # ---- transformer block l (pre-LN MHA + QuickGELU MLP), VMEM-resident ----
    # NOTE: this full-ref read must stay AFTER the prologue writes (same-ref dep).
    x = x_ref[...]                                                  # (SEQ_PAD, WIDTH) f32

    h = _layernorm(x, ln1g_ref[0], ln1b_ref[0])
    qkv = jnp.dot(h.astype(jnp.bfloat16), wqkv_ref[0],
                  preferred_element_type=jnp.float32) + bqkv_ref[0]  # (S, 3W), q pre-scaled
    q = qkv[:, :WIDTH]
    k = qkv[:, WIDTH:2 * WIDTH]
    v = qkv[:, 2 * WIDTH:]
    kmask = kmask_ref[...]                                           # (1, S) additive bias

    ctx_parts = []
    for hh in range(HEADS):
        sl = slice(hh * DH, (hh + 1) * DH)
        qh = q[:, sl].astype(jnp.bfloat16)
        kh = k[:, sl].astype(jnp.bfloat16)
        vh = v[:, sl].astype(jnp.bfloat16)
        sc = jax.lax.dot_general(qh, kh, (((1,), (1,)), ((), ())),
                                 preferred_element_type=jnp.float32)  # (S, S)
        sc = sc + kmask
        m = jnp.max(sc, axis=-1, keepdims=True)
        p = jnp.exp(sc - m)
        p = p * (1.0 / jnp.sum(p, axis=-1, keepdims=True))            # exact reciprocal
        ctx_parts.append(jnp.dot(p.astype(jnp.bfloat16), vh,
                                 preferred_element_type=jnp.float32))  # (S, DH)
    ctx = jnp.concatenate(ctx_parts, axis=-1)                          # (S, WIDTH)
    attn = jnp.dot(ctx.astype(jnp.bfloat16), wo_ref[0],
                   preferred_element_type=jnp.float32) + bo_ref[0]
    x = x + attn

    h = _layernorm(x, ln2g_ref[0], ln2b_ref[0])
    h = jnp.dot(h.astype(jnp.bfloat16), w1_ref[0],
                preferred_element_type=jnp.float32) + b1_ref[0]
    h = h * jax.nn.sigmoid(1.702 * h)                                  # QuickGELU (f32)
    h = jnp.dot(h.astype(jnp.bfloat16), w2_ref[0],
                preferred_element_type=jnp.float32) + b2_ref[0]
    x = x + h
    x_ref[...] = x

    # ---- epilogue (last layer): ln_post + proj + fc/ReLU on the CLS row only ----
    @pl.when(l == pl.num_programs(1) - 1)
    def _():
        cls = _layernorm(x[0:1, :], lnpost_g_ref[...], lnpost_b_ref[...])  # (1, W)
        feats = jnp.dot(cls, proj_ref[...], preferred_element_type=jnp.float32)
        o = jnp.dot(feats, fcw_ref[...],
                    preferred_element_type=jnp.float32) + fcb_ref[...]
        out_ref[...] = jnp.maximum(o, 0.0).reshape(1, 1, OUT_DIM)


def _rep(shape):
    zeros = (0,) * len(shape)
    return pl.BlockSpec(shape, lambda b, l: zeros)


def _per_layer(shape):
    zeros = (0,) * len(shape)
    return pl.BlockSpec((1,) + tuple(shape), lambda b, l: (l,) + zeros)


def pallas_clip_fused(img3, p):
    grid_spec = pltpu.PrefetchScalarGridSpec(
        num_scalar_prefetch=0,
        grid=(B, LAYERS),                          # batch parallel, layers sequential
        in_specs=[
            pl.BlockSpec((1, 1, CHW), lambda b, l: (b, 0, 0)),     # flat image row
            _rep((CHW, N_PATCH * WIDTH)),                          # folded resize+conv1 (bf16)
            _rep((SEQ_PAD, WIDTH)),                                # cls + positional base
            _rep((1, WIDTH)), _rep((1, WIDTH)),                    # ln_pre g, b
            _rep((1, SEQ_PAD)),                                    # key-padding mask row
            _per_layer((1, WIDTH)), _per_layer((1, WIDTH)),        # ln1 g, b
            _per_layer((WIDTH, 3 * WIDTH)),                        # wqkv (bf16, q pre-scaled)
            _per_layer((1, 3 * WIDTH)),                            # bqkv (q bias pre-scaled)
            _per_layer((WIDTH, WIDTH)),                            # wo (bf16, unsplit)
            _per_layer((1, WIDTH)),                                # bo
            _per_layer((1, WIDTH)), _per_layer((1, WIDTH)),        # ln2 g, b
            _per_layer((WIDTH, MLP_HIDDEN)),                       # w1 (bf16)
            _per_layer((1, MLP_HIDDEN)),                           # b1
            _per_layer((MLP_HIDDEN, WIDTH)),                       # w2 (bf16)
            _per_layer((1, WIDTH)),                                # b2
            _rep((1, WIDTH)), _rep((1, WIDTH)),                    # ln_post g, b
            _rep((WIDTH, FEAT_DIM)),                               # proj
            _rep((FEAT_DIM, OUT_DIM)),                             # fc_w
            _rep((1, OUT_DIM)),                                    # fc_b
        ],
        out_specs=pl.BlockSpec((1, 1, OUT_DIM), lambda b, l: (b, 0, 0)),
        scratch_shapes=[pltpu.VMEM((SEQ_PAD, WIDTH), jnp.float32)],
    )
    out = pl.pallas_call(
        _clip_fused_kernel,
        out_shape=jax.ShapeDtypeStruct((B, 1, OUT_DIM), jnp.float32),
        grid_spec=grid_spec,
        compiler_params=pltpu.CompilerParams(
            dimension_semantics=("parallel", "arbitrary"),
            vmem_limit_bytes=32 * 1024 * 1024,
        ),
    )(
        img3, p["embed_mat"], p["base"], p["lnpre_g"], p["lnpre_b"], p["kmask"],
        p["ln1_g"], p["ln1_b"], p["wqkv"], p["bqkv"], p["wo"], p["bo"],
        p["ln2_g"], p["ln2_b"], p["w1"], p["b1"], p["w2"], p["b2"],
        p["lnpost_g"], p["lnpost_b"], p["proj"], p["fc_w"], p["fc_b"],
    )
    return out.reshape(B, OUT_DIM)


# ------------------------------- forward pass --------------------------------------
def clip_encoder_forward(packed, image):
    """image: (B, C_IN, H_IN, W_IN) float32, NCHW. Returns (B, OUT_DIM)."""
    img3 = image.reshape(B, 1, CHW)                    # free reshape, no transpose
    return pallas_clip_fused(img3, packed)


# --------------------------- pure-JAX reference (unfused path) ---------------------
def reference_forward(raw, image):
    rh, rw = raw["resize_h"], raw["resize_w"]
    # F.interpolate(size=(IMG, IMG), mode='bilinear', align_corners=False)
    r = jnp.einsum("ih,bchw->bciw", rh, image)
    r = jnp.einsum("jw,bciw->bcij", rw, r)                          # (B,C,IMG,IMG)
    # conv1 patch embedding (kernel = stride = PATCH, bias=False)
    pt = r.reshape(B, C_IN, GRID, PATCH, GRID, PATCH)
    pt = pt.transpose(0, 2, 4, 1, 3, 5).reshape(B, N_PATCH, C_IN * PATCH * PATCH)
    tok = pt @ raw["conv1_w"]                                       # (B, NP, W)
    # CLS + pos + ln_pre
    cls = jnp.broadcast_to(raw["cls_emb"][None, None, :], (B, 1, WIDTH))
    x = jnp.concatenate([cls, tok], axis=1) + raw["pos_emb"][None]
    x = _layernorm(x, raw["ln_pre_g"], raw["ln_pre_b"])
    # transformer blocks
    for lp in raw["layers"]:
        h = _layernorm(x, lp["ln1_g"], lp["ln1_b"])
        q = h @ lp["wq"] + lp["bq"]
        k = h @ lp["wk"] + lp["bk"]
        v = h @ lp["wv"] + lp["bv"]

        def split(t):
            return t.reshape(B, SEQ, HEADS, DH).transpose(0, 2, 1, 3)

        qh, kh, vh = split(q), split(k), split(v)
        s = jnp.einsum("bhqd,bhkd->bhqk", qh, kh) / math.sqrt(DH)
        pr = jax.nn.softmax(s, axis=-1)
        o = jnp.einsum("bhqk,bhkd->bhqd", pr, vh)
        o = o.transpose(0, 2, 1, 3).reshape(B, SEQ, WIDTH)
        x = x + (o @ lp["wo"] + lp["bo"])

        h = _layernorm(x, lp["ln2_g"], lp["ln2_b"])
        h = h @ lp["w1"] + lp["b1"]
        h = h * jax.nn.sigmoid(1.702 * h)
        x = x + (h @ lp["w2"] + lp["b2"])
    # ln_post on CLS + projection + fc(ReLU)
    cls_tok = _layernorm(x[:, 0, :], raw["ln_post_g"], raw["ln_post_b"])
    feats = cls_tok @ raw["proj"]
    return jnp.maximum(feats @ raw["fc_w"] + raw["fc_b"], 0.0)


# ------------------------------ deterministic params -------------------------------
def init_raw_params(key):
    ks = iter(jax.random.split(key, 64))

    def nrm(shape, scale=0.02):
        return (scale * jax.random.normal(next(ks), shape)).astype(jnp.float32)

    def nrm_bf16(shape, scale=0.02):
        # Heavy matmul weights are kept bf16-representable: the fused kernel
        # streams them in bf16, so the f32 reference uses identical values.
        return nrm(shape, scale).astype(jnp.bfloat16).astype(jnp.float32)

    raw = {
        "resize_h": jnp.asarray(bilinear_matrix(IMG, H_IN)),
        "resize_w": jnp.asarray(bilinear_matrix(IMG, W_IN)),
        "conv1_w": nrm((C_IN * PATCH * PATCH, WIDTH)),
        "cls_emb": nrm((WIDTH,)),
        "pos_emb": nrm((SEQ, WIDTH)),
        "ln_pre_g": 1.0 + nrm((WIDTH,)), "ln_pre_b": nrm((WIDTH,)),
        "ln_post_g": 1.0 + nrm((WIDTH,)), "ln_post_b": nrm((WIDTH,)),
        "proj": nrm((WIDTH, FEAT_DIM)),
        "fc_w": nrm((FEAT_DIM, OUT_DIM), scale=0.1),   # stand-in for kaiming
        "fc_b": jnp.zeros((OUT_DIM,), jnp.float32),
    }
    layers = []
    for _ in range(LAYERS):
        layers.append(dict(
            ln1_g=1.0 + nrm((WIDTH,)), ln1_b=nrm((WIDTH,)),
            wq=nrm_bf16((WIDTH, WIDTH)), wk=nrm_bf16((WIDTH, WIDTH)),
            wv=nrm_bf16((WIDTH, WIDTH)),
            bq=nrm((WIDTH,)), bk=nrm((WIDTH,)), bv=nrm((WIDTH,)),
            wo=nrm_bf16((WIDTH, WIDTH)), bo=nrm((WIDTH,)),
            ln2_g=1.0 + nrm((WIDTH,)), ln2_b=nrm((WIDTH,)),
            w1=nrm_bf16((WIDTH, MLP_HIDDEN)), b1=nrm((MLP_HIDDEN,)),
            w2=nrm_bf16((MLP_HIDDEN, WIDTH)), b2=nrm((WIDTH,)),
        ))
    raw["layers"] = layers
    return raw


def pack_params(raw):
    """Repack canonical parameters into the layouts the fused kernel expects
    (fused/prescaled QKV, bf16 heavy weights, folded stem, leading layer axis).
    Init-time only; no per-image work."""
    def stack(fn):
        return jnp.asarray(
            np.stack([np.asarray(fn(lp), np.float32) for lp in raw["layers"]], axis=0))

    def stack_bf16(fn):
        return stack(fn).astype(jnp.bfloat16)

    base = np.zeros((SEQ_PAD, WIDTH), np.float32)
    pos = np.asarray(raw["pos_emb"], np.float32)
    base[0] = np.asarray(raw["cls_emb"], np.float32) + pos[0]
    base[1:SEQ] = pos[1:]
    kmask = np.where(np.arange(SEQ_PAD) < SEQ, 0.0, NEG_INF)
    kmask = kmask.astype(np.float32).reshape(1, SEQ_PAD)

    return dict(
        embed_mat=build_patch_embed_matrix(
            raw["conv1_w"], raw["resize_h"], raw["resize_w"]).astype(jnp.bfloat16),
        base=jnp.asarray(base),
        kmask=jnp.asarray(kmask),
        lnpre_g=raw["ln_pre_g"].reshape(1, WIDTH),
        lnpre_b=raw["ln_pre_b"].reshape(1, WIDTH),
        ln1_g=stack(lambda lp: np.asarray(lp["ln1_g"]).reshape(1, WIDTH)),
        ln1_b=stack(lambda lp: np.asarray(lp["ln1_b"]).reshape(1, WIDTH)),
        wqkv=stack_bf16(lambda lp: np.concatenate(
            [np.asarray(lp["wq"]) * ATTN_SCALE, np.asarray(lp["wk"]),
             np.asarray(lp["wv"])], axis=1)),
        bqkv=stack(lambda lp: np.concatenate(
            [np.asarray(lp["bq"]) * ATTN_SCALE, np.asarray(lp["bk"]),
             np.asarray(lp["bv"])]).reshape(1, 3 * WIDTH)),
        wo=stack_bf16(lambda lp: np.asarray(lp["wo"])),
        bo=stack(lambda lp: np.asarray(lp["bo"]).reshape(1, WIDTH)),
        ln2_g=stack(lambda lp: np.asarray(lp["ln2_g"]).reshape(1, WIDTH)),
        ln2_b=stack(lambda lp: np.asarray(lp["ln2_b"]).reshape(1, WIDTH)),
        w1=stack_bf16(lambda lp: np.asarray(lp["w1"])),
        b1=stack(lambda lp: np.asarray(lp["b1"]).reshape(1, MLP_HIDDEN)),
        w2=stack_bf16(lambda lp: np.asarray(lp["w2"])),
        b2=stack(lambda lp: np.asarray(lp["b2"]).reshape(1, WIDTH)),
        lnpost_g=raw["ln_post_g"].reshape(1, WIDTH),
        lnpost_b=raw["ln_post_b"].reshape(1, WIDTH),
        proj=raw["proj"],
        fc_w=raw["fc_w"],
        fc_b=raw["fc_b"].reshape(1, OUT_DIM),
    )


# ----------------------------------- main -------------------------------------------
if __name__ == "__main__":
    key = jax.random.PRNGKey(0)
    pkey, xkey = jax.random.split(key)
    raw = init_raw_params(pkey)
    packed = pack_params(raw)
    image = jax.random.normal(xkey, (B, C_IN, H_IN, W_IN), dtype=jnp.float32)
    image = image.astype(jnp.bfloat16).astype(jnp.float32)  # bf16-representable pixels

    out = jax.block_until_ready(jax.jit(clip_encoder_forward)(packed, image))
    assert out.shape == (B, OUT_DIM) and out.dtype == jnp.float32

    ref = jax.block_until_ready(jax.jit(reference_forward)(raw, image))
    # Tolerance covers bf16 activation casts at the MXU inputs and the bf16-stored
    # folded (resize+conv1) stem matrix vs. the step-by-step f32 reference.
    np.testing.assert_allclose(np.asarray(out), np.asarray(ref),
                               rtol=1e-2, atol=1e-2)
    print("KERNEL_OK")
</pallas_src>

<mosaic_0001>
module attributes {stable_mosaic.version = 11 : i64} {
  func.func @_clip_fused_kernel(%arg0: i32, %arg1: i32, %arg2: memref<1x1x768xf32, #tpu.memory_space<vmem>>, %arg3: memref<768x1024xbf16, #tpu.memory_space<vmem>>, %arg4: memref<24x64xf32, #tpu.memory_space<vmem>>, %arg5: memref<1x64xf32, #tpu.memory_space<vmem>>, %arg6: memref<1x64xf32, #tpu.memory_space<vmem>>, %arg7: memref<1x24xf32, #tpu.memory_space<vmem>>, %arg8: memref<1x1x64xf32, #tpu.memory_space<vmem>>, %arg9: memref<1x1x64xf32, #tpu.memory_space<vmem>>, %arg10: memref<1x64x192xbf16, #tpu.memory_space<vmem>>, %arg11: memref<1x1x192xf32, #tpu.memory_space<vmem>>, %arg12: memref<1x64x64xbf16, #tpu.memory_space<vmem>>, %arg13: memref<1x1x64xf32, #tpu.memory_space<vmem>>, %arg14: memref<1x1x64xf32, #tpu.memory_space<vmem>>, %arg15: memref<1x1x64xf32, #tpu.memory_space<vmem>>, %arg16: memref<1x64x256xbf16, #tpu.memory_space<vmem>>, %arg17: memref<1x1x256xf32, #tpu.memory_space<vmem>>, %arg18: memref<1x256x64xbf16, #tpu.memory_space<vmem>>, %arg19: memref<1x1x64xf32, #tpu.memory_space<vmem>>, %arg20: memref<1x64xf32, #tpu.memory_space<vmem>>, %arg21: memref<1x64xf32, #tpu.memory_space<vmem>>, %arg22: memref<64x32xf32, #tpu.memory_space<vmem>>, %arg23: memref<32x16xf32, #tpu.memory_space<vmem>>, %arg24: memref<1x16xf32, #tpu.memory_space<vmem>>, %arg25: memref<1x1x16xf32, #tpu.memory_space<vmem>>, %arg26: memref<24x64xf32, #tpu.memory_space<vmem>>) attributes {dimension_semantics = [#tpu.dimension_semantics<parallel>, #tpu.dimension_semantics<arbitrary>], iteration_bounds = array<i64: 2, 2>, scalar_prefetch = 0 : i64, scratch_operands = 1 : i64, tpu.core_type = #tpu.core_type<tc>, window_params = [{transform_indices = @transform_0, window_bounds = array<i64: 1, 1, 768>}, {pipeline_mode = #tpu.pipeline_mode<synchronous>, transform_indices = @transform_1, window_bounds = array<i64: 768, 1024>}, {pipeline_mode = #tpu.pipeline_mode<synchronous>, transform_indices = @transform_2, window_bounds = array<i64: 24, 64>}, {pipeline_mode = #tpu.pipeline_mode<synchronous>, transform_indices = @transform_3, window_bounds = array<i64: 1, 64>}, {pipeline_mode = #tpu.pipeline_mode<synchronous>, transform_indices = @transform_4, window_bounds = array<i64: 1, 64>}, {pipeline_mode = #tpu.pipeline_mode<synchronous>, transform_indices = @transform_5, window_bounds = array<i64: 1, 24>}, {transform_indices = @transform_6, window_bounds = array<i64: 1, 1, 64>}, {transform_indices = @transform_7, window_bounds = array<i64: 1, 1, 64>}, {transform_indices = @transform_8, window_bounds = array<i64: 1, 64, 192>}, {transform_indices = @transform_9, window_bounds = array<i64: 1, 1, 192>}, {transform_indices = @transform_10, window_bounds = array<i64: 1, 64, 64>}, {transform_indices = @transform_11, window_bounds = array<i64: 1, 1, 64>}, {transform_indices = @transform_12, window_bounds = array<i64: 1, 1, 64>}, {transform_indices = @transform_13, window_bounds = array<i64: 1, 1, 64>}, {transform_indices = @transform_14, window_bounds = array<i64: 1, 64, 256>}, {transform_indices = @transform_15, window_bounds = array<i64: 1, 1, 256>}, {transform_indices = @transform_16, window_bounds = array<i64: 1, 256, 64>}, {transform_indices = @transform_17, window_bounds = array<i64: 1, 1, 64>}, {pipeline_mode = #tpu.pipeline_mode<synchronous>, transform_indices = @transform_18, window_bounds = array<i64: 1, 64>}, {pipeline_mode = #tpu.pipeline_mode<synchronous>, transform_indices = @transform_19, window_bounds = array<i64: 1, 64>}, {pipeline_mode = #tpu.pipeline_mode<synchronous>, transform_indices = @transform_20, window_bounds = array<i64: 64, 32>}, {pipeline_mode = #tpu.pipeline_mode<synchronous>, transform_indices = @transform_21, window_bounds = array<i64: 32, 16>}, {pipeline_mode = #tpu.pipeline_mode<synchronous>, transform_indices = @transform_22, window_bounds = array<i64: 1, 16>}, {transform_indices = @transform_23, window_bounds = array<i64: 1, 1, 16>}]} {
    %c0_i32 = arith.constant 0 : i32
    %0 = arith.cmpi eq, %arg1, %c0_i32 : i32
    %1 = arith.extui %0 : i1 to i32
    %c0_i32_0 = arith.constant 0 : i32
    %2 = arith.cmpi ne, %1, %c0_i32_0 : i32
    scf.if %2 {
      %c0_78 = arith.constant 0 : index
      %c0_79 = arith.constant 0 : index
      %c0_80 = arith.constant 0 : index
      %191 = vector.load %arg2[%c0_78, %c0_79, %c0_80] : memref<1x1x768xf32, #tpu.memory_space<vmem>>, vector<1x1x768xf32>
      %192 = vector.shape_cast %191 : vector<1x1x768xf32> to vector<1x768xf32>
      %193 = arith.truncf %192 : vector<1x768xf32> to vector<1x768xbf16>
      %c0_81 = arith.constant 0 : index
      %c0_82 = arith.constant 0 : index
      %194 = vector.load %arg3[%c0_81, %c0_82] : memref<768x1024xbf16, #tpu.memory_space<vmem>>, vector<768x1024xbf16>
      %cst_83 = arith.constant dense<0.000000e+00> : vector<1x1024xf32>
      %195 = tpu.matmul %193, %194, %cst_83 {dimension_numbers = #tpu.dot_dimension_numbers<[1], [0], [0], [1], [0, 0, 1, 1], [], []>} : vector<1x768xbf16>, vector<768x1024xbf16>, vector<1x1024xf32> -> vector<1x1024xf32>
      %cst_84 = arith.constant 0.000000e+00 : f32
      %196 = vector.broadcast %cst_84 : f32 to vector<24x64xf32>
      %c0_85 = arith.constant 0 : index
      %c0_86 = arith.constant 0 : index
      %197 = vector.load %arg26[%c0_85, %c0_86] : memref<24x64xf32, #tpu.memory_space<vmem>>, vector<24x64xf32>
      tpu.vector_store %arg26[%c0_85, %c0_86], %196 {strides = array<i32>} : memref<24x64xf32, #tpu.memory_space<vmem>>, vector<24x64xf32>,
      %198 = vector.extract_strided_slice %195 {offsets = [0, 0], sizes = [1, 64], strides = [1, 1]} : vector<1x1024xf32> to vector<1x64xf32>
      %c1 = arith.constant 1 : index
      %c0_87 = arith.constant 0 : index
      %199 = vector.load %arg26[%c1, %c0_87] : memref<24x64xf32, #tpu.memory_space<vmem>>, vector<1x64xf32>
      tpu.vector_store %arg26[%c1, %c0_87], %198 {strides = array<i32>} : memref<24x64xf32, #tpu.memory_space<vmem>>, vector<1x64xf32>,
      %200 = vector.extract_strided_slice %195 {offsets = [0, 64], sizes = [1, 64], strides = [1, 1]} : vector<1x1024xf32> to vector<1x64xf32>
      %c2 = arith.constant 2 : index
      %c0_88 = arith.constant 0 : index
      %201 = vector.load %arg26[%c2, %c0_88] : memref<24x64xf32, #tpu.memory_space<vmem>>, vector<1x64xf32>
      tpu.vector_store %arg26[%c2, %c0_88], %200 {strides = array<i32>} : memref<24x64xf32, #tpu.memory_space<vmem>>, vector<1x64xf32>,
      %202 = vector.extract_strided_slice %195 {offsets = [0, 128], sizes = [1, 64], strides = [1, 1]} : vector<1x1024xf32> to vector<1x64xf32>
      %c3 = arith.constant 3 : index
      %c0_89 = arith.constant 0 : index
      %203 = vector.load %arg26[%c3, %c0_89] : memref<24x64xf32, #tpu.memory_space<vmem>>, vector<1x64xf32>
      tpu.vector_store %arg26[%c3, %c0_89], %202 {strides = array<i32>} : memref<24x64xf32, #tpu.memory_space<vmem>>, vector<1x64xf32>,
      %204 = vector.extract_strided_slice %195 {offsets = [0, 192], sizes = [1, 64], strides = [1, 1]} : vector<1x1024xf32> to vector<1x64xf32>
      %c4 = arith.constant 4 : index
      %c0_90 = arith.constant 0 : index
      %205 = vector.load %arg26[%c4, %c0_90] : memref<24x64xf32, #tpu.memory_space<vmem>>, vector<1x64xf32>
      tpu.vector_store %arg26[%c4, %c0_90], %204 {strides = array<i32>} : memref<24x64xf32, #tpu.memory_space<vmem>>, vector<1x64xf32>,
      %206 = vector.extract_strided_slice %195 {offsets = [0, 256], sizes = [1, 64], strides = [1, 1]} : vector<1x1024xf32> to vector<1x64xf32>
      %c5 = arith.constant 5 : index
      %c0_91 = arith.constant 0 : index
      %207 = vector.load %arg26[%c5, %c0_91] : memref<24x64xf32, #tpu.memory_space<vmem>>, vector<1x64xf32>
      tpu.vector_store %arg26[%c5, %c0_91], %206 {strides = array<i32>} : memref<24x64xf32, #tpu.memory_space<vmem>>, vector<1x64xf32>,
      %208 = vector.extract_strided_slice %195 {offsets = [0, 320], sizes = [1, 64], strides = [1, 1]} : vector<1x1024xf32> to vector<1x64xf32>
      %c6 = arith.constant 6 : index
      %c0_92 = arith.constant 0 : index
      %209 = vector.load %arg26[%c6, %c0_92] : memref<24x64xf32, #tpu.memory_space<vmem>>, vector<1x64xf32>
      tpu.vector_store %arg26[%c6, %c0_92], %208 {strides = array<i32>} : memref<24x64xf32, #tpu.memory_space<vmem>>, vector<1x64xf32>,
      %210 = vector.extract_strided_slice %195 {offsets = [0, 384], sizes = [1, 64], strides = [1, 1]} : vector<1x1024xf32> to vector<1x64xf32>
      %c7 = arith.constant 7 : index
      %c0_93 = arith.constant 0 : index
      %211 = vector.load %arg26[%c7, %c0_93] : memref<24x64xf32, #tpu.memory_space<vmem>>, vector<1x64xf32>
      tpu.vector_store %arg26[%c7, %c0_93], %210 {strides = array<i32>} : memref<24x64xf32, #tpu.memory_space<vmem>>, vector<1x64xf32>,
      %212 = vector.extract_strided_slice %195 {offsets = [0, 448], sizes = [1, 64], strides = [1, 1]} : vector<1x1024xf32> to vector<1x64xf32>
      %c8 = arith.constant 8 : index
      %c0_94 = arith.constant 0 : index
      %213 = vector.load %arg26[%c8, %c0_94] : memref<24x64xf32, #tpu.memory_space<vmem>>, vector<1x64xf32>
      tpu.vector_store %arg26[%c8, %c0_94], %212 {strides = array<i32>} : memref<24x64xf32, #tpu.memory_space<vmem>>, vector<1x64xf32>,
      %214 = vector.extract_strided_slice %195 {offsets = [0, 512], sizes = [1, 64], strides = [1, 1]} : vector<1x1024xf32> to vector<1x64xf32>
      %c9 = arith.constant 9 : index
      %c0_95 = arith.constant 0 : index
      %215 = vector.load %arg26[%c9, %c0_95] : memref<24x64xf32, #tpu.memory_space<vmem>>, vector<1x64xf32>
      tpu.vector_store %arg26[%c9, %c0_95], %214 {strides = array<i32>} : memref<24x64xf32, #tpu.memory_space<vmem>>, vector<1x64xf32>,
      %216 = vector.extract_strided_slice %195 {offsets = [0, 576], sizes = [1, 64], strides = [1, 1]} : vector<1x1024xf32> to vector<1x64xf32>
      %c10 = arith.constant 10 : index
      %c0_96 = arith.constant 0 : index
      %217 = vector.load %arg26[%c10, %c0_96] : memref<24x64xf32, #tpu.memory_space<vmem>>, vector<1x64xf32>
      tpu.vector_store %arg26[%c10, %c0_96], %216 {strides = array<i32>} : memref<24x64xf32, #tpu.memory_space<vmem>>, vector<1x64xf32>,
      %218 = vector.extract_strided_slice %195 {offsets = [0, 640], sizes = [1, 64], strides = [1, 1]} : vector<1x1024xf32> to vector<1x64xf32>
      %c11 = arith.constant 11 : index
      %c0_97 = arith.constant 0 : index
      %219 = vector.load %arg26[%c11, %c0_97] : memref<24x64xf32, #tpu.memory_space<vmem>>, vector<1x64xf32>
      tpu.vector_store %arg26[%c11, %c0_97], %218 {strides = array<i32>} : memref<24x64xf32, #tpu.memory_space<vmem>>, vector<1x64xf32>,
      %220 = vector.extract_strided_slice %195 {offsets = [0, 704], sizes = [1, 64], strides = [1, 1]} : vector<1x1024xf32> to vector<1x64xf32>
      %c12 = arith.constant 12 : index
      %c0_98 = arith.constant 0 : index
      %221 = vector.load %arg26[%c12, %c0_98] : memref<24x64xf32, #tpu.memory_space<vmem>>, vector<1x64xf32>
      tpu.vector_store %arg26[%c12, %c0_98], %220 {strides = array<i32>} : memref<24x64xf32, #tpu.memory_space<vmem>>, vector<1x64xf32>,
      %222 = vector.extract_strided_slice %195 {offsets = [0, 768], sizes = [1, 64], strides = [1, 1]} : vector<1x1024xf32> to vector<1x64xf32>
      %c13 = arith.constant 13 : index
      %c0_99 = arith.constant 0 : index
      %223 = vector.load %arg26[%c13, %c0_99] : memref<24x64xf32, #tpu.memory_space<vmem>>, vector<1x64xf32>
      tpu.vector_store %arg26[%c13, %c0_99], %222 {strides = array<i32>} : memref<24x64xf32, #tpu.memory_space<vmem>>, vector<1x64xf32>,
      %224 = vector.extract_strided_slice %195 {offsets = [0, 832], sizes = [1, 64], strides = [1, 1]} : vector<1x1024xf32> to vector<1x64xf32>
      %c14 = arith.constant 14 : index
      %c0_100 = arith.constant 0 : index
      %225 = vector.load %arg26[%c14, %c0_100] : memref<24x64xf32, #tpu.memory_space<vmem>>, vector<1x64xf32>
      tpu.vector_store %arg26[%c14, %c0_100], %224 {strides = array<i32>} : memref<24x64xf32, #tpu.memory_space<vmem>>, vector<1x64xf32>,
      %226 = vector.extract_strided_slice %195 {offsets = [0, 896], sizes = [1, 64], strides = [1, 1]} : vector<1x1024xf32> to vector<1x64xf32>
      %c15 = arith.constant 15 : index
      %c0_101 = arith.constant 0 : index
      %227 = vector.load %arg26[%c15, %c0_101] : memref<24x64xf32, #tpu.memory_space<vmem>>, vector<1x64xf32>
      tpu.vector_store %arg26[%c15, %c0_101], %226 {strides = array<i32>} : memref<24x64xf32, #tpu.memory_space<vmem>>, vector<1x64xf32>,
      %228 = vector.extract_strided_slice %195 {offsets = [0, 960], sizes = [1, 64], strides = [1, 1]} : vector<1x1024xf32> to vector<1x64xf32>
      %c16 = arith.constant 16 : index
      %c0_102 = arith.constant 0 : index
      %229 = vector.load %arg26[%c16, %c0_102] : memref<24x64xf32, #tpu.memory_space<vmem>>, vector<1x64xf32>
      tpu.vector_store %arg26[%c16, %c0_102], %228 {strides = array<i32>} : memref<24x64xf32, #tpu.memory_space<vmem>>, vector<1x64xf32>,
      %c0_103 = arith.constant 0 : index
      %c0_104 = arith.constant 0 : index
      %230 = vector.load %arg26[%c0_103, %c0_104] : memref<24x64xf32, #tpu.memory_space<vmem>>, vector<24x64xf32>
      %c0_105 = arith.constant 0 : index
      %c0_106 = arith.constant 0 : index
      %231 = vector.load %arg4[%c0_105, %c0_106] : memref<24x64xf32, #tpu.memory_space<vmem>>, vector<24x64xf32>
      %232 = arith.addf %230, %231 : vector<24x64xf32>
      %c0_107 = arith.constant 0 : index
      %c0_108 = arith.constant 0 : index
      %233 = vector.load %arg5[%c0_107, %c0_108] : memref<1x64xf32, #tpu.memory_space<vmem>>, vector<1x64xf32>
      %c0_109 = arith.constant 0 : index
      %c0_110 = arith.constant 0 : index
      %234 = vector.load %arg6[%c0_109, %c0_110] : memref<1x64xf32, #tpu.memory_space<vmem>>, vector<1x64xf32>
      %cst_111 = arith.constant dense<0.000000e+00> : vector<24xf32>
      %235 = vector.multi_reduction <add>, %232, %cst_111 [1] : vector<24x64xf32> to vector<24xf32>
      %236 = vector.shape_cast %235 : vector<24xf32> to vector<24x1xf32>
      %cst_112 = arith.constant 6.400000e+01 : f32
      %237 = vector.broadcast %cst_112 : f32 to vector<24x1xf32>
      %238 = arith.divf %236, %237 : vector<24x1xf32>
      %239 = vector.broadcast %238 : vector<24x1xf32> to vector<24x64xf32>
      %240 = arith.subf %232, %239 : vector<24x64xf32>
      %241 = arith.mulf %240, %240 : vector<24x64xf32>
      %cst_113 = arith.constant dense<0.000000e+00> : vector<24xf32>
      %242 = vector.multi_reduction <add>, %241, %cst_113 [1] : vector<24x64xf32> to vector<24xf32>
      %243 = vector.shape_cast %242 : vector<24xf32> to vector<24x1xf32>
      %cst_114 = arith.constant 6.400000e+01 : f32
      %244 = vector.broadcast %cst_114 : f32 to vector<24x1xf32>
      %245 = arith.divf %243, %244 : vector<24x1xf32>
      %cst_115 = arith.constant 9.99999974E-6 : f32
      %246 = vector.broadcast %cst_115 : f32 to vector<24x1xf32>
      %247 = arith.addf %245, %246 : vector<24x1xf32>
      %248 = math.rsqrt %247 : vector<24x1xf32>
      %249 = vector.broadcast %248 : vector<24x1xf32> to vector<24x64xf32>
      %250 = arith.mulf %240, %249 : vector<24x64xf32>
      %251 = vector.broadcast %233 : vector<1x64xf32> to vector<24x64xf32>
      %252 = arith.mulf %250, %251 : vector<24x64xf32>
      %253 = vector.broadcast %234 : vector<1x64xf32> to vector<24x64xf32>
      %254 = arith.addf %252, %253 : vector<24x64xf32>
      %c0_116 = arith.constant 0 : index
      %c0_117 = arith.constant 0 : index
      %255 = vector.load %arg26[%c0_116, %c0_117] : memref<24x64xf32, #tpu.memory_space<vmem>>, vector<24x64xf32>
      tpu.vector_store %arg26[%c0_116, %c0_117], %254 {strides = array<i32>} : memref<24x64xf32, #tpu.memory_space<vmem>>, vector<24x64xf32>,
    } else {
    }
    %c0 = arith.constant 0 : index
    %c0_1 = arith.constant 0 : index
    %3 = vector.load %arg26[%c0, %c0_1] : memref<24x64xf32, #tpu.memory_space<vmem>>, vector<24x64xf32>
    %c0_2 = arith.constant 0 : index
    %c0_3 = arith.constant 0 : index
    %c0_4 = arith.constant 0 : index
    %4 = vector.load %arg8[%c0_2, %c0_3, %c0_4] : memref<1x1x64xf32, #tpu.memory_space<vmem>>, vector<1x1x64xf32>
    %5 = vector.shape_cast %4 : vector<1x1x64xf32> to vector<1x64xf32>
    %c0_5 = arith.constant 0 : index
    %c0_6 = arith.constant 0 : index
    %c0_7 = arith.constant 0 : index
    %6 = vector.load %arg9[%c0_5, %c0_6, %c0_7] : memref<1x1x64xf32, #tpu.memory_space<vmem>>, vector<1x1x64xf32>
    %7 = vector.shape_cast %6 : vector<1x1x64xf32> to vector<1x64xf32>
    %cst = arith.constant dense<0.000000e+00> : vector<24xf32>
    %8 = vector.multi_reduction <add>, %3, %cst [1] : vector<24x64xf32> to vector<24xf32>
    %9 = vector.shape_cast %8 : vector<24xf32> to vector<24x1xf32>
    %cst_8 = arith.constant 6.400000e+01 : f32
    %10 = vector.broadcast %cst_8 : f32 to vector<24x1xf32>
    %11 = arith.divf %9, %10 : vector<24x1xf32>
    %12 = vector.broadcast %11 : vector<24x1xf32> to vector<24x64xf32>
    %13 = arith.subf %3, %12 : vector<24x64xf32>
    %14 = arith.mulf %13, %13 : vector<24x64xf32>
    %cst_9 = arith.constant dense<0.000000e+00> : vector<24xf32>
    %15 = vector.multi_reduction <add>, %14, %cst_9 [1] : vector<24x64xf32> to vector<24xf32>
    %16 = vector.shape_cast %15 : vector<24xf32> to vector<24x1xf32>
    %cst_10 = arith.constant 6.400000e+01 : f32
    %17 = vector.broadcast %cst_10 : f32 to vector<24x1xf32>
    %18 = arith.divf %16, %17 : vector<24x1xf32>
    %cst_11 = arith.constant 9.99999974E-6 : f32
    %19 = vector.broadcast %cst_11 : f32 to vector<24x1xf32>
    %20 = arith.addf %18, %19 : vector<24x1xf32>
    %21 = math.rsqrt %20 : vector<24x1xf32>
    %22 = vector.broadcast %21 : vector<24x1xf32> to vector<24x64xf32>
    %23 = arith.mulf %13, %22 : vector<24x64xf32>
    %24 = vector.broadcast %5 : vector<1x64xf32> to vector<24x64xf32>
    %25 = arith.mulf %23, %24 : vector<24x64xf32>
    %26 = vector.broadcast %7 : vector<1x64xf32> to vector<24x64xf32>
    %27 = arith.addf %25, %26 : vector<24x64xf32>
    %28 = arith.truncf %27 : vector<24x64xf32> to vector<24x64xbf16>
    %c0_12 = arith.constant 0 : index
    %c0_13 = arith.constant 0 : index
    %c0_14 = arith.constant 0 : index
    %29 = vector.load %arg10[%c0_12, %c0_13, %c0_14] : memref<1x64x192xbf16, #tpu.memory_space<vmem>>, vector<1x64x192xbf16>
    %30 = vector.shape_cast %29 : vector<1x64x192xbf16> to vector<64x192xbf16>
    %cst_15 = arith.constant dense<0.000000e+00> : vector<24x192xf32>
    %31 = tpu.matmul %28, %30, %cst_15 {dimension_numbers = #tpu.dot_dimension_numbers<[1], [0], [0], [1], [0, 0, 1, 1], [], []>} : vector<24x64xbf16>, vector<64x192xbf16>, vector<24x192xf32> -> vector<24x192xf32>
    %c0_16 = arith.constant 0 : index
    %c0_17 = arith.constant 0 : index
    %c0_18 = arith.constant 0 : index
    %32 = vector.load %arg11[%c0_16, %c0_17, %c0_18] : memref<1x1x192xf32, #tpu.memory_space<vmem>>, vector<1x1x192xf32>
    %33 = vector.shape_cast %32 : vector<1x1x192xf32> to vector<1x192xf32>
    %34 = vector.broadcast %33 : vector<1x192xf32> to vector<24x192xf32>
    %35 = arith.addf %31, %34 : vector<24x192xf32>
    %36 = vector.extract_strided_slice %35 {offsets = [0, 0], sizes = [24, 64], strides = [1, 1]} : vector<24x192xf32> to vector<24x64xf32>
    %37 = vector.extract_strided_slice %35 {offsets = [0, 64], sizes = [24, 64], strides = [1, 1]} : vector<24x192xf32> to vector<24x64xf32>
    %38 = vector.extract_strided_slice %35 {offsets = [0, 128], sizes = [24, 64], strides = [1, 1]} : vector<24x192xf32> to vector<24x64xf32>
    %c0_19 = arith.constant 0 : index
    %c0_20 = arith.constant 0 : index
    %39 = vector.load %arg7[%c0_19, %c0_20] : memref<1x24xf32, #tpu.memory_space<vmem>>, vector<1x24xf32>
    %40 = vector.extract_strided_slice %36 {offsets = [0, 0], sizes = [24, 16], strides = [1, 1]} : vector<24x64xf32> to vector<24x16xf32>
    %41 = arith.truncf %40 : vector<24x16xf32> to vector<24x16xbf16>
    %42 = vector.extract_strided_slice %37 {offsets = [0, 0], sizes = [24, 16], strides = [1, 1]} : vector<24x64xf32> to vector<24x16xf32>
    %43 = arith.truncf %42 : vector<24x16xf32> to vector<24x16xbf16>
    %44 = vector.extract_strided_slice %38 {offsets = [0, 0], sizes = [24, 16], strides = [1, 1]} : vector<24x64xf32> to vector<24x16xf32>
    %45 = arith.truncf %44 : vector<24x16xf32> to vector<24x16xbf16>
    %cst_21 = arith.constant dense<0.000000e+00> : vector<24x24xf32>
    %46 = tpu.matmul %41, %43, %cst_21 {dimension_numbers = #tpu.dot_dimension_numbers<[1], [1], [0], [0], [0, 0, 1, 0], [], []>} : vector<24x16xbf16>, vector<24x16xbf16>, vector<24x24xf32> -> vector<24x24xf32>
    %47 = vector.broadcast %39 : vector<1x24xf32> to vector<24x24xf32>
    %48 = arith.addf %46, %47 : vector<24x24xf32>
    %cst_22 = arith.constant dense<0xFF800000> : vector<24xf32>
    %49 = vector.multi_reduction <maximumf>, %48, %cst_22 [1] : vector<24x24xf32> to vector<24xf32>
    %50 = vector.shape_cast %49 : vector<24xf32> to vector<24x1xf32>
    %51 = vector.broadcast %50 : vector<24x1xf32> to vector<24x24xf32>
    %52 = arith.subf %48, %51 : vector<24x24xf32>
    %53 = math.exp %52 : vector<24x24xf32>
    %cst_23 = arith.constant dense<0.000000e+00> : vector<24xf32>
    %54 = vector.multi_reduction <add>, %53, %cst_23 [1] : vector<24x24xf32> to vector<24xf32>
    %55 = vector.shape_cast %54 : vector<24xf32> to vector<24x1xf32>
    %cst_24 = arith.constant 1.000000e+00 : f32
    %56 = vector.broadcast %cst_24 : f32 to vector<24x1xf32>
    %57 = arith.divf %56, %55 : vector<24x1xf32>
    %58 = vector.broadcast %57 : vector<24x1xf32> to vector<24x24xf32>
    %59 = arith.mulf %53, %58 : vector<24x24xf32>
    %60 = arith.truncf %59 : vector<24x24xf32> to vector<24x24xbf16>
    %cst_25 = arith.constant dense<0.000000e+00> : vector<24x16xf32>
    %61 = tpu.matmul %60, %45, %cst_25 {dimension_numbers = #tpu.dot_dimension_numbers<[1], [0], [0], [1], [0, 0, 1, 1], [], []>} : vector<24x24xbf16>, vector<24x16xbf16>, vector<24x16xf32> -> vector<24x16xf32>
    %62 = vector.extract_strided_slice %36 {offsets = [0, 16], sizes = [24, 16], strides = [1, 1]} : vector<24x64xf32> to vector<24x16xf32>
    %63 = arith.truncf %62 : vector<24x16xf32> to vector<24x16xbf16>
    %64 = vector.extract_strided_slice %37 {offsets = [0, 16], sizes = [24, 16], strides = [1, 1]} : vector<24x64xf32> to vector<24x16xf32>
    %65 = arith.truncf %64 : vector<24x16xf32> to vector<24x16xbf16>
    %66 = vector.extract_strided_slice %38 {offsets = [0, 16], sizes = [24, 16], strides = [1, 1]} : vector<24x64xf32> to vector<24x16xf32>
    %67 = arith.truncf %66 : vector<24x16xf32> to vector<24x16xbf16>
    %cst_26 = arith.constant dense<0.000000e+00> : vector<24x24xf32>
    %68 = tpu.matmul %63, %65, %cst_26 {dimension_numbers = #tpu.dot_dimension_numbers<[1], [1], [0], [0], [0, 0, 1, 0], [], []>} : vector<24x16xbf16>, vector<24x16xbf16>, vector<24x24xf32> -> vector<24x24xf32>
    %69 = vector.broadcast %39 : vector<1x24xf32> to vector<24x24xf32>
    %70 = arith.addf %68, %69 : vector<24x24xf32>
    %cst_27 = arith.constant dense<0xFF800000> : vector<24xf32>
    %71 = vector.multi_reduction <maximumf>, %70, %cst_27 [1] : vector<24x24xf32> to vector<24xf32>
    %72 = vector.shape_cast %71 : vector<24xf32> to vector<24x1xf32>
    %73 = vector.broadcast %72 : vector<24x1xf32> to vector<24x24xf32>
    %74 = arith.subf %70, %73 : vector<24x24xf32>
    %75 = math.exp %74 : vector<24x24xf32>
    %cst_28 = arith.constant dense<0.000000e+00> : vector<24xf32>
    %76 = vector.multi_reduction <add>, %75, %cst_28 [1] : vector<24x24xf32> to vector<24xf32>
    %77 = vector.shape_cast %76 : vector<24xf32> to vector<24x1xf32>
    %cst_29 = arith.constant 1.000000e+00 : f32
    %78 = vector.broadcast %cst_29 : f32 to vector<24x1xf32>
    %79 = arith.divf %78, %77 : vector<24x1xf32>
    %80 = vector.broadcast %79 : vector<24x1xf32> to vector<24x24xf32>
    %81 = arith.mulf %75, %80 : vector<24x24xf32>
    %82 = arith.truncf %81 : vector<24x24xf32> to vector<24x24xbf16>
    %cst_30 = arith.constant dense<0.000000e+00> : vector<24x16xf32>
    %83 = tpu.matmul %82, %67, %cst_30 {dimension_numbers = #tpu.dot_dimension_numbers<[1], [0], [0], [1], [0, 0, 1, 1], [], []>} : vector<24x24xbf16>, vector<24x16xbf16>, vector<24x16xf32> -> vector<24x16xf32>
    %84 = vector.extract_strided_slice %36 {offsets = [0, 32], sizes = [24, 16], strides = [1, 1]} : vector<24x64xf32> to vector<24x16xf32>
    %85 = arith.truncf %84 : vector<24x16xf32> to vector<24x16xbf16>
    %86 = vector.extract_strided_slice %37 {offsets = [0, 32], sizes = [24, 16], strides = [1, 1]} : vector<24x64xf32> to vector<24x16xf32>
    %87 = arith.truncf %86 : vector<24x16xf32> to vector<24x16xbf16>
    %88 = vector.extract_strided_slice %38 {offsets = [0, 32], sizes = [24, 16], strides = [1, 1]} : vector<24x64xf32> to vector<24x16xf32>
    %89 = arith.truncf %88 : vector<24x16xf32> to vector<24x16xbf16>
    %cst_31 = arith.constant dense<0.000000e+00> : vector<24x24xf32>
    %90 = tpu.matmul %85, %87, %cst_31 {dimension_numbers = #tpu.dot_dimension_numbers<[1], [1], [0], [0], [0, 0, 1, 0], [], []>} : vector<24x16xbf16>, vector<24x16xbf16>, vector<24x24xf32> -> vector<24x24xf32>
    %91 = vector.broadcast %39 : vector<1x24xf32> to vector<24x24xf32>
    %92 = arith.addf %90, %91 : vector<24x24xf32>
    %cst_32 = arith.constant dense<0xFF800000> : vector<24xf32>
    %93 = vector.multi_reduction <maximumf>, %92, %cst_32 [1] : vector<24x24xf32> to vector<24xf32>
    %94 = vector.shape_cast %93 : vector<24xf32> to vector<24x1xf32>
    %95 = vector.broadcast %94 : vector<24x1xf32> to vector<24x24xf32>
    %96 = arith.subf %92, %95 : vector<24x24xf32>
    %97 = math.exp %96 : vector<24x24xf32>
    %cst_33 = arith.constant dense<0.000000e+00> : vector<24xf32>
    %98 = vector.multi_reduction <add>, %97, %cst_33 [1] : vector<24x24xf32> to vector<24xf32>
    %99 = vector.shape_cast %98 : vector<24xf32> to vector<24x1xf32>
    %cst_34 = arith.constant 1.000000e+00 : f32
    %100 = vector.broadcast %cst_34 : f32 to vector<24x1xf32>
    %101 = arith.divf %100, %99 : vector<24x1xf32>
    %102 = vector.broadcast %101 : vector<24x1xf32> to vector<24x24xf32>
    %103 = arith.mulf %97, %102 : vector<24x24xf32>
    %104 = arith.truncf %103 : vector<24x24xf32> to vector<24x24xbf16>
    %cst_35 = arith.constant dense<0.000000e+00> : vector<24x16xf32>
    %105 = tpu.matmul %104, %89, %cst_35 {dimension_numbers = #tpu.dot_dimension_numbers<[1], [0], [0], [1], [0, 0, 1, 1], [], []>} : vector<24x24xbf16>, vector<24x16xbf16>, vector<24x16xf32> -> vector<24x16xf32>
    %106 = vector.extract_strided_slice %36 {offsets = [0, 48], sizes = [24, 16], strides = [1, 1]} : vector<24x64xf32> to vector<24x16xf32>
    %107 = arith.truncf %106 : vector<24x16xf32> to vector<24x16xbf16>
    %108 = vector.extract_strided_slice %37 {offsets = [0, 48], sizes = [24, 16], strides = [1, 1]} : vector<24x64xf32> to vector<24x16xf32>
    %109 = arith.truncf %108 : vector<24x16xf32> to vector<24x16xbf16>
    %110 = vector.extract_strided_slice %38 {offsets = [0, 48], sizes = [24, 16], strides = [1, 1]} : vector<24x64xf32> to vector<24x16xf32>
    %111 = arith.truncf %110 : vector<24x16xf32> to vector<24x16xbf16>
    %cst_36 = arith.constant dense<0.000000e+00> : vector<24x24xf32>
    %112 = tpu.matmul %107, %109, %cst_36 {dimension_numbers = #tpu.dot_dimension_numbers<[1], [1], [0], [0], [0, 0, 1, 0], [], []>} : vector<24x16xbf16>, vector<24x16xbf16>, vector<24x24xf32> -> vector<24x24xf32>
    %113 = vector.broadcast %39 : vector<1x24xf32> to vector<24x24xf32>
    %114 = arith.addf %112, %113 : vector<24x24xf32>
    %cst_37 = arith.constant dense<0xFF800000> : vector<24xf32>
    %115 = vector.multi_reduction <maximumf>, %114, %cst_37 [1] : vector<24x24xf32> to vector<24xf32>
    %116 = vector.shape_cast %115 : vector<24xf32> to vector<24x1xf32>
    %117 = vector.broadcast %116 : vector<24x1xf32> to vector<24x24xf32>
    %118 = arith.subf %114, %117 : vector<24x24xf32>
    %119 = math.exp %118 : vector<24x24xf32>
    %cst_38 = arith.constant dense<0.000000e+00> : vector<24xf32>
    %120 = vector.multi_reduction <add>, %119, %cst_38 [1] : vector<24x24xf32> to vector<24xf32>
    %121 = vector.shape_cast %120 : vector<24xf32> to vector<24x1xf32>
    %cst_39 = arith.constant 1.000000e+00 : f32
    %122 = vector.broadcast %cst_39 : f32 to vector<24x1xf32>
    %123 = arith.divf %122, %121 : vector<24x1xf32>
    %124 = vector.broadcast %123 : vector<24x1xf32> to vector<24x24xf32>
    %125 = arith.mulf %119, %124 : vector<24x24xf32>
    %126 = arith.truncf %125 : vector<24x24xf32> to vector<24x24xbf16>
    %cst_40 = arith.constant dense<0.000000e+00> : vector<24x16xf32>
    %127 = tpu.matmul %126, %111, %cst_40 {dimension_numbers = #tpu.dot_dimension_numbers<[1], [0], [0], [1], [0, 0, 1, 1], [], []>} : vector<24x24xbf16>, vector<24x16xbf16>, vector<24x16xf32> -> vector<24x16xf32>
    %128 = tpu.concatenate %61, %83, %105, %127 in 1 : vector<24x16xf32>, vector<24x16xf32>, vector<24x16xf32>, vector<24x16xf32> -> vector<24x64xf32>
    %129 = arith.truncf %128 : vector<24x64xf32> to vector<24x64xbf16>
    %c0_41 = arith.constant 0 : index
    %c0_42 = arith.constant 0 : index
    %c0_43 = arith.constant 0 : index
    %130 = vector.load %arg12[%c0_41, %c0_42, %c0_43] : memref<1x64x64xbf16, #tpu.memory_space<vmem>>, vector<1x64x64xbf16>
    %131 = vector.shape_cast %130 : vector<1x64x64xbf16> to vector<64x64xbf16>
    %cst_44 = arith.constant dense<0.000000e+00> : vector<24x64xf32>
    %132 = tpu.matmul %129, %131, %cst_44 {dimension_numbers = #tpu.dot_dimension_numbers<[1], [0], [0], [1], [0, 0, 1, 1], [], []>} : vector<24x64xbf16>, vector<64x64xbf16>, vector<24x64xf32> -> vector<24x64xf32>
    %c0_45 = arith.constant 0 : index
    %c0_46 = arith.constant 0 : index
    %c0_47 = arith.constant 0 : index
    %133 = vector.load %arg13[%c0_45, %c0_46, %c0_47] : memref<1x1x64xf32, #tpu.memory_space<vmem>>, vector<1x1x64xf32>
    %134 = vector.shape_cast %133 : vector<1x1x64xf32> to vector<1x64xf32>
    %135 = vector.broadcast %134 : vector<1x64xf32> to vector<24x64xf32>
    %136 = arith.addf %132, %135 : vector<24x64xf32>
    %137 = arith.addf %3, %136 : vector<24x64xf32>
    %c0_48 = arith.constant 0 : index
    %c0_49 = arith.constant 0 : index
    %c0_50 = arith.constant 0 : index
    %138 = vector.load %arg14[%c0_48, %c0_49, %c0_50] : memref<1x1x64xf32, #tpu.memory_space<vmem>>, vector<1x1x64xf32>
    %139 = vector.shape_cast %138 : vector<1x1x64xf32> to vector<1x64xf32>
    %c0_51 = arith.constant 0 : index
    %c0_52 = arith.constant 0 : index
    %c0_53 = arith.constant 0 : index
    %140 = vector.load %arg15[%c0_51, %c0_52, %c0_53] : memref<1x1x64xf32, #tpu.memory_space<vmem>>, vector<1x1x64xf32>
    %141 = vector.shape_cast %140 : vector<1x1x64xf32> to vector<1x64xf32>
    %cst_54 = arith.constant dense<0.000000e+00> : vector<24xf32>
    %142 = vector.multi_reduction <add>, %137, %cst_54 [1] : vector<24x64xf32> to vector<24xf32>
    %143 = vector.shape_cast %142 : vector<24xf32> to vector<24x1xf32>
    %cst_55 = arith.constant 6.400000e+01 : f32
    %144 = vector.broadcast %cst_55 : f32 to vector<24x1xf32>
    %145 = arith.divf %143, %144 : vector<24x1xf32>
    %146 = vector.broadcast %145 : vector<24x1xf32> to vector<24x64xf32>
    %147 = arith.subf %137, %146 : vector<24x64xf32>
    %148 = arith.mulf %147, %147 : vector<24x64xf32>
    %cst_56 = arith.constant dense<0.000000e+00> : vector<24xf32>
    %149 = vector.multi_reduction <add>, %148, %cst_56 [1] : vector<24x64xf32> to vector<24xf32>
    %150 = vector.shape_cast %149 : vector<24xf32> to vector<24x1xf32>
    %cst_57 = arith.constant 6.400000e+01 : f32
    %151 = vector.broadcast %cst_57 : f32 to vector<24x1xf32>
    %152 = arith.divf %150, %151 : vector<24x1xf32>
    %cst_58 = arith.constant 9.99999974E-6 : f32
    %153 = vector.broadcast %cst_58 : f32 to vector<24x1xf32>
    %154 = arith.addf %152, %153 : vector<24x1xf32>
    %155 = math.rsqrt %154 : vector<24x1xf32>
    %156 = vector.broadcast %155 : vector<24x1xf32> to vector<24x64xf32>
    %157 = arith.mulf %147, %156 : vector<24x64xf32>
    %158 = vector.broadcast %139 : vector<1x64xf32> to vector<24x64xf32>
    %159 = arith.mulf %157, %158 : vector<24x64xf32>
    %160 = vector.broadcast %141 : vector<1x64xf32> to vector<24x64xf32>
    %161 = arith.addf %159, %160 : vector<24x64xf32>
    %162 = arith.truncf %161 : vector<24x64xf32> to vector<24x64xbf16>
    %c0_59 = arith.constant 0 : index
    %c0_60 = arith.constant 0 : index
    %c0_61 = arith.constant 0 : index
    %163 = vector.load %arg16[%c0_59, %c0_60, %c0_61] : memref<1x64x256xbf16, #tpu.memory_space<vmem>>, vector<1x64x256xbf16>
    %164 = vector.shape_cast %163 : vector<1x64x256xbf16> to vector<64x256xbf16>
    %cst_62 = arith.constant dense<0.000000e+00> : vector<24x256xf32>
    %165 = tpu.matmul %162, %164, %cst_62 {dimension_numbers = #tpu.dot_dimension_numbers<[1], [0], [0], [1], [0, 0, 1, 1], [], []>} : vector<24x64xbf16>, vector<64x256xbf16>, vector<24x256xf32> -> vector<24x256xf32>
    %c0_63 = arith.constant 0 : index
    %c0_64 = arith.constant 0 : index
    %c0_65 = arith.constant 0 : index
    %166 = vector.load %arg17[%c0_63, %c0_64, %c0_65] : memref<1x1x256xf32, #tpu.memory_space<vmem>>, vector<1x1x256xf32>
    %167 = vector.shape_cast %166 : vector<1x1x256xf32> to vector<1x256xf32>
    %168 = vector.broadcast %167 : vector<1x256xf32> to vector<24x256xf32>
    %169 = arith.addf %165, %168 : vector<24x256xf32>
    %cst_66 = arith.constant 1.702000e+00 : f32
    %170 = vector.broadcast %cst_66 : f32 to vector<24x256xf32>
    %171 = arith.mulf %170, %169 : vector<24x256xf32>
    %172 = arith.negf %171 : vector<24x256xf32>
    %173 = math.exp %172 : vector<24x256xf32>
    %cst_67 = arith.constant 1.000000e+00 : f32
    %174 = vector.broadcast %cst_67 : f32 to vector<24x256xf32>
    %175 = arith.addf %174, %173 : vector<24x256xf32>
    %176 = arith.divf %174, %175 : vector<24x256xf32>
    %177 = arith.mulf %169, %176 : vector<24x256xf32>
    %178 = arith.truncf %177 : vector<24x256xf32> to vector<24x256xbf16>
    %c0_68 = arith.constant 0 : index
    %c0_69 = arith.constant 0 : index
    %c0_70 = arith.constant 0 : index
    %179 = vector.load %arg18[%c0_68, %c0_69, %c0_70] : memref<1x256x64xbf16, #tpu.memory_space<vmem>>, vector<1x256x64xbf16>
    %180 = vector.shape_cast %179 : vector<1x256x64xbf16> to vector<256x64xbf16>
    %cst_71 = arith.constant dense<0.000000e+00> : vector<24x64xf32>
    %181 = tpu.matmul %178, %180, %cst_71 {dimension_numbers = #tpu.dot_dimension_numbers<[1], [0], [0], [1], [0, 0, 1, 1], [], []>} : vector<24x256xbf16>, vector<256x64xbf16>, vector<24x64xf32> -> vector<24x64xf32>
    %c0_72 = arith.constant 0 : index
    %c0_73 = arith.constant 0 : index
    %c0_74 = arith.constant 0 : index
    %182 = vector.load %arg19[%c0_72, %c0_73, %c0_74] : memref<1x1x64xf32, #tpu.memory_space<vmem>>, vector<1x1x64xf32>
    %183 = vector.shape_cast %182 : vector<1x1x64xf32> to vector<1x64xf32>
    %184 = vector.broadcast %183 : vector<1x64xf32> to vector<24x64xf32>
    %185 = arith.addf %181, %184 : vector<24x64xf32>
    %186 = arith.addf %137, %185 : vector<24x64xf32>
    %c0_75 = arith.constant 0 : index
    %c0_76 = arith.constant 0 : index
    %187 = vector.load %arg26[%c0_75, %c0_76] : memref<24x64xf32, #tpu.memory_space<vmem>>, vector<24x64xf32>
    tpu.vector_store %arg26[%c0_75, %c0_76], %186 {strides = array<i32>} : memref<24x64xf32, #tpu.memory_space<vmem>>, vector<24x64xf32>,
    %c1_i32 = arith.constant 1 : i32
    %188 = arith.cmpi eq, %arg1, %c1_i32 : i32
    %189 = arith.extui %188 : i1 to i32
    %c0_i32_77 = arith.constant 0 : i32
    %190 = arith.cmpi ne, %189, %c0_i32_77 : i32
    scf.if %190 {
      %191 = vector.extract_strided_slice %186 {offsets = [0, 0], sizes = [1, 64], strides = [1, 1]} : vector<24x64xf32> to vector<1x64xf32>
      %c0_78 = arith.constant 0 : index
      %c0_79 = arith.constant 0 : index
      %192 = vector.load %arg20[%c0_78, %c0_79] : memref<1x64xf32, #tpu.memory_space<vmem>>, vector<1x64xf32>
      %c0_80 = arith.constant 0 : index
      %c0_81 = arith.constant 0 : index
      %193 = vector.load %arg21[%c0_80, %c0_81] : memref<1x64xf32, #tpu.memory_space<vmem>>, vector<1x64xf32>
      %cst_82 = arith.constant dense<0.000000e+00> : vector<1xf32>
      %194 = vector.multi_reduction <add>, %191, %cst_82 [1] : vector<1x64xf32> to vector<1xf32>
      %195 = vector.shape_cast %194 : vector<1xf32> to vector<1x1xf32>
      %cst_83 = arith.constant 6.400000e+01 : f32
      %196 = vector.broadcast %cst_83 : f32 to vector<1x1xf32>
      %197 = arith.divf %195, %196 : vector<1x1xf32>
      %198 = vector.broadcast %197 : vector<1x1xf32> to vector<1x64xf32>
      %199 = arith.subf %191, %198 : vector<1x64xf32>
      %200 = arith.mulf %199, %199 : vector<1x64xf32>
      %cst_84 = arith.constant dense<0.000000e+00> : vector<1xf32>
      %201 = vector.multi_reduction <add>, %200, %cst_84 [1] : vector<1x64xf32> to vector<1xf32>
      %202 = vector.shape_cast %201 : vector<1xf32> to vector<1x1xf32>
      %cst_85 = arith.constant 6.400000e+01 : f32
      %203 = vector.broadcast %cst_85 : f32 to vector<1x1xf32>
      %204 = arith.divf %202, %203 : vector<1x1xf32>
      %cst_86 = arith.constant 9.99999974E-6 : f32
      %205 = vector.broadcast %cst_86 : f32 to vector<1x1xf32>
      %206 = arith.addf %204, %205 : vector<1x1xf32>
      %207 = math.rsqrt %206 : vector<1x1xf32>
      %208 = vector.broadcast %207 : vector<1x1xf32> to vector<1x64xf32>
      %209 = arith.mulf %199, %208 : vector<1x64xf32>
      %210 = arith.mulf %209, %192 : vector<1x64xf32>
      %211 = arith.addf %210, %193 : vector<1x64xf32>
      %c0_87 = arith.constant 0 : index
      %c0_88 = arith.constant 0 : index
      %212 = vector.load %arg22[%c0_87, %c0_88] : memref<64x32xf32, #tpu.memory_space<vmem>>, vector<64x32xf32>
      %cst_89 = arith.constant dense<0.000000e+00> : vector<1x32xf32>
      %213 = tpu.matmul %211, %212, %cst_89 {dimension_numbers = #tpu.dot_dimension_numbers<[1], [0], [0], [1], [0, 0, 1, 1], [], []>} : vector<1x64xf32>, vector<64x32xf32>, vector<1x32xf32> -> vector<1x32xf32>
      %c0_90 = arith.constant 0 : index
      %c0_91 = arith.constant 0 : index
      %214 = vector.load %arg23[%c0_90, %c0_91] : memref<32x16xf32, #tpu.memory_space<vmem>>, vector<32x16xf32>
      %cst_92 = arith.constant dense<0.000000e+00> : vector<1x16xf32>
      %215 = tpu.matmul %213, %214, %cst_92 {dimension_numbers = #tpu.dot_dimension_numbers<[1], [0], [0], [1], [0, 0, 1, 1], [], []>} : vector<1x32xf32>, vector<32x16xf32>, vector<1x16xf32> -> vector<1x16xf32>
      %c0_93 = arith.constant 0 : index
      %c0_94 = arith.constant 0 : index
      %216 = vector.load %arg24[%c0_93, %c0_94] : memref<1x16xf32, #tpu.memory_space<vmem>>, vector<1x16xf32>
      %217 = arith.addf %215, %216 : vector<1x16xf32>
      %cst_95 = arith.constant 0.000000e+00 : f32
      %218 = vector.broadcast %cst_95 : f32 to vector<1x16xf32>
      %219 = arith.maximumf %217, %218 : vector<1x16xf32>
      %220 = vector.shape_cast %219 : vector<1x16xf32> to vector<1x1x16xf32>
      %c0_96 = arith.constant 0 : index
      %c0_97 = arith.constant 0 : index
      %c0_98 = arith.constant 0 : index
      %221 = vector.load %arg25[%c0_96, %c0_97, %c0_98] : memref<1x1x16xf32, #tpu.memory_space<vmem>>, vector<1x1x16xf32>
      tpu.vector_store %arg25[%c0_96, %c0_97, %c0_98], %220 {strides = array<i32>} : memref<1x1x16xf32, #tpu.memory_space<vmem>>, vector<1x1x16xf32>,
    } else {
    }
    return
  }
  func.func @transform_0(%arg0: i32, %arg1: i32) -> (i32, i32, i32) {
    %c0_i32 = arith.constant 0 : i32
    %c0_i32_0 = arith.constant 0 : i32
    %c0_i32_1 = arith.constant 0 : i32
    return %arg0, %c0_i32, %c0_i32_0 : i32, i32, i32
  }
  func.func @transform_1(%arg0: i32, %arg1: i32) -> (i32, i32) {
    %c0_i32 = arith.constant 0 : i32
    %c0_i32_0 = arith.constant 0 : i32
    %c0_i32_1 = arith.constant 0 : i32
    return %c0_i32, %c0_i32_0 : i32, i32
  }
  func.func @transform_2(%arg0: i32, %arg1: i32) -> (i32, i32) {
    %c0_i32 = arith.constant 0 : i32
    %c0_i32_0 = arith.constant 0 : i32
    %c0_i32_1 = arith.constant 0 : i32
    return %c0_i32, %c0_i32_0 : i32, i32
  }
  func.func @transform_3(%arg0: i32, %arg1: i32) -> (i32, i32) {
    %c0_i32 = arith.constant 0 : i32
    %c0_i32_0 = arith.constant 0 : i32
    %c0_i32_1 = arith.constant 0 : i32
    return %c0_i32, %c0_i32_0 : i32, i32
  }
  func.func @transform_4(%arg0: i32, %arg1: i32) -> (i32, i32) {
    %c0_i32 = arith.constant 0 : i32
    %c0_i32_0 = arith.constant 0 : i32
    %c0_i32_1 = arith.constant 0 : i32
    return %c0_i32, %c0_i32_0 : i32, i32
  }
  func.func @transform_5(%arg0: i32, %arg1: i32) -> (i32, i32) {
    %c0_i32 = arith.constant 0 : i32
    %c0_i32_0 = arith.constant 0 : i32
    %c0_i32_1 = arith.constant 0 : i32
    return %c0_i32, %c0_i32_0 : i32, i32
  }
  func.func @transform_6(%arg0: i32, %arg1: i32) -> (i32, i32, i32) {
    %c0_i32 = arith.constant 0 : i32
    %c0_i32_0 = arith.constant 0 : i32
    %c0_i32_1 = arith.constant 0 : i32
    return %arg1, %c0_i32, %c0_i32_0 : i32, i32, i32
  }
  func.func @transform_7(%arg0: i32, %arg1: i32) -> (i32, i32, i32) {
    %c0_i32 = arith.constant 0 : i32
    %c0_i32_0 = arith.constant 0 : i32
    %c0_i32_1 = arith.constant 0 : i32
    return %arg1, %c0_i32, %c0_i32_0 : i32, i32, i32
  }
  func.func @transform_8(%arg0: i32, %arg1: i32) -> (i32, i32, i32) {
    %c0_i32 = arith.constant 0 : i32
    %c0_i32_0 = arith.constant 0 : i32
    %c0_i32_1 = arith.constant 0 : i32
    return %arg1, %c0_i32, %c0_i32_0 : i32, i32, i32
  }
  func.func @transform_9(%arg0: i32, %arg1: i32) -> (i32, i32, i32) {
    %c0_i32 = arith.constant 0 : i32
    %c0_i32_0 = arith.constant 0 : i32
    %c0_i32_1 = arith.constant 0 : i32
    return %arg1, %c0_i32, %c0_i32_0 : i32, i32, i32
  }
  func.func @transform_10(%arg0: i32, %arg1: i32) -> (i32, i32, i32) {
    %c0_i32 = arith.constant 0 : i32
    %c0_i32_0 = arith.constant 0 : i32
    %c0_i32_1 = arith.constant 0 : i32
    return %arg1, %c0_i32, %c0_i32_0 : i32, i32, i32
  }
  func.func @transform_11(%arg0: i32, %arg1: i32) -> (i32, i32, i32) {
    %c0_i32 = arith.constant 0 : i32
    %c0_i32_0 = arith.constant 0 : i32
    %c0_i32_1 = arith.constant 0 : i32
    return %arg1, %c0_i32, %c0_i32_0 : i32, i32, i32
  }
  func.func @transform_12(%arg0: i32, %arg1: i32) -> (i32, i32, i32) {
    %c0_i32 = arith.constant 0 : i32
    %c0_i32_0 = arith.constant 0 : i32
    %c0_i32_1 = arith.constant 0 : i32
    return %arg1, %c0_i32, %c0_i32_0 : i32, i32, i32
  }
  func.func @transform_13(%arg0: i32, %arg1: i32) -> (i32, i32, i32) {
    %c0_i32 = arith.constant 0 : i32
    %c0_i32_0 = arith.constant 0 : i32
    %c0_i32_1 = arith.constant 0 : i32
    return %arg1, %c0_i32, %c0_i32_0 : i32, i32, i32
  }
  func.func @transform_14(%arg0: i32, %arg1: i32) -> (i32, i32, i32) {
    %c0_i32 = arith.constant 0 : i32
    %c0_i32_0 = arith.constant 0 : i32
    %c0_i32_1 = arith.constant 0 : i32
    return %arg1, %c0_i32, %c0_i32_0 : i32, i32, i32
  }
  func.func @transform_15(%arg0: i32, %arg1: i32) -> (i32, i32, i32) {
    %c0_i32 = arith.constant 0 : i32
    %c0_i32_0 = arith.constant 0 : i32
    %c0_i32_1 = arith.constant 0 : i32
    return %arg1, %c0_i32, %c0_i32_0 : i32, i32, i32
  }
  func.func @transform_16(%arg0: i32, %arg1: i32) -> (i32, i32, i32) {
    %c0_i32 = arith.constant 0 : i32
    %c0_i32_0 = arith.constant 0 : i32
    %c0_i32_1 = arith.constant 0 : i32
    return %arg1, %c0_i32, %c0_i32_0 : i32, i32, i32
  }
  func.func @transform_17(%arg0: i32, %arg1: i32) -> (i32, i32, i32) {
    %c0_i32 = arith.constant 0 : i32
    %c0_i32_0 = arith.constant 0 : i32
    %c0_i32_1 = arith.constant 0 : i32
    return %arg1, %c0_i32, %c0_i32_0 : i32, i32, i32
  }
  func.func @transform_18(%arg0: i32, %arg1: i32) -> (i32, i32) {
    %c0_i32 = arith.constant 0 : i32
    %c0_i32_0 = arith.constant 0 : i32
    %c0_i32_1 = arith.constant 0 : i32
    return %c0_i32, %c0_i32_0 : i32, i32
  }
  func.func @transform_19(%arg0: i32, %arg1: i32) -> (i32, i32) {
    %c0_i32 = arith.constant 0 : i32
    %c0_i32_0 = arith.constant 0 : i32
    %c0_i32_1 = arith.constant 0 : i32
    return %c0_i32, %c0_i32_0 : i32, i32
  }
  func.func @transform_20(%arg0: i32, %arg1: i32) -> (i32, i32) {
    %c0_i32 = arith.constant 0 : i32
    %c0_i32_0 = arith.constant 0 : i32
    %c0_i32_1 = arith.constant 0 : i32
    return %c0_i32, %c0_i32_0 : i32, i32
  }
  func.func @transform_21(%arg0: i32, %arg1: i32) -> (i32, i32) {
    %c0_i32 = arith.constant 0 : i32
    %c0_i32_0 = arith.constant 0 : i32
    %c0_i32_1 = arith.constant 0 : i32
    return %c0_i32, %c0_i32_0 : i32, i32
  }
  func.func @transform_22(%arg0: i32, %arg1: i32) -> (i32, i32) {
    %c0_i32 = arith.constant 0 : i32
    %c0_i32_0 = arith.constant 0 : i32
    %c0_i32_1 = arith.constant 0 : i32
    return %c0_i32, %c0_i32_0 : i32, i32
  }
  func.func @transform_23(%arg0: i32, %arg1: i32) -> (i32, i32, i32) {
    %c0_i32 = arith.constant 0 : i32
    %c0_i32_0 = arith.constant 0 : i32
    %c0_i32_1 = arith.constant 0 : i32
    return %arg0, %c0_i32, %c0_i32_0 : i32, i32, i32
  }
}

</mosaic_0001>

<bundles_post_ra>
// kernel: clip_encoder_forward.1
= control target key start
LH: loop header
LB: loop body
LE: loop exit
PB: predicated region body
PF: predicated region fallthrough
CT: control target
= control target key end

     0   :  { %s9116_s0 = inlined_call_operand.vmem [shape: f32[2,1,768], index: 0, kind: input, shape index: {}]   ;;  %s9117_s1 = inlined_call_operand.hbm [shape: bf16[768,1024], index: 1, kind: input, shape index: {}]   ;;  %s9118_s2 = inlined_call_operand.hbm [shape: f32[24,64], index: 2, kind: input, shape index: {}]   ;;  %s9119_s3 = inlined_call_operand.hbm [shape: f32[1,64], index: 3, kind: input, shape index: {}]   ;;  %s9120_s4 = inlined_call_operand.hbm [shape: f32[1,64], index: 4, kind: input, shape index: {}]   ;;  %s9121_s5 = inlined_call_operand.hbm [shape: f32[1,24], index: 5, kind: input, shape index: {}]   ;;  %s9122_s6 = inlined_call_operand.hbm [shape: f32[2,1,64], index: 6, kind: input, shape index: {}]   ;;  %s9123_s7 = inlined_call_operand.hbm [shape: f32[2,1,64], index: 7, kind: input, shape index: {}]   ;;  %s9124_s8 = inlined_call_operand.hbm [shape: bf16[2,64,192], index: 8, kind: input, shape index: {}]   ;;  %s9125_s9 = inlined_call_operand.hbm [shape: f32[2,1,192], index: 9, kind: input, shape index: {}]   ;;  %s9126_s10 = inlined_call_operand.hbm [shape: bf16[2,64,64], index: 10, kind: input, shape index: {}]   ;;  %s9127_s11 = inlined_call_operand.hbm [shape: f32[2,1,64], index: 11, kind: input, shape index: {}]   ;;  %s9128_s12 = inlined_call_operand.hbm [shape: f32[2,1,64], index: 12, kind: input, shape index: {}]   ;;  %s9129_s13 = inlined_call_operand.hbm [shape: f32[2,1,64], index: 13, kind: input, shape index: {}]   ;;  %s9130_s14 = inlined_call_operand.hbm [shape: bf16[2,64,256], index: 14, kind: input, shape index: {}]   ;;  %s9131_s15 = inlined_call_operand.hbm [shape: f32[2,1,256], index: 15, kind: input, shape index: {}]   ;;  %s9132_s16 = inlined_call_operand.vmem [shape: bf16[2,256,64], index: 16, kind: input, shape index: {}]   ;;  %s9133_s17 = inlined_call_operand.hbm [shape: f32[2,1,64], index: 17, kind: input, shape index: {}]   ;;  %s9134_s18 = inlined_call_operand.hbm [shape: f32[1,64], index: 18, kind: input, shape index: {}]   ;;  %s9135_s19 = inlined_call_operand.hbm [shape: f32[1,64], index: 19, kind: input, shape index: {}]   ;;  %s9136_s20 = inlined_call_operand.vmem [shape: f32[64,32], index: 20, kind: input, shape index: {}]   ;;  %s9137_s21 = inlined_call_operand.vmem [shape: f32[32,16], index: 21, kind: input, shape index: {}]   ;;  %s9138_s22 = inlined_call_operand.hbm [shape: f32[1,16], index: 22, kind: input, shape index: {}]   ;;  %s9139_s23 = inlined_call_operand.hbm [shape: f32[2,1,16], index: 23, kind: output, shape index: {}]  }
   0x1   :  { %9175 = sst [smem:[#allocation60_spill]] %s9116_s0 }
   0x2   :  { %9176 = sst [smem:[#allocation61_spill]] %s9117_s1 }
   0x3   :  { %9177 = sst [smem:[#allocation62_spill]] %s9118_s2 }
   0x4   :  { %9178 = sst [smem:[#allocation63_spill]] %s9119_s3 }
   0x5   :  { %9179 = sst [smem:[#allocation64_spill]] %s9120_s4 }
   0x6   :  { %9180 = sst [smem:[#allocation65_spill]] %s9121_s5 }
   0x7   :  { %9181 = sst [smem:[#allocation66_spill]] %s9122_s6 }
   0x8   :  { %9182 = sst [smem:[#allocation67_spill]] %s9123_s7 }
   0x9   :  { %9183 = sst [smem:[#allocation68_spill]] %s9124_s8 }
   0xa   :  { %9184 = sst [smem:[#allocation69_spill]] %s9125_s9 }
   0xb   :  { %9185 = sst [smem:[#allocation70_spill]] %s9126_s10 }
   0xc   :  { %9186 = sst [smem:[#allocation71_spill]] %s9127_s11 }
   0xd   :  { %9187 = sst [smem:[#allocation72_spill]] %s9129_s13 }
   0xe   :  { %9188 = sst [smem:[#allocation73_spill]] %s9130_s14 }
   0xf   :  { %9189 = sst [smem:[#allocation74_spill]] %s9131_s15 }
  0x10   :  { %9190 = sst [smem:[#allocation75_spill]] %s9132_s16 }
  0x11   :  { %9191 = sst [smem:[#allocation76_spill]] %s9133_s17 }
  0x12   :  { %9192 = sst [smem:[#allocation77_spill]] %s9134_s18 }
  0x13   :  { %9193 = sst [smem:[#allocation78_spill]] %s9135_s19 }
  0x14   :  { %9194 = sst [smem:[#allocation79_spill]] %s9136_s20 }
  0x15   :  { %9195 = sst [smem:[#allocation80_spill]] %s9137_s21 }
  0x16   :  { %9196 = sst [smem:[#allocation81_spill]] %s9138_s22 }
  0x17   :  { %9197 = sst [smem:[#allocation82_spill]] %s9139_s23 }
  0x18   :  { %28 = vsyncpa [#allocation4], 0 }
  0x19   :  { %29 = vsyncpa [#allocation7], 0 }
  0x1a   :  { %30 = vsyncpa [#allocation10], 0 }
  0x1b   :  { %31 = vsyncpa [#allocation13], 0 }
  0x1c   :  { %33 = vsyncpa [#allocation13 + $0x1], 0 }
  0x1d   :  { %34 = vsyncpa [#allocation16], 0 }
  0x1e   :  { %36 = vsyncpa [#allocation16 + $0x1], 0 }
  0x1f   :  { %37 = vsyncpa [#allocation19], 0 }
  0x20   :  { %39 = vsyncpa [#allocation19 + $0x1], 0 }
  0x21   :  { %40 = vsyncpa [#allocation22], 0 }
  0x22   :  { %42 = vsyncpa [#allocation22 + $0x1], 0 }
  0x23   :  { %43 = vsyncpa [#allocation25], 0 }
  0x24   :  { %45 = vsyncpa [#allocation25 + $0x1], 0 }
  0x25   :  { %46 = vsyncpa [#allocation28], 0 }
  0x26   :  { %48 = vsyncpa [#allocation28 + $0x1], 0 }
  0x27   :  { %49 = vsyncpa [#allocation31], 0 }
  0x28   :  { %50 = vsyncpa [#allocation5], 0 }
  0x29   :  { %52 = vsyncpa [#allocation5 + $0x1], 0  ;;  %s8150_s4 = smov 0   ;;  %s8152_s30 = smov 0  }
  0x2a   :  { %s8154_s24 = smov 0   ;;  %s8156_s25 = smov 0  }
  0x2b   :  { %s8158_s5 = smov 0   ;;  %s8160_s1 = smov 0  }
  0x2c   :  { %s8162_s26 = smov 0   ;;  %s8164_s2 = smov 0  }
  0x2d   :  { %s8166_s6 = smov 0   ;;  %s8168_s27 = smov 0  }
  0x2e   :  { %s8170_s7 = smov 0  }
  0x2f LB: > { %9198 = sst [smem:[#allocation46_spill]] %s7950_s4  ;;  %s7992_s28 = smov [#allocation6]   ;;  %s7990_s7 = sphi %s8170_s7, %s58_s7   ;;  %s7986_s27 = sphi %s8168_s27, %s9284_s27   ;;  %s7982_s6 = sphi %s8166_s6, %s9291_s6   ;;  %s7978_s2 = sphi %s8164_s2, %s9282_s2   ;;  %s7974_s26 = sphi %s8162_s26, %s9290_s26   ;;  %s7970_s1 = sphi %s8160_s1, %s9289_s1   ;;  %s7966_s5 = sphi %s8158_s5, %s9288_s5   ;;  %s7962_s25 = sphi %s8156_s25, %s9287_s25   ;;  %s7958_s24 = sphi %s8154_s24, %s9279_s24   ;;  %s7954_s30 = sphi %s8152_s30, %s9286_s30   ;;  %s7950_s4 = sphi %s8150_s4, %s9285_s4  }
  0x30   : > { %9199 = sst [smem:[#allocation47_spill]] %s7958_s24  ;;  %s674_s29 = sshll.u32 %s7992_s28, 4  ;;  %s675_s29 = int_to_ptr.vmem [resolvable:$true] %s674_s29 }
  0x31   : > { %9200 = sst [smem:[#allocation48_spill]] %s7970_s1  ;;  %s8206_s3 = sadd.s32 4294967295, %s7990_s7  }
  0x32   : > { %9201 = sst [smem:[#allocation49_spill]] %s7974_s26  ;;  %p6193_p0 = scmp.ge.s32.totalorder %s7990_s7, 1 }
  0x33   : > { %9202 = sst [smem:[#allocation50_spill]] %s7978_s2  ;;  %p9156_p1 = scmp.eq.s32.totalorder %s8206_s3, 0 }
  0x34   : > { %9203 = sst [smem:[#allocation51_spill]] %s7986_s27  ;;  %p636_p2 = scmp.eq.s32.totalorder %s8206_s3, 3 }
  0x35   : > { %9204 = sst [smem:[#allocation52_spill]] %s7990_s7  ;;  %p649_p3 = scmp.lt.s32.totalorder %s7990_s7, 5 }
  0x36   : > { %s7993_s23 = smov [#allocation9]   ;;  %s7994_s20 = smov [#allocation29]  }
  0x37   : > { %p8212_p4 = pnand %p6193_p0, %p649_p3  ;;  %s699_s21 = sshll.u32 %s7993_s23, 4  ;;  %s8218_s21 = int_to_ptr.vmem [resolvable:$true] %s699_s21 }
  0x38   : > { %s721_s16 = sshll.u32 %s7994_s20, 4  ;;  %s7995_s26 = smov [#allocation30]   ;;  %s8226_s16 = int_to_ptr.vmem [resolvable:$true] %s721_s16 }
  0x39   : > { %s9205_s0 = scalar_select %p8212_p4, 1, 0 }
  0x3a   : > { %p6965_p5 = pneg %p8212_p4  ;;  %s8228_s2 = sshll.u32 %s7995_s26, 4  ;;  %s733_s2 = int_to_ptr.vmem [resolvable:$true] %s8228_s2 }
  0x3b   : > { %9206 = sst [smem:[#allocation53_spill]] %s9205_s0  ;;  %s7325_s23 = scalar_lea.vmem %s675_s29, 384 }
  0x3c   : > { %p8222_p6 = pnand %p6965_p5, %p9156_p1  ;;  %p7326_p8 = scmp.ne.s32.totalorder %s675_s29, %s7325_s23 }
  0x3d   : > { %p7333_p11 = scmp.lt.s32.totalorder %s675_s29, %s675_s29  ;;  %p7334_p12 = scmp.lt.s32.totalorder %s7325_s23, %s7325_s23 }
  0x3e   : > { %p8232_p7 = pneg %p8222_p6 }
  0x3f   : > { %p7335_p13 = por %p7334_p12, %p7333_p11 }
  0x40   : > { %p7328_p9 = pnand %p7326_p8, %p8232_p7 }
  0x42   : > { %p7329_p10 = pneg %p7328_p9 }
  0x44   : > { %p7336_p0 = pnand %p7335_p13, %p7329_p10 }
  0x46   : > { %7339 = shalt.err (!%p7336_p0)
}
  0x47   : > { %s9148_s20 = smov 128   ;;  %s9150_s26 = smov 8  }
  0x48   : > { %s9209_s13 = sld [smem:[#allocation62_spill]]  ;;  %s7351_s23 = scalar_lea.vmem %s8218_s21, 16 }
  0x49   : > { %p7352_p3 = scmp.ne.s32.totalorder %s8218_s21, %s7351_s23  ;;  %s7358_s11 = scalar_lea.vmem %s8218_s21, 32 }
  0x4a   : > { %p7359_p9 = scmp.lt.s32.totalorder %s8218_s21, %s8218_s21  ;;  %p7360_p10 = scmp.lt.s32.totalorder %s7358_s11, %s7351_s23 }
  0x4b   : > { %p7354_p5 = pnand %p7352_p3, %p8232_p7 }
  0x4c   : > { %p7361_p11 = por %p7360_p10, %p7359_p9 }
  0x4d   : > { %p7355_p8 = pneg %p7354_p5 }
  0x4e   : > { %6971 = dma.hbm_to_vmem [thread:$0]  (!%p8222_p6), %s9209_s13, 384, %s675_s29, [#allocation7], %s9148_s20, %s9148_s20, %s9150_s26  }
  0x4f   : > { %p7362_p12 = pnand %p7361_p11, %p7355_p8 }
  0x51   : > { %7365 = shalt.err (!%p7362_p12)
}
  0x52   : > { %s9210_s14 = sld [smem:[#allocation64_spill]]  ;;  %s7377_s13 = scalar_lea.vmem %s8226_s16, 16 }
  0x53   : > { %p7378_p13 = scmp.ne.s32.totalorder %s8226_s16, %s7377_s13  ;;  %s7384_s11 = scalar_lea.vmem %s8226_s16, 32 }
  0x54   : > { %p7385_p5 = scmp.lt.s32.totalorder %s8226_s16, %s8226_s16  ;;  %p7386_p8 = scmp.lt.s32.totalorder %s7384_s11, %s7377_s13 }
  0x55   : > { %p7380_p0 = pnand %p7378_p13, %p8232_p7 }
  0x56   : > { %p7387_p9 = por %p7386_p8, %p7385_p5 }
  0x57   : > { %p7381_p3 = pneg %p7380_p0 }
  0x58   : > { %6977 = dma.hbm_to_vmem [thread:$0]  (!%p8222_p6), %s9210_s14, 16, %s8218_s21, [#allocation10]  }
  0x59   : > { %p7388_p10 = pnand %p7387_p9, %p7381_p3 }
  0x5b   : > { %7391 = shalt.err (!%p7388_p10)
}
  0x5c   : > { %s9211_s18 = sld [smem:[#allocation77_spill]]  ;;  %s7403_s14 = scalar_lea.vmem %s733_s2, 16 }
  0x5d   : > { %p7404_p11 = scmp.ne.s32.totalorder %s733_s2, %s7403_s14  ;;  %s7410_s17 = scalar_lea.vmem %s733_s2, 32 }
  0x5e   : > { %p7411_p0 = scmp.lt.s32.totalorder %s733_s2, %s733_s2  ;;  %p7412_p5 = scmp.lt.s32.totalorder %s7410_s17, %s7403_s14 }
  0x5f   : > { %p7406_p12 = pnand %p7404_p11, %p8232_p7 }
  0x60   : > { %p7413_p3 = por %p7412_p5, %p7411_p0 }
  0x61   : > { %p7407_p13 = pneg %p7406_p12 }
  0x62   : > { %6983 = dma.hbm_to_vmem [thread:$0]  (!%p8222_p6), %s9211_s18, 16, %s8226_s16, [#allocation28]  }
  0x63   : > { %p7414_p8 = pnand %p7413_p3, %p7407_p13 }
  0x65   : > { %7417 = shalt.err (!%p7414_p8)
}
  0x66   : > { %s9212_s19 = sld [smem:[#allocation78_spill]]  ;;  %s6192_s16 = sadd.s32 4294967294, %s7990_s7  }
  0x67   : > { %s67_s29 = sadd.s32 1, %s7982_s6  ;;  %s70_s23 = sadd.s32 1, %s7986_s27 }
  0x68   : > { %p68_p9 = scmp.ge.s32.totalorder %s67_s29, 2  ;;  %s208_s13 = sadd.s32 1, %s7970_s1 }
  0x69   : > { %p215_p10 = scmp.ne.s32.totalorder %s7970_s1, %s7966_s5  ;;  %p216_p11 = scmp.eq.s32.totalorder %s7990_s7, 0 }
  0x6a   : > { %s9293_s29 = smov (%p68_p9, %s67_s29), 0  ;;  %s9295_s23 = smov (!%p68_p9, %s70_s23), %s7986_s27 }
  0x6b   : > { %9213 = sst [smem:[#allocation54_spill]] %s9293_s29  ;;  %p8292_p12 = por %p216_p11, %p215_p10 }
  0x6c   : > { %6986 = dma.hbm_to_vmem [thread:$0]  (!%p8222_p6), %s9212_s19, 16, %s733_s2, [#allocation31]  }
  0x6d   : > { %s205_s2 = ssub.s32 %s7982_s6, %s9293_s29  ;;  %p72_p13 = scmp.ge.s32.totalorder %s9295_s23, 2 }
  0x6e   : > { %p206_p0 = scmp.eq.s32.totalorder %s205_s2, 0  ;;  %p221_p5 = scmp.ne.s32.totalorder %s7966_s5, %s7962_s25 }
  0x6f   : > { %s625_s9 = sadd.s32 1, %s7958_s24  ;;  %s9297_s23 = smov (%p72_p13, %s9295_s23), 0 }
  0x70   : > { %9215 = sst [smem:[#allocation55_spill]] %s9297_s23  ;;  %p8306_p3 = por %p9156_p1, %p221_p5 }
  0x71   : > { %s8302_s15 = scalar_select %p206_p0, %s7970_s1, %s208_s13  }
  0x72   : > { %s9217_s14 = scalar_select %p8306_p3, 1, 0 }
  0x73   : > { %9216 = sst [smem:[#allocation56_spill]] %s8302_s15  ;;  %s622_s17 = ssub.s32 %s7986_s27, %s9297_s23 }
  0x74   : > { %p623_p8 = scmp.eq.s32.totalorder %s622_s17, 0  ;;  %p635_p9 = scmp.ne.s32.totalorder %s7958_s24, %s7954_s30 }
  0x75   : > { %p641_p10 = scmp.ne.s32.totalorder %s7954_s30, %s7950_s4  ;;  %p642_p11 = scmp.eq.s32.totalorder %s6192_s16, 3 }
  0x76   : > { %s8317_s21 = scalar_select %p623_p8, %s7958_s24, %s625_s9  }
  0x77   : > { %p8321_p4 = por %p636_p2, %p635_p9  ;;  %p8325_p13 = por %p642_p11, %p641_p10 }
  0x78   : > { %9218 = sst [smem:[#allocation57_spill]] %s8317_s21  ;;  %p7036_p0 = scmp.lt.s32.totalorder %s7990_s7, 4 }
  0x79   : > { %s9219_s25 = scalar_select %p8321_p4, 1, 0 }
  0x7a   : > { %s9221_s22 = scalar_select %p8325_p13, 1, 0 }
  0x7b   : > { %9220 = sst [smem:[#allocation58_spill]] %s9219_s25  ;;  %s8331_s13 = sand.u32 1, %s7990_s7  }
  0x7c   : > { %9222 = sst [smem:[#allocation59_spill]] %s9221_s22  ;;  %s8334_s2 = sand.u32 1, %s7970_s1  }
  0x7d   : > { %s8337_s16 = sshll.u32 %s7982_s6, 4  ;;  %s9223_s20 = sld [smem:[#allocation66_spill]] }
  0x7e   : > { %s770_s18 = scalar_lea.vmem [#allocation12], %s8334_s2  ;;  %p8346_p2 = pnand %p7036_p0, %p8292_p12 }
  0x7f   : > { %s777_s19 = sshll.u32 %s770_s18, 4  ;;  %s9161_s29 = sshll.u32 %s8334_s2, 6  ;;  %s778_s19 = int_to_ptr.vmem [resolvable:$true] %s777_s19 }
  0x80   : > { %s9224_s23 = scalar_select %p8346_p2, 1, 0 }
  0x81   : > { %s9160_s27 = scalar_lea.sflag [#allocation13], %s8331_s13  ;;  %p8354_p5 = pneg %p8346_p2 }
  0x82   : > { %s7431_s1 = scalar_lea.vmem %s778_s19, 16  ;;  %s7998_s18 = smov [#allocation12]  }
  0x83   : > { %s775_s26 = scalar_lea.hbm %s9223_s20, %s8337_s16  ;;  %p7432_p8 = scmp.ne.s32.totalorder %s778_s19, %s7431_s1 }
  0x84   : > { %s9225_s15 = scalar_select %p8354_p5, 1, 0 }
  0x85   : > { %p7434_p9 = pnand %p7432_p8, %p8354_p5  ;;  %s7436_s20 = sshll.u32 %s7998_s18, 4  ;;  %s7437_s20 = int_to_ptr.vmem [resolvable:$false] %s7436_s20 }
  0x86   : > { %s7438_s11 = scalar_lea.vmem %s7437_s20, 32  ;;  %p7439_p12 = scmp.lt.s32.totalorder %s778_s19, %s7437_s20 }
  0x87   : > { %p7435_p10 = pneg %p7434_p9  ;;  %p7440_p11 = scmp.lt.s32.totalorder %s7438_s11, %s7431_s1 }
  0x89   : > { %p7441_p0 = por %p7440_p11, %p7439_p12 }
  0x8b   : > { %p7442_p1 = pnand %p7441_p0, %p7435_p10 }
  0x8d   : > { %7445 = shalt.err (!%p7442_p1)
}
  0x8e   : > { %6993 = dma.hbm_to_vmem [thread:$0]  (!%p8346_p2), %s775_s26, 16, %s778_s19, %s9160_s27  }
  0x8f   : > { %s9162_s9 = sshll.u32 %s7982_s6, 10  ;;  %s805_s17 = scalar_lea.vmem [#allocation15], %s9161_s29 }
  0x90   : > { %s812_s18 = sshll.u32 %s805_s17, 4  ;;  %s9226_s8 = sld [smem:[#allocation68_spill]]  ;;  %s813_s18 = int_to_ptr.vmem [resolvable:$true] %s812_s18 }
  0x91   : > { %s9167_s21 = scalar_lea.sflag [#allocation16], %s8331_s13  ;;  %s7459_s24 = scalar_lea.vmem %s813_s18, 1024 }
  0x92   : > { %p7460_p1 = scmp.ne.s32.totalorder %s813_s18, %s7459_s24  ;;  %s7999_s22 = smov [#allocation15]  }
  0x93   : > { %s7464_s4 = sshll.u32 %s7999_s22, 4  ;;  %s7465_s4 = int_to_ptr.vmem [resolvable:$false] %s7464_s4 }
  0x94   : > { %p7462_p8 = pnand %p7460_p1, %p8354_p5  ;;  %s7466_s19 = scalar_lea.vmem %s7465_s4, 2048 }
  0x95   : > { %p7467_p10 = scmp.lt.s32.totalorder %s813_s18, %s7465_s4  ;;  %p7468_p12 = scmp.lt.s32.totalorder %s7466_s19, %s7459_s24 }
  0x96   : > { %s811_s11 = scalar_lea.hbm %s9226_s8, %s9162_s9  ;;  %p7463_p9 = pneg %p7462_p8 }
  0x97   : > { %p7469_p11 = por %p7468_p12, %p7467_p10 }
  0x99   : > { %p7470_p0 = pnand %p7469_p11, %p7463_p9 }
  0x9b   : > { %7473 = shalt.err (!%p7470_p0)
}
  0x9c   : > { %s9227_s26 = smov 8   ;;  %s9228_s17 = smov 128  }
  0x9d   : > { %6999 = dma.hbm_to_vmem [thread:$0]  (!%p8346_p2), %s811_s11, 1024, %s813_s18, %s9167_s21, %s9228_s17, %s9228_s17, %s9227_s26  }
  0x9e   : > { %s6211_s22 = sshll.u32 %s8334_s2, 5  ;;  %s6706_s20 = sshll.u32 %s7982_s6, 9 }
  0x9f   : > { %s9229_s10 = sld [smem:[#allocation70_spill]]  ;;  %s845_s19 = scalar_lea.vmem [#allocation18], %s6211_s22 }
  0xa0   : > { %s852_s27 = sshll.u32 %s845_s19, 4  ;;  %s9168_s29 = scalar_lea.sflag [#allocation19], %s8331_s13  ;;  %s853_s27 = int_to_ptr.vmem [resolvable:$true] %s852_s27 }
  0xa1   : > { %s7487_s9 = scalar_lea.vmem %s853_s27, 512  ;;  %s8000_s8 = smov [#allocation18]  }
  0xa2   : > { %p7488_p1 = scmp.ne.s32.totalorder %s853_s27, %s7487_s9  ;;  %s7492_s7 = sshll.u32 %s8000_s8, 4  ;;  %s7493_s7 = int_to_ptr.vmem [resolvable:$false] %s7492_s7 }
  0xa3   : > { %s7494_s25 = scalar_lea.vmem %s7493_s7, 1024  ;;  %p7495_p10 = scmp.lt.s32.totalorder %s853_s27, %s7493_s7 }
  0xa4   : > { %p7490_p8 = pnand %p7488_p1, %p8354_p5  ;;  %p7496_p12 = scmp.lt.s32.totalorder %s7494_s25, %s7487_s9 }
  0xa5   : > { %s851_s24 = scalar_lea.hbm %s9229_s10, %s6706_s20 }
  0xa6   : > { %p7491_p9 = pneg %p7490_p8  ;;  %p7497_p11 = por %p7496_p12, %p7495_p10 }
  0xa8   : > { %p7498_p0 = pnand %p7497_p11, %p7491_p9 }
  0xaa   : > { %7501 = shalt.err (!%p7498_p0)
}
  0xab   : > { %s8001_s18 = smov 64   ;;  %s8002_s11 = smov 4  }
  0xac   : > { %7005 = dma.hbm_to_vmem [thread:$0]  (!%p8346_p2), %s851_s24, 512, %s853_s27, %s9168_s29, %s8001_s18, %s8001_s18, %s8002_s11  }
  0xad   : > { %s887_s20 = scalar_lea.hbm %s9128_s12, %s8337_s16  ;;  %s882_s7 = scalar_lea.vmem [#allocation21], %s8334_s2 }
  0xae   : > { %s889_s25 = sshll.u32 %s882_s7, 4  ;;  %s880_s9 = scalar_lea.sflag [#allocation22], %s8331_s13  ;;  %s890_s25 = int_to_ptr.vmem [resolvable:$true] %s889_s25 }
  0xaf   : > { %s7515_s1 = scalar_lea.vmem %s890_s25, 16  ;;  %s8003_s4 = smov [#allocation21]  }
  0xb0   : > { %p7516_p1 = scmp.ne.s32.totalorder %s890_s25, %s7515_s1  ;;  %s7520_s19 = sshll.u32 %s8003_s4, 4  ;;  %s7521_s19 = int_to_ptr.vmem [resolvable:$false] %s7520_s19 }
  0xb1   : > { %s7522_s21 = scalar_lea.vmem %s7521_s19, 32  ;;  %p7523_p10 = scmp.lt.s32.totalorder %s890_s25, %s7521_s19 }
  0xb2   : > { %p7518_p8 = pnand %p7516_p1, %p8354_p5  ;;  %p7524_p12 = scmp.lt.s32.totalorder %s7522_s21, %s7515_s1 }
  0xb4   : > { %p7519_p9 = pneg %p7518_p8  ;;  %p7525_p11 = por %p7524_p12, %p7523_p10 }
  0xb6   : > { %p7526_p0 = pnand %p7525_p11, %p7519_p9 }
  0xb8   : > { %7529 = shalt.err (!%p7526_p0)
}
  0xb9   : > { %7011 = dma.hbm_to_vmem [thread:$0]  (!%p8346_p2), %s887_s20, 16, %s890_s25, %s880_s9  }
  0xba   : > { %s9230_s27 = sshll.u32 %s7982_s6, 10  ;;  %s9231_s11 = sld [smem:[#allocation73_spill]] }
  0xbb   : > { %s9232_s8 = sshll.u32 %s8334_s2, 6  ;;  %s914_s1 = scalar_lea.sflag [#allocation25], %s8331_s13 }
  0xbc   : > { %s917_s7 = scalar_lea.vmem [#allocation24], %s9232_s8  ;;  %s8004_s19 = smov [#allocation24]  }
  0xbd   : > { %s924_s21 = sshll.u32 %s917_s7, 4  ;;  %s7548_s29 = sshll.u32 %s8004_s19, 4  ;;  %s925_s21 = int_to_ptr.vmem [resolvable:$true] %s924_s21  ;;  %s7549_s29 = int_to_ptr.vmem [resolvable:$false] %s7548_s29 }
  0xbe   : > { %s7543_s4 = scalar_lea.vmem %s925_s21, 1024  ;;  %s7550_s10 = scalar_lea.vmem %s7549_s29, 2048 }
  0xbf   : > { %p7544_p1 = scmp.ne.s32.totalorder %s925_s21, %s7543_s4  ;;  %p7551_p10 = scmp.lt.s32.totalorder %s925_s21, %s7549_s29 }
  0xc0   : > { %s923_s22 = scalar_lea.hbm %s9231_s11, %s9230_s27  ;;  %p7552_p12 = scmp.lt.s32.totalorder %s7550_s10, %s7543_s4 }
  0xc1   : > { %p7546_p8 = pnand %p7544_p1, %p8354_p5 }
  0xc2   : > { %p7553_p11 = por %p7552_p12, %p7551_p10 }
  0xc3   : > { %p7547_p9 = pneg %p7546_p8 }
  0xc5   : > { %p7554_p0 = pnand %p7553_p11, %p7547_p9 }
  0xc7   : > { %7557 = shalt.err (!%p7554_p0)
}
  0xc8   : > { %7017 = dma.hbm_to_vmem [thread:$0]  (!%p8346_p2), %s923_s22, 1024, %s925_s21, %s914_s1, %s9228_s17, %s9228_s17, %s9227_s26  }
  0xc9   : > { %s8005_s20 = smov [#allocation3]  }
  0xca   : > { %s661_s25 = sshll.u32 %s8005_s20, 4  ;;  %s662_s25 = int_to_ptr.vmem [resolvable:$true] %s661_s25 }
  0xcb   : > { %s7569_s27 = scalar_lea.vmem %s662_s25, 49152  ;;  %p7577_p10 = scmp.lt.s32.totalorder %s662_s25, %s662_s25 }
  0xcc   : > { %p7570_p1 = scmp.ne.s32.totalorder %s662_s25, %s7569_s27  ;;  %p7578_p9 = scmp.lt.s32.totalorder %s7569_s27, %s7569_s27 }
  0xce   : > { %p7572_p8 = pnand %p7570_p1, %p8232_p7  ;;  %p7579_p12 = por %p7578_p9, %p7577_p10 }
  0xd0   : > { %p7573_p13 = pneg %p7572_p8 }
  0xd2   : > { %p7580_p11 = pnand %p7579_p12, %p7573_p13 }
  0xd4   : > { %7583 = shalt.err (!%p7580_p11)
}
  0xd5   : > { %s8006_s10 = smov 512   ;;  %s8007_s29 = smov 32  }
  0xd6   : > { %s9233_s17 = sld [smem:[#allocation61_spill]]  ;;  %s8008_s18 = smov [#allocation8]  }
  0xd7   : > { %s688_s11 = sshll.u32 %s8008_s18, 4  ;;  %s8009_s22 = smov [#allocation11]   ;;  %s689_s11 = int_to_ptr.vmem [resolvable:$true] %s688_s11 }
  0xd8   : > { %s710_s8 = sshll.u32 %s8009_s22, 4  ;;  %s7595_s7 = scalar_lea.vmem %s689_s11, 16  ;;  %s711_s8 = int_to_ptr.vmem [resolvable:$true] %s710_s8 }
  0xd9   : > { %p7596_p0 = scmp.ne.s32.totalorder %s689_s11, %s7595_s7  ;;  %s7602_s21 = scalar_lea.vmem %s689_s11, 32 }
  0xda   : > { %p7603_p8 = scmp.lt.s32.totalorder %s689_s11, %s689_s11  ;;  %p7604_p10 = scmp.lt.s32.totalorder %s7602_s21, %s7595_s7 }
  0xdb   : > { %p7598_p13 = pnand %p7596_p0, %p8232_p7 }
  0xdc   : > { %6968 = dma.hbm_to_vmem [thread:$0]  (!%p8222_p6), %s9233_s17, 49152, %s662_s25, [#allocation4], %s8006_s10, %s8006_s10, %s8007_s29  }
  0xdd   : > { %p7599_p1 = pneg %p7598_p13  ;;  %p7605_p9 = por %p7604_p10, %p7603_p8 }
  0xdf   : > { %p7606_p12 = pnand %p7605_p9, %p7599_p1 }
  0xe1   : > { %7609 = shalt.err (!%p7606_p12)
}
  0xe2   : > { %s9234_s20 = sld [smem:[#allocation63_spill]]  ;;  %s7621_s25 = scalar_lea.vmem %s711_s8, 16 }
  0xe3   : > { %p7622_p11 = scmp.ne.s32.totalorder %s711_s8, %s7621_s25  ;;  %s7628_s27 = scalar_lea.vmem %s711_s8, 32 }
  0xe4   : > { %p7629_p0 = scmp.lt.s32.totalorder %s711_s8, %s711_s8  ;;  %p7630_p13 = scmp.lt.s32.totalorder %s7628_s27, %s7621_s25 }
  0xe5   : > { %p7624_p4 = pnand %p7622_p11, %p8232_p7 }
  0xe6   : > { %p7631_p2 = por %p7630_p13, %p7629_p0 }
  0xe7   : > { %p7625_p3 = pneg %p7624_p4 }
  0xe8   : > { %6974 = dma.hbm_to_vmem [thread:$0]  (!%p8222_p6), %s9234_s20, 16, %s689_s11, [#allocation7]  }
  0xe9   : > { %p7632_p5 = pnand %p7631_p2, %p7625_p3 }
  0xeb   : > { %7635 = shalt.err (!%p7632_p5)
}
  0xec   : > { %s9235_s24 = sld [smem:[#allocation65_spill]]  ;;  %s8010_s26 = smov [#allocation32]  }
  0xed   : > { %s749_s17 = sshll.u32 %s8010_s26, 4  ;;  %s9236_s22 = sld [smem:[#allocation67_spill]]  ;;  %s750_s17 = int_to_ptr.vmem [resolvable:$true] %s749_s17 }
  0xee   : > { %s787_s21 = scalar_lea.vmem [#allocation14], %s8334_s2  ;;  %s7647_s19 = scalar_lea.vmem %s750_s17, 16 }
  0xef   : > { %s794_s4 = sshll.u32 %s787_s21, 4  ;;  %p7648_p4 = scmp.ne.s32.totalorder %s750_s17, %s7647_s19  ;;  %s795_s4 = int_to_ptr.vmem [resolvable:$true] %s794_s4 }
  0xf0   : > { %s7654_s20 = scalar_lea.vmem %s750_s17, 32  ;;  %p7655_p5 = scmp.lt.s32.totalorder %s750_s17, %s750_s17 }
  0xf1   : > { %p7650_p3 = pnand %p7648_p4, %p8232_p7  ;;  %p7656_p1 = scmp.lt.s32.totalorder %s7654_s20, %s7647_s19 }
  0xf2   : > { %6980 = dma.hbm_to_vmem [thread:$0]  (!%p8222_p6), %s9235_s24, 16, %s711_s8, [#allocation10]  }
  0xf3   : > { %s792_s7 = scalar_lea.hbm %s9236_s22, %s8337_s16  ;;  %p7651_p2 = pneg %p7650_p3 }
  0xf4   : > { %p7657_p8 = por %p7656_p1, %p7655_p5 }
  0xf6   : > { %p7658_p10 = pnand %p7657_p8, %p7651_p2 }
  0xf8   : > { %7661 = shalt.err (!%p7658_p10)
}
  0xf9   : > { %s9237_s27 = sld [smem:[#allocation81_spill]]  ;;  %s6208_s10 = sshll.u32 %s8334_s2, 1 }
  0xfa   : > { %s7675_s29 = scalar_lea.vmem %s795_s4, 16  ;;  %p9238_p7 = scmp.ne.s32.totalorder %s9225_s15, 0 }
  0xfb   : > { %p7676_p9 = scmp.ne.s32.totalorder %s795_s4, %s7675_s29  ;;  %s8011_s0 = smov [#allocation14]  }
  0xfc   : > { %s7680_s24 = sshll.u32 %s8011_s0, 4  ;;  %s7681_s24 = int_to_ptr.vmem [resolvable:$false] %s7680_s24 }
  0xfd   : > { %p7678_p12 = pnand %p7676_p9, %p9238_p7  ;;  %s7682_s26 = scalar_lea.vmem %s7681_s24, 32 }
  0xfe   : > { %p7683_p0 = scmp.lt.s32.totalorder %s795_s4, %s7681_s24  ;;  %p7684_p13 = scmp.lt.s32.totalorder %s7682_s26, %s7675_s29 }
  0xff   : > { %6989 = dma.hbm_to_vmem [thread:$0]  (!%p8222_p6), %s9237_s27, 16, %s750_s17, [#allocation31]  }
 0x100   : > { %p7679_p11 = pneg %p7678_p12  ;;  %p7685_p4 = por %p7684_p13, %p7683_p0 }
 0x102   : > { %p7686_p3 = pnand %p7685_p4, %p7679_p11 }
 0x104   : > { %7689 = shalt.err (!%p7686_p3)
}
 0x105   : > { %p9239_p2 = scmp.ne.s32.totalorder %s9224_s23, 0  ;;  %s9240_s28 = scalar_lea.sflag [#allocation13], %s8331_s13 }
 0x106   : > { %s6705_s11 = sshll.u32 %s7982_s6, 5  ;;  %s9241_s20 = sld [smem:[#allocation69_spill]] }
 0x107   : > { %6996 = dma.hbm_to_vmem [thread:$0]  (!%p9239_p2), %s792_s7, 16, %s795_s4, %s9240_s28  }
 0x108   : > { %s826_s25 = scalar_lea.vmem [#allocation17], %s6208_s10  ;;  %s8012_s0 = smov [#allocation17]  }
 0x109   : > { %s834_s27 = sshll.u32 %s826_s25, 4  ;;  %s7708_s24 = sshll.u32 %s8012_s0, 4  ;;  %s835_s27 = int_to_ptr.vmem [resolvable:$true] %s834_s27  ;;  %s7709_s24 = int_to_ptr.vmem [resolvable:$false] %s7708_s24 }
 0x10a   : > { %s7703_s29 = scalar_lea.vmem %s835_s27, 32  ;;  %s7710_s26 = scalar_lea.vmem %s7709_s24, 64 }
 0x10b   : > { %p7704_p6 = scmp.ne.s32.totalorder %s835_s27, %s7703_s29  ;;  %p7711_p8 = scmp.lt.s32.totalorder %s835_s27, %s7709_s24 }
 0x10c   : > { %s832_s8 = scalar_lea.hbm %s9241_s20, %s6705_s11  ;;  %p7712_p10 = scmp.lt.s32.totalorder %s7710_s26, %s7703_s29 }
 0x10d   : > { %p7706_p5 = pnand %p7704_p6, %p9238_p7 }
 0x10e   : > { %p7713_p9 = por %p7712_p10, %p7711_p8 }
 0x10f   : > { %p7707_p1 = pneg %p7706_p5 }
 0x111   : > { %p7714_p12 = pnand %p7713_p9, %p7707_p1 }
 0x113   : > { %7717 = shalt.err (!%p7714_p12)
}
 0x114   : > { %s9242_s7 = scalar_lea.sflag [#allocation16], %s8331_s13  ;;  %s9243_s17 = sld [smem:[#allocation71_spill]] }
 0x115   : > { %7002 = dma.hbm_to_vmem [thread:$0]  (!%p9239_p2), %s832_s8, 32, %s835_s27, %s9242_s7  }
 0x116   : > { %s865_s21 = scalar_lea.vmem [#allocation20], %s8334_s2  ;;  %s8013_s25 = smov [#allocation20]  }
 0x117   : > { %s872_s19 = sshll.u32 %s865_s21, 4  ;;  %s7736_s29 = sshll.u32 %s8013_s25, 4  ;;  %s873_s19 = int_to_ptr.vmem [resolvable:$true] %s872_s19  ;;  %s7737_s29 = int_to_ptr.vmem [resolvable:$false] %s7736_s29 }
 0x118   : > { %s7731_s20 = scalar_lea.vmem %s873_s19, 16  ;;  %s7738_s0 = scalar_lea.vmem %s7737_s29, 32 }
 0x119   : > { %p7732_p11 = scmp.ne.s32.totalorder %s873_s19, %s7731_s20  ;;  %p7739_p4 = scmp.lt.s32.totalorder %s873_s19, %s7737_s29 }
 0x11a   : > { %s870_s18 = scalar_lea.hbm %s9243_s17, %s8337_s16  ;;  %p7740_p3 = scmp.lt.s32.totalorder %s7738_s0, %s7731_s20 }
 0x11b   : > { %p7734_p0 = pnand %p7732_p11, %p9238_p7 }
 0x11c   : > { %p7741_p6 = por %p7740_p3, %p7739_p4 }
 0x11d   : > { %p7735_p13 = pneg %p7734_p0 }
 0x11f   : > { %p7742_p5 = pnand %p7741_p6, %p7735_p13 }
 0x121   : > { %7745 = shalt.err (!%p7742_p5)
}
 0x122   : > { %s9244_s8 = scalar_lea.sflag [#allocation19], %s8331_s13  ;;  %s9245_s26 = sld [smem:[#allocation72_spill]] }
 0x123   : > { %7008 = dma.hbm_to_vmem [thread:$0]  (!%p9239_p2), %s870_s18, 16, %s873_s19, %s9244_s8  }
 0x124   : > { %s899_s4 = scalar_lea.vmem [#allocation23], %s8334_s2  ;;  %s8014_s21 = smov [#allocation23]  }
 0x125   : > { %s906_s28 = sshll.u32 %s899_s4, 4  ;;  %s7764_s20 = sshll.u32 %s8014_s21, 4  ;;  %s907_s28 = int_to_ptr.vmem [resolvable:$true] %s906_s28  ;;  %s7765_s20 = int_to_ptr.vmem [resolvable:$false] %s7764_s20 }
 0x126   : > { %s7759_s17 = scalar_lea.vmem %s907_s28, 16  ;;  %s7766_s25 = scalar_lea.vmem %s7765_s20, 32 }
 0x127   : > { %p7760_p1 = scmp.ne.s32.totalorder %s907_s28, %s7759_s17  ;;  %p7767_p9 = scmp.lt.s32.totalorder %s907_s28, %s7765_s20 }
 0x128   : > { %s904_s7 = scalar_lea.hbm %s9245_s26, %s8337_s16  ;;  %p7768_p12 = scmp.lt.s32.totalorder %s7766_s25, %s7759_s17 }
 0x129   : > { %p7762_p8 = pnand %p7760_p1, %p9238_p7 }
 0x12a   : > { %p7769_p11 = por %p7768_p12, %p7767_p9 }
 0x12b   : > { %p7763_p10 = pneg %p7762_p8 }
 0x12d   : > { %p7770_p0 = pnand %p7769_p11, %p7763_p10 }
 0x12f   : > { %7773 = shalt.err (!%p7770_p0)
}
 0x130   : > { %7014 = dma.hbm_to_vmem [thread:$0]  (!%p9239_p2), %s904_s7, 16, %s907_s28, %s880_s9  }
 0x131   : > { %s9246_s29 = sld [smem:[#allocation74_spill]]  ;;  %s938_s8 = scalar_lea.vmem [#allocation26], %s6208_s10 }
 0x132   : > { %s946_s27 = sshll.u32 %s938_s8, 4  ;;  %s8015_s26 = smov [#allocation26]   ;;  %s947_s27 = int_to_ptr.vmem [resolvable:$true] %s946_s27 }
 0x133   : > { %s7787_s24 = scalar_lea.vmem %s947_s27, 32  ;;  %s7792_s4 = sshll.u32 %s8015_s26, 4  ;;  %s7793_s4 = int_to_ptr.vmem [resolvable:$false] %s7792_s4 }
 0x134   : > { %p7788_p13 = scmp.ne.s32.totalorder %s947_s27, %s7787_s24  ;;  %s7794_s17 = scalar_lea.vmem %s7793_s4, 64 }
 0x135   : > { %p7795_p6 = scmp.lt.s32.totalorder %s947_s27, %s7793_s4  ;;  %p7796_p5 = scmp.lt.s32.totalorder %s7794_s17, %s7787_s24 }
 0x136   : > { %p7790_p4 = pnand %p7788_p13, %p9238_p7 }
 0x137   : > { %s944_s0 = scalar_lea.hbm %s9246_s29, %s6705_s11  ;;  %p7797_p1 = por %p7796_p5, %p7795_p6 }
 0x138   : > { %p7791_p3 = pneg %p7790_p4 }
 0x13a   : > { %p7798_p8 = pnand %p7797_p1, %p7791_p3 }
 0x13c   : > { %7801 = shalt.err (!%p7798_p8)
}
 0x13d   : > { %7020 = dma.hbm_to_vmem [thread:$0]  (!%p9239_p2), %s944_s0, 32, %s947_s27, %s914_s1  }
 0x13e   : > { %s9247_s11 = sld [smem:[#allocation76_spill]]  ;;  %s964_s28 = scalar_lea.vmem [#allocation27], %s8334_s2 }
 0x13f   : > { %s971_s21 = sshll.u32 %s964_s28, 4  ;;  %s962_s20 = scalar_lea.sflag [#allocation28], %s8331_s13  ;;  %s972_s21 = int_to_ptr.vmem [resolvable:$true] %s971_s21 }
 0x140   : > { %s7815_s25 = scalar_lea.vmem %s972_s21, 16  ;;  %s8016_s18 = smov [#allocation27]  }
 0x141   : > { %p7816_p10 = scmp.ne.s32.totalorder %s972_s21, %s7815_s25  ;;  %s7820_s19 = sshll.u32 %s8016_s18, 4  ;;  %s7821_s19 = int_to_ptr.vmem [resolvable:$false] %s7820_s19 }
 0x142   : > { %s7822_s29 = scalar_lea.vmem %s7821_s19, 32  ;;  %p7823_p11 = scmp.lt.s32.totalorder %s972_s21, %s7821_s19 }
 0x143   : > { %p7818_p9 = pnand %p7816_p10, %p9238_p7  ;;  %p7824_p0 = scmp.lt.s32.totalorder %s7822_s29, %s7815_s25 }
 0x144   : > { %s969_s7 = scalar_lea.hbm %s9247_s11, %s8337_s16 }
 0x145   : > { %p7819_p12 = pneg %p7818_p9  ;;  %p7825_p13 = por %p7824_p0, %p7823_p11 }
 0x147   : > { %p7826_p4 = pnand %p7825_p13, %p7819_p12 }
 0x149   : > { %7829 = shalt.err (!%p7826_p4)
}
 0x14a   : > { %7023 = dma.hbm_to_vmem [thread:$0]  (!%p9239_p2), %s969_s7, 16, %s972_s21, %s962_s20  }
 0x14b   : > { %s9248_s2 = sld [smem:[#allocation53_spill]] }
 0x151   : > { %p9249_p3 = scmp.ne.s32.totalorder %s9248_s2, 0 }
 0x152   : > { %p9250_p6 = scmp.eq.s32.totalorder (!%p9249_p3), %s8206_s3, 0 }
 0x153   : > { %980 = sbr.rel (%p9249_p3) target bundleno = 5200 (0x1450), region = 112 }
 0x158   : > { %7901 = dma.done.wait (%p9250_p6), [#allocation4], 49152   ;;  %p9251_p7 = pmov %p9250_p6 }
 0x159   : > { %p9252_p5 = pmov %p9250_p6 }
 0x15a   : > { %7903 = vsyncadd (%p9251_p7), [#allocation4], 4294918144 }
 0x15b   : > { %7905 = dma.done.wait (%p9252_p5), [#allocation7], 400   ;;  %p9253_p1 = pmov %p9252_p5 }
 0x15d   : > { %7907 = vsyncadd (%p9253_p1), [#allocation7], 4294966896  ;;  %p9254_p8 = pmov %p9253_p1 }
 0x15e   : > { %p9255_p2 = pmov %p9253_p1 }
 0x15f   : > { %7909 = dma.done.wait (%p9254_p8), [#allocation10], 32  }
 0x160   : > { %7911 = vsyncadd (%p9255_p2), [#allocation10], 4294967264  ;;  %s8542_s23 = sand.u32 1, %s8206_s3   ;;  %s8545_s15 = sand.u32 1, %s7966_s5  }
 0x161   : > { %s1003_s13 = scalar_lea.sflag [#allocation13], %s8542_s23  ;;  %s1005_s16 = scalar_lea.vmem [#allocation12], %s8545_s15 }
 0x162   : > { %p9256_p10 = scmp.ne.s32.totalorder %s9217_s14, 0 }
 0x164   : > { %7913 = dma.done.wait (%p9256_p10), %s1003_s13, 32  }
 0x165   : > { %7915 = vsyncadd (%p9256_p10), %s1003_s13, 4294967264  ;;  %s6230_s1 = sshll.u32 %s8545_s15, 6  ;;  %s1013_s0 = scalar_lea.vmem [#allocation14], %s8545_s15 }
 0x166   : > { %s1019_s8 = scalar_lea.sflag [#allocation16], %s8542_s23  ;;  %s8556_s27 = scalar_lea.vmem [#allocation15], %s6230_s1 }
 0x167   : > { %7917 = dma.done.wait (%p9256_p10), %s1019_s8, 1056  }
 0x168   : > { %7919 = vsyncadd (%p9256_p10), %s1019_s8, 4294966240  ;;  %s6231_s24 = sshll.u32 %s8545_s15, 1  ;;  %s6232_s26 = sshll.u32 %s8545_s15, 5 }
 0x169   : > { %s8564_s4 = scalar_lea.vmem [#allocation17], %s6231_s24  ;;  %s1037_s17 = scalar_lea.sflag [#allocation19], %s8542_s23 }
 0x16a   : > { %s8567_s9 = scalar_lea.vmem [#allocation18], %s6232_s26 }
 0x16b   : > { %7921 = dma.done.wait (%p9256_p10), %s1037_s17, 528  }
 0x16c   : > { %7923 = vsyncadd (%p9256_p10), %s1037_s17, 4294966768  ;;  %s1048_s10 = scalar_lea.vmem [#allocation20], %s8545_s15  ;;  %s1054_s11 = scalar_lea.sflag [#allocation22], %s8542_s23 }
 0x16d   : > { %s1056_s7 = scalar_lea.vmem [#allocation21], %s8545_s15 }
 0x16e   : > { %7925 = dma.done.wait (%p9256_p10), %s1054_s11, 32  }
 0x16f   : > { %7927 = vsyncadd (%p9256_p10), %s1054_s11, 4294967264  ;;  %s1064_s28 = scalar_lea.vmem [#allocation23], %s8545_s15  ;;  %s1070_s21 = scalar_lea.sflag [#allocation25], %s8542_s23 }
 0x170   : > { %s8582_s20 = scalar_lea.vmem [#allocation24], %s6230_s1 }
 0x171   : > { %7929 = dma.done.wait (%p9256_p10), %s1070_s21, 1056  }
 0x172   : > { %7931 = vsyncadd (%p9256_p10), %s1070_s21, 4294966240  ;;  %s8588_s25 = scalar_lea.vmem [#allocation26], %s6231_s24  ;;  %s1088_s18 = scalar_lea.sflag [#allocation28], %s8542_s23 }
 0x173   : > { %7933 = dma.done.wait (%p9256_p10), %s1088_s18, 16  }
 0x174   : > { %7935 = vsyncadd (%p9256_p10), %s1088_s18, 4294967280  ;;  %p9257_p9 = pmov %p9253_p1 }
 0x175   : > { %p9258_p12 = pmov %p9253_p1 }
 0x176   : > { %7937 = dma.done.wait (%p9257_p9), [#allocation28], 16  }
 0x177   : > { %7939 = vsyncadd (%p9258_p12), [#allocation28], 4294967280  ;;  %p9259_p11 = pmov %p9253_p1 }
 0x178   : > { %p9260_p0 = pmov %p9253_p1 }
 0x179   : > { %7941 = dma.done.wait (%p9259_p11), [#allocation31], 32  }
 0x17a   : > { %7943 = vsyncadd (%p9260_p0), [#allocation31], 4294967264  ;;  %s9261_s29 = sld [smem:[#allocation50_spill]]  ;;  %s1215_s14 = sand.u32 1, %s7954_s30  }
 0x17b   : > { %s9262_s2 = sld [smem:[#allocation49_spill]]  ;;  %s8621_s19 = scalar_lea.vmem [#allocation33], %s1215_s14 }
 0x17c   : > { %s9263_s26 = sld [smem:[#allocation60_spill]] }
 0x17d   : > { %s9264_s21 = sld [smem:[#allocation75_spill]] }
 0x180   : > { %p1217_p13 = scmp.lt.s32.totalorder %s9261_s29, 1 }
 0x181   : > { %p1221_p4 = scmp.lt.s32.totalorder %s9262_s2, 1  ;;  %p6240_p3 = scmp.ne.s32.totalorder %s9262_s2, 0 }
 0x182   : > { %s9299_s29 = smov (!%p1217_p13, %s9261_s29), 1 }
 0x183   : > { %s1222_s23 = scalar_select %p1221_p4, %s9262_s2, 1 }
 0x184   : > { %s6908_s13 = smul.u32 6, %s9299_s29  ;;  %s8018_s29 = smov (!%p6240_p3), 64  }
 0x185   : > { %s6709_s1 = sshll.u32 %s1222_s23, 7  ;;  %1230 = sbr.rel (%p6240_p3) target bundleno = 1416 (0x588), region = 192 }
 0x186   : > { %s8612_s17 = scalar_lea.vmem %s9263_s26, %s6908_s13  ;;  %s8617_s18 = scalar_lea.vmem %s9264_s21, %s6709_s1 }
 0x18a   : > { %v1325_v0 = vld [vmem:[#allocation3 + $0x1c0] sm:$0xff]  ;;  %v1233_v32 = vlaneseq  ;;  %v8629_v57 = vld [vmem:[%s8612_s17] sm:$0x3f]  ;;  %vm4065_vm0 = vcmask 523264   ;;  %vm4069_vm1 = vcmask 516096  }
 0x18b   : > { %v1329_v1 = vld [vmem:[#allocation3 + $0x1e0] sm:$0xff] }
 0x18c   : > { %v1453_v2 = vld [vmem:[#allocation3 + $0x5c0] sm:$0xff]  ;;  %v6298_v3 = vcombine.high %v1325_v0, %v1329_v1  ;;  %v6297_v5 = vcombine.low %v1325_v0, %v1329_v1  ;;  %v8624_v41 = vshrl.u32 %v1233_v32, 7 }
 0x18d   : > { %v1457_v4 = vld [vmem:[#allocation3 + $0x5e0] sm:$0xff] }
 0x18e   : > { %v1317_v6 = vld [vmem:[#allocation3 + $0x180] sm:$0xff]  ;;  %v6426_v8 = vcombine.high %v1453_v2, %v1457_v4  ;;  %v6425_v9 = vcombine.low %v1453_v2, %v1457_v4  ;;  %3573 = vmatprep.subr.bf16.mxu0 %v6298_v3  ;;  %v1239_v50 = vsub.s32 1, %v8624_v41  ;;  %v1247_v51 = vsub.s32 3, %v8624_v41 }
 0x18f   : > { %v1321_v7 = vld [vmem:[#allocation3 + $0x1a0] sm:$0xff]  ;;  %3574 = vmatpush1.bf16.msra.mxu0 %v6297_v5 }
 0x190   : > { %v6290_v10 = vcombine.high %v1317_v6, %v1321_v7  ;;  %v1445_v11 = vld [vmem:[#allocation3 + $0x580] sm:$0xff]  ;;  %3614 = vmatprep.subr.bf16.mxu1 %v6426_v8  ;;  %v6289_v18 = vcombine.low %v1317_v6, %v1321_v7  ;;  %v1240_v61 = vrot.slane %v8629_v57, %v1239_v50  ;;  %v1248_v62 = vrot.slane %v8629_v57, %v1247_v51 }
 0x191   : > { %v1449_v12 = vld [vmem:[#allocation3 + $0x5a0] sm:$0xff]  ;;  %3615 = vmatpush1.bf16.msra.mxu1 %v6425_v9 }
 0x192   : > { %v1309_v13 = vld [vmem:[#allocation3 + $0x140] sm:$0xff]  ;;  %v6418_v14 = vcombine.high %v1445_v11, %v1449_v12  ;;  %3575 = vmatprep.subr.bf16.mxu0 %v6290_v10  ;;  %v6417_v19 = vcombine.low %v1445_v11, %v1449_v12  ;;  %v8633_v2 = vpack.c.bf16 %v1240_v61, %v1240_v61  ;;  %v8635_v3 = vpack.c.bf16 %v1248_v62, %v1248_v62 }
 0x193   : > { %v1313_v15 = vld [vmem:[#allocation3 + $0x160] sm:$0xff]  ;;  %3576 = vmatpush1.bf16.msra.mxu0 %v6289_v18 }
 0x194   : > { %v1437_v16 = vld [vmem:[#allocation3 + $0x540] sm:$0xff]  ;;  %v6282_v20 = vcombine.high %v1309_v13, %v1313_v15  ;;  %3616 = vmatprep.subr.bf16.mxu1 %v6418_v14  ;;  %v6281_v26 = vcombine.low %v1309_v13, %v1313_v15  ;;  %3605 = vmatprep.mubr.bf16.mxu0 %v8633_v2 }
 0x195   : > { %v1441_v17 = vld [vmem:[#allocation3 + $0x560] sm:$0xff]  ;;  %3617 = vmatpush1.bf16.msra.mxu1 %v6417_v19  ;;  %3646 = vmatprep.mubr.bf16.mxu1 %v8635_v3 }
 0x196   : > { %v6410_v21 = vcombine.high %v1437_v16, %v1441_v17  ;;  %v1301_v22 = vld [vmem:[#allocation3 + $0x100] sm:$0xff]  ;;  %3577 = vmatprep.subr.bf16.mxu0 %v6282_v20  ;;  %v6409_v27 = vcombine.low %v1437_v16, %v1441_v17  ;;  %v1251_v20 = vsub.s32 4, %v8624_v41 }
 0x197   : > { %v1305_v23 = vld [vmem:[#allocation3 + $0x120] sm:$0xff]  ;;  %3578 = vmatpush1.bf16.msra.mxu0 %v6281_v26 }
 0x198   : > { %v1429_v24 = vld [vmem:[#allocation3 + $0x500] sm:$0xff]  ;;  %v6274_v28 = vcombine.high %v1301_v22, %v1305_v23  ;;  %3618 = vmatprep.subr.bf16.mxu1 %v6410_v21  ;;  %v6273_v35 = vcombine.low %v1301_v22, %v1305_v23 }
 0x199   : > { %v1433_v25 = vld [vmem:[#allocation3 + $0x520] sm:$0xff]  ;;  %3619 = vmatpush1.bf16.msra.mxu1 %v6409_v27 }
 0x19a   : > { %v6402_v29 = vcombine.high %v1429_v24, %v1433_v25  ;;  %v1293_v30 = vld [vmem:[#allocation3 + $0xc0] sm:$0xff]  ;;  %3579 = vmatprep.subr.bf16.mxu0 %v6274_v28  ;;  %v6401_v36 = vcombine.low %v1429_v24, %v1433_v25 }
 0x19b   : > { %v1297_v31 = vld [vmem:[#allocation3 + $0xe0] sm:$0xff]  ;;  %3580 = vmatpush1.bf16.msra.mxu0 %v6273_v35 }
 0x19c   : > { %v1421_v33 = vld [vmem:[#allocation3 + $0x4c0] sm:$0xff]  ;;  %v6266_v37 = vcombine.high %v1293_v30, %v1297_v31  ;;  %3620 = vmatprep.subr.bf16.mxu1 %v6402_v29  ;;  %v6265_v44 = vcombine.low %v1293_v30, %v1297_v31  ;;  %v8641_v29 = vrot.slane %v8629_v57, %v1251_v20  ;;  %v1330_v20 = vld [vmem:[#allocation3 + $0x1e8] sm:$0xff] }
 0x19d   : > { %v1425_v34 = vld [vmem:[#allocation3 + $0x4e0] sm:$0xff]  ;;  %3621 = vmatpush1.bf16.msra.mxu1 %v6401_v36 }
 0x19e   : > { %v6394_v38 = vcombine.high %v1421_v33, %v1425_v34  ;;  %v1285_v39 = vld [vmem:[#allocation3 + $0x80] sm:$0xff]  ;;  %3581 = vmatprep.subr.bf16.mxu0 %v6266_v37  ;;  %v6393_v45 = vcombine.low %v1421_v33, %v1425_v34 }
 0x19f   : > { %v1289_v40 = vld [vmem:[#allocation3 + $0xa0] sm:$0xff]  ;;  %3582 = vmatpush1.bf16.msra.mxu0 %v6265_v44 }
 0x1a0   : > { %v1413_v42 = vld [vmem:[#allocation3 + $0x480] sm:$0xff]  ;;  %v6258_v46 = vcombine.high %v1285_v39, %v1289_v40  ;;  %3622 = vmatprep.subr.bf16.mxu1 %v6394_v38  ;;  %v6257_v54 = vcombine.low %v1285_v39, %v1289_v40 }
 0x1a1   : > { %v1417_v43 = vld [vmem:[#allocation3 + $0x4a0] sm:$0xff]  ;;  %3623 = vmatpush1.bf16.msra.mxu1 %v6393_v45 }
 0x1a2   : > { %v6386_v47 = vcombine.high %v1413_v42, %v1417_v43  ;;  %v1277_v48 = vld [vmem:[#allocation3 + $0x40] sm:$0xff]  ;;  %3583 = vmatprep.subr.bf16.mxu0 %v6258_v46  ;;  %v6385_v55 = vcombine.low %v1413_v42, %v1417_v43 }
 0x1a3   : > { %v1281_v49 = vld [vmem:[#allocation3 + $0x60] sm:$0xff]  ;;  %3584 = vmatpush1.bf16.msra.mxu0 %v6257_v54 }
 0x1a4   : > { %v1405_v52 = vld [vmem:[#allocation3 + $0x440] sm:$0xff]  ;;  %v6250_v56 = vcombine.high %v1277_v48, %v1281_v49  ;;  %3624 = vmatprep.subr.bf16.mxu1 %v6386_v47  ;;  %v6249_v1 = vcombine.low %v1277_v48, %v1281_v49 }
 0x1a5   : > { %v1409_v53 = vld [vmem:[#allocation3 + $0x460] sm:$0xff]  ;;  %3625 = vmatpush1.bf16.msra.mxu1 %v6385_v55 }
 0x1a6   : > { %v6378_v58 = vcombine.high %v1405_v52, %v1409_v53  ;;  %v1269_v59 = vld [vmem:[#allocation3] sm:$0xff]  ;;  %3585 = vmatprep.subr.bf16.mxu0 %v6250_v56  ;;  %v6377_v4 = vcombine.low %v1405_v52, %v1409_v53 }
 0x1a7   : > { %v1273_v60 = vld [vmem:[#allocation3 + $0x20] sm:$0xff]  ;;  %3586 = vmatpush1.bf16.msra.mxu0 %v6249_v1 }
 0x1a8   : > { %v1397_v63 = vld [vmem:[#allocation3 + $0x400] sm:$0xff]  ;;  %v6242_v5 = vcombine.high %v1269_v59, %v1273_v60  ;;  %3626 = vmatprep.subr.bf16.mxu1 %v6378_v58  ;;  %v6241_v11 = vcombine.low %v1269_v59, %v1273_v60 }
 0x1a9   : > { %v1401_v0 = vld [vmem:[#allocation3 + $0x420] sm:$0xff]  ;;  %3627 = vmatpush1.bf16.msra.mxu1 %v6377_v4 }
 0x1aa   : > { %v6370_v6 = vcombine.high %v1397_v63, %v1401_v0  ;;  %v1389_v7 = vld [vmem:[#allocation3 + $0x3c0] sm:$0xff]  ;;  %3587 = vmatprep.subr.bf16.mxu0 %v6242_v5  ;;  %v6369_v12 = vcombine.low %v1397_v63, %v1401_v0 }
 0x1ab   : > { %v1393_v8 = vld [vmem:[#allocation3 + $0x3e0] sm:$0xff]  ;;  %3588 = vmatpush1.bf16.msra.mxu0 %v6241_v11  ;;  %v1243_v11 = vsub.s32 2, %v8624_v41 }
 0x1ac   : > { %v1517_v9 = vld [vmem:[#allocation3 + $0x7c0] sm:$0xff]  ;;  %v6362_v13 = vcombine.high %v1389_v7, %v1393_v8  ;;  %3628 = vmatprep.subr.bf16.mxu1 %v6370_v6  ;;  %v6361_v19 = vcombine.low %v1389_v7, %v1393_v8 }
 0x1ad   : > { %v1521_v10 = vld [vmem:[#allocation3 + $0x7e0] sm:$0xff]  ;;  %3629 = vmatpush1.bf16.msra.mxu1 %v6369_v12 }
 0x1ae   : > { %v6490_v14 = vcombine.high %v1517_v9, %v1521_v10  ;;  %v1381_v15 = vld [vmem:[#allocation3 + $0x380] sm:$0xff]  ;;  %3589 = vmatprep.subr.bf16.mxu0 %v6362_v13  ;;  %v6489_v21 = vcombine.low %v1517_v9, %v1521_v10  ;;  %v1235_v9 = vsub.s32 0, %v8624_v41 }
 0x1af   : > { %v1385_v16 = vld [vmem:[#allocation3 + $0x3a0] sm:$0xff]  ;;  %3590 = vmatpush2.bf16.msra.mxu0 %v6361_v19  ;;  %v1326_v19 = vld [vmem:[#allocation3 + $0x1c8] sm:$0xff] }
 0x1b0   : > { %v1509_v17 = vld [vmem:[#allocation3 + $0x780] sm:$0xff]  ;;  %v6354_v22 = vcombine.high %v1381_v15, %v1385_v16  ;;  %3630 = vmatprep.subr.bf16.mxu1 %v6490_v14  ;;  %v6353_v28 = vcombine.low %v1381_v15, %v1385_v16 }
 0x1b1   : > { %v1513_v18 = vld [vmem:[#allocation3 + $0x7a0] sm:$0xff]  ;;  %3631 = vmatpush2.bf16.msra.mxu1 %v6489_v21 }
 0x1b2   : > { %v6482_v23 = vcombine.high %v1509_v17, %v1513_v18  ;;  %v1373_v24 = vld [vmem:[#allocation3 + $0x340] sm:$0xff]  ;;  %3591 = vmatprep.subr.bf16.mxu0 %v6354_v22  ;;  %v6481_v30 = vcombine.low %v1509_v17, %v1513_v18  ;;  %v1255_v17 = vsub.s32 5, %v8624_v41  ;;  %v1236_v18 = vrot.slane %v8629_v57, %v1235_v9  ;;  %v1318_v41 = vld [vmem:[#allocation3 + $0x188] sm:$0xff] }
 0x1b3   : > { %v1377_v25 = vld [vmem:[#allocation3 + $0x360] sm:$0xff]  ;;  %3592 = vmatpush2.bf16.msra.mxu0 %v6353_v28  ;;  %v1244_v22 = vrot.slane %v8629_v57, %v1243_v11  ;;  %v1278_v11 = vld [vmem:[#allocation3 + $0x48] sm:$0xff] }
 0x1b4   : > { %v1501_v26 = vld [vmem:[#allocation3 + $0x740] sm:$0xff]  ;;  %v6346_v31 = vcombine.high %v1373_v24, %v1377_v25  ;;  %3632 = vmatprep.subr.bf16.mxu1 %v6482_v23  ;;  %v6345_v37 = vcombine.low %v1373_v24, %v1377_v25  ;;  %v6300_v25 = vcombine.high %v1326_v19, %v1330_v20  ;;  %v1256_v28 = vrot.slane %v8629_v57, %v1255_v17  ;;  %v1310_v57 = vld [vmem:[#allocation3 + $0x148] sm:$0xff] }
 0x1b5   : > { %v1505_v27 = vld [vmem:[#allocation3 + $0x760] sm:$0xff]  ;;  %3633 = vmatpush2.bf16.msra.mxu1 %v6481_v30  ;;  %v8649_v30 = vpack.c.bf16 %v1236_v18, %v1236_v18 }
 0x1b6   : > { %v6474_v32 = vcombine.high %v1501_v26, %v1505_v27  ;;  %v1365_v33 = vld [vmem:[#allocation3 + $0x300] sm:$0xff]  ;;  %3593 = vmatprep.subr.bf16.mxu0 %v6346_v31  ;;  %v6473_v38 = vcombine.low %v1501_v26, %v1505_v27  ;;  %v1322_v31 = vld [vmem:[#allocation3 + $0x1a8] sm:$0xff] }
 0x1b7   : > { %v1369_v34 = vld [vmem:[#allocation3 + $0x320] sm:$0xff]  ;;  %3594 = vmatpush2.bf16.msra.mxu0 %v6345_v37 }
 0x1b8   : > { %v1493_v35 = vld [vmem:[#allocation3 + $0x700] sm:$0xff]  ;;  %v6338_v39 = vcombine.high %v1365_v33, %v1369_v34  ;;  %3634 = vmatprep.subr.bf16.mxu1 %v6474_v32  ;;  %v6337_v46 = vcombine.low %v1365_v33, %v1369_v34  ;;  %v8651_v32 = vpack.c.bf16 %v1244_v22, %v1244_v22  ;;  %v6299_v34 = vcombine.low %v1326_v19, %v1330_v20  ;;  %v1270_v19 = vld [vmem:[#allocation3 + $0x8] sm:$0xff] }
 0x1b9   : > { %v1497_v36 = vld [vmem:[#allocation3 + $0x720] sm:$0xff]  ;;  %3635 = vmatpush2.bf16.msra.mxu1 %v6473_v38  ;;  %v1274_v20 = vld [vmem:[#allocation3 + $0x28] sm:$0xff] }
 0x1ba   : > { %v6466_v40 = vcombine.high %v1493_v35, %v1497_v36  ;;  %v1357_v42 = vld [vmem:[#allocation3 + $0x2c0] sm:$0xff]  ;;  %3595 = vmatprep.subr.bf16.mxu0 %v6338_v39  ;;  %v6465_v47 = vcombine.low %v1493_v35, %v1497_v36  ;;  %v6292_v36 = vcombine.high %v1318_v41, %v1322_v31  ;;  %v8653_v39 = vpack.c.bf16 %v1256_v28, %v1256_v28  ;;  %v1394_v28 = vld [vmem:[#allocation3 + $0x3e8] sm:$0xff] }
 0x1bb   : > { %v1361_v43 = vld [vmem:[#allocation3 + $0x2e0] sm:$0xff]  ;;  %3596 = vmatpush2.bf16.msra.mxu0 %v6337_v46 }
 0x1bc   : > { %v1485_v44 = vld [vmem:[#allocation3 + $0x6c0] sm:$0xff]  ;;  %v6330_v48 = vcombine.high %v1357_v42, %v1361_v43  ;;  %3636 = vmatprep.subr.bf16.mxu1 %v6466_v40  ;;  %v6329_v54 = vcombine.low %v1357_v42, %v1361_v43  ;;  %v1314_v40 = vld [vmem:[#allocation3 + $0x168] sm:$0xff]  ;;  %v6291_v43 = vcombine.low %v1318_v41, %v1322_v31  ;;  %v6243_v31 = vcombine.low %v1270_v19, %v1274_v20 }
 0x1bd   : > { %v1489_v45 = vld [vmem:[#allocation3 + $0x6e0] sm:$0xff]  ;;  %3637 = vmatpush2.bf16.msra.mxu1 %v6465_v47 }
 0x1be   : > { %v6458_v49 = vcombine.high %v1485_v44, %v1489_v45  ;;  %v1349_v50 = vld [vmem:[#allocation3 + $0x280] sm:$0xff]  ;;  %3597 = vmatprep.subr.bf16.mxu0 %v6330_v48  ;;  %v6457_v55 = vcombine.low %v1485_v44, %v1489_v45  ;;  %v6284_v45 = vcombine.high %v1310_v57, %v1314_v40  ;;  %v1302_v48 = vld [vmem:[#allocation3 + $0x108] sm:$0xff] }
 0x1bf   : > { %v1353_v51 = vld [vmem:[#allocation3 + $0x2a0] sm:$0xff]  ;;  %3598 = vmatpush2.bf16.msra.mxu0 %v6329_v54 }
 0x1c0   : > { %v1477_v52 = vld [vmem:[#allocation3 + $0x680] sm:$0xff]  ;;  %v6322_v56 = vcombine.high %v1349_v50, %v1353_v51  ;;  %3638 = vmatprep.subr.bf16.mxu1 %v6458_v49  ;;  %v6321_v63 = vcombine.low %v1349_v50, %v1353_v51  ;;  %v1306_v49 = vld [vmem:[#allocation3 + $0x128] sm:$0xff]  ;;  %v6283_v51 = vcombine.low %v1310_v57, %v1314_v40 }
 0x1c1   : > { %v1481_v53 = vld [vmem:[#allocation3 + $0x6a0] sm:$0xff]  ;;  %3639 = vmatpush2.bf16.msra.mxu1 %v6457_v55 }
 0x1c2   : > { %v6450_v58 = vcombine.high %v1477_v52, %v1481_v53  ;;  %v1341_v59 = vld [vmem:[#allocation3 + $0x240] sm:$0xff]  ;;  %3599 = vmatprep.subr.bf16.mxu0 %v6322_v56  ;;  %v6449_v0 = vcombine.low %v1477_v52, %v1481_v53  ;;  %v6276_v53 = vcombine.high %v1302_v48, %v1306_v49  ;;  %v1294_v56 = vld [vmem:[#allocation3 + $0xc8] sm:$0xff] }
 0x1c3   : > { %v1345_v60 = vld [vmem:[#allocation3 + $0x260] sm:$0xff]  ;;  %3600 = vmatpush2.bf16.msra.mxu0 %v6321_v63 }
 0x1c4   : > { %v1469_v61 = vld [vmem:[#allocation3 + $0x640] sm:$0xff]  ;;  %v6314_v1 = vcombine.high %v1341_v59, %v1345_v60  ;;  %3640 = vmatprep.subr.bf16.mxu1 %v6450_v58  ;;  %v6313_v10 = vcombine.low %v1341_v59, %v1345_v60  ;;  %v1298_v58 = vld [vmem:[#allocation3 + $0xe8] sm:$0xff]  ;;  %v6275_v60 = vcombine.low %v1302_v48, %v1306_v49 }
 0x1c5   : > { %v1473_v62 = vld [vmem:[#allocation3 + $0x660] sm:$0xff]  ;;  %3641 = vmatpush2.bf16.msra.mxu1 %v6449_v0 }
 0x1c6   : > { %v6442_v4 = vcombine.high %v1469_v61, %v1473_v62  ;;  %v1333_v5 = vld [vmem:[#allocation3 + $0x200] sm:$0xff]  ;;  %3601 = vmatprep.subr.bf16.mxu0 %v6314_v1  ;;  %v6441_v12 = vcombine.low %v1469_v61, %v1473_v62  ;;  %v6268_v62 = vcombine.high %v1294_v56, %v1298_v58  ;;  %v1286_v1 = vld [vmem:[#allocation3 + $0x88] sm:$0xff] }
 0x1c7   : > { %v1337_v6 = vld [vmem:[#allocation3 + $0x220] sm:$0xff]  ;;  %3602 = vmatpush2.bf16.msra.mxu0 %v6313_v10 }
 0x1c8   : > { %v1461_v7 = vld [vmem:[#allocation3 + $0x600] sm:$0xff]  ;;  %v6306_v13 = vcombine.high %v1333_v5, %v1337_v6  ;;  %3642 = vmatprep.subr.bf16.mxu1 %v6442_v4  ;;  %v6305_v21 = vcombine.low %v1333_v5, %v1337_v6  ;;  %v1290_v4 = vld [vmem:[#allocation3 + $0xa8] sm:$0xff]  ;;  %v6267_v6 = vcombine.low %v1294_v56, %v1298_v58 }
 0x1c9   : > { %v1465_v8 = vld [vmem:[#allocation3 + $0x620] sm:$0xff]  ;;  %3643 = vmatpush2.bf16.msra.mxu1 %v6441_v12  ;;  %v1282_v12 = vld [vmem:[#allocation3 + $0x68] sm:$0xff] }
 0x1ca   : > { %v6434_v14 = vcombine.high %v1461_v7, %v1465_v8  ;;  %v1581_v15 = vld [vmem:[#allocation3 + $0x9c0] sm:$0xff]  ;;  %3603 = vmatprep.subr.bf16.mxu0 %v6306_v13  ;;  %v6433_v23 = vcombine.low %v1461_v7, %v1465_v8  ;;  %v6260_v8 = vcombine.high %v1286_v1, %v1290_v4  ;;  %v6251_v22 = vcombine.low %v1278_v11, %v1282_v12 }
 0x1cb   : > { %v1585_v16 = vld [vmem:[#allocation3 + $0x9e0] sm:$0xff]  ;;  %3604 = vmatpush2.bf16.msra.mxu0 %v6305_v21 }
 0x1cc   : > { %v6554_v24 = vcombine.high %v1581_v15, %v1585_v16  ;;  %3644 = vmatprep.subr.bf16.mxu1 %v6434_v14  ;;  %v1573_v26 = vld [vmem:[#allocation3 + $0x980] sm:$0xff]  ;;  %v6553_v33 = vcombine.low %v1581_v15, %v1585_v16  ;;  %v6259_v14 = vcombine.low %v1286_v1, %v1290_v4  ;;  %v6252_v16 = vcombine.high %v1278_v11, %v1282_v12 }
 0x1cd   : > { %v1577_v27 = vld [vmem:[#allocation3 + $0x9a0] sm:$0xff]  ;;  %3645 = vmatpush2.bf16.msra.mxu1 %v6433_v23 }
 0x1ce   : > { %3655 = vmatprep.subr.bf16.mxu0 %v6554_v24  ;;  %v6546_v35 = vcombine.high %v1573_v26, %v1577_v27  ;;  %3696 = vmatprep.subr.bf16.mxu1 %v6300_v25  ;;  %v1565_v37 = vld [vmem:[#allocation3 + $0x940] sm:$0xff]  ;;  %v6545_v42 = vcombine.low %v1573_v26, %v1577_v27  ;;  %v6244_v24 = vcombine.high %v1270_v19, %v1274_v20  ;;  %v1390_v27 = vld [vmem:[#allocation3 + $0x3c8] sm:$0xff] }
 0x1cf   : > { %v1569_v38 = vld [vmem:[#allocation3 + $0x960] sm:$0xff]  ;;  %3606 = vmatmul.mubr.bf16.vlgmr.msra.gmra.mxu0 %v8649_v30  ;;  %v6363_v40 = vcombine.low %v1390_v27, %v1394_v28 }
 0x1d0   : > { %3647 = vmatmul.mubr.bf16.vlgmr.msra.gmra.mxu1 %v8651_v32  ;;  %3656 = vmatpush1.bf16.msra.mxu0 %v6553_v33  ;;  %v6538_v44 = vcombine.high %v1565_v37, %v1569_v38  ;;  %v1557_v46 = vld [vmem:[#allocation3 + $0x900] sm:$0xff]  ;;  %v6537_v50 = vcombine.low %v1565_v37, %v1569_v38  ;;  %v1382_v37 = vld [vmem:[#allocation3 + $0x388] sm:$0xff] }
 0x1d1   : > { %3697 = vmatpush1.bf16.msra.mxu1 %v6299_v34  ;;  %3657 = vmatprep.subr.bf16.mxu0 %v6546_v35  ;;  %v1561_v47 = vld [vmem:[#allocation3 + $0x920] sm:$0xff]  ;;  %v6364_v34 = vcombine.high %v1390_v27, %v1394_v28  ;;  %v1386_v38 = vld [vmem:[#allocation3 + $0x3a8] sm:$0xff] }
 0x1d2   : > { %3698 = vmatprep.subr.bf16.mxu1 %v6292_v36  ;;  %3687 = vmatprep.mubr.bf16.mxu0 %v8653_v39  ;;  %v6530_v52 = vcombine.high %v1557_v46, %v1561_v47  ;;  %v1549_v54 = vld [vmem:[#allocation3 + $0x8c0] sm:$0xff]  ;;  %v6529_v59 = vcombine.low %v1557_v46, %v1561_v47  ;;  %v1374_v46 = vld [vmem:[#allocation3 + $0x348] sm:$0xff]  ;;  %v6355_v49 = vcombine.low %v1382_v37, %v1386_v38 }
 0x1d3   : > { %3728 = vmatprep.mubr.bf16.mxu1 %v8633_v2  ;;  %v1553_v55 = vld [vmem:[#allocation3 + $0x8e0] sm:$0xff]  ;;  %v1378_v47 = vld [vmem:[#allocation3 + $0x368] sm:$0xff] }
 0x1d4   : > { %3658 = vmatpush1.bf16.msra.mxu0 %v6545_v42  ;;  %v6522_v61 = vcombine.high %v1549_v54, %v1553_v55  ;;  %v1541_v63 = vld [vmem:[#allocation3 + $0x880] sm:$0xff]  ;;  %v6521_v5 = vcombine.low %v1549_v54, %v1553_v55  ;;  %v1366_v54 = vld [vmem:[#allocation3 + $0x308] sm:$0xff]  ;;  %v6347_v58 = vcombine.low %v1374_v46, %v1378_v47 }
 0x1d5   : > { %3699 = vmatpush1.bf16.msra.mxu1 %v6291_v43  ;;  %3659 = vmatprep.subr.bf16.mxu0 %v6538_v44  ;;  %v1545_v0 = vld [vmem:[#allocation3 + $0x8a0] sm:$0xff]  ;;  %v6356_v43 = vcombine.high %v1382_v37, %v1386_v38  ;;  %v1370_v55 = vld [vmem:[#allocation3 + $0x328] sm:$0xff] }
 0x1d6   : > { %3700 = vmatprep.subr.bf16.mxu1 %v6284_v45  ;;  %v6514_v7 = vcombine.high %v1541_v63, %v1545_v0  ;;  %v1533_v9 = vld [vmem:[#allocation3 + $0x840] sm:$0xff]  ;;  %v6513_v13 = vcombine.low %v1541_v63, %v1545_v0  ;;  %v1358_v63 = vld [vmem:[#allocation3 + $0x2c8] sm:$0xff]  ;;  %v6339_v4 = vcombine.low %v1366_v54, %v1370_v55 }
 0x1d7   : > { %v1537_v10 = vld [vmem:[#allocation3 + $0x860] sm:$0xff]  ;;  %v1362_v0 = vld [vmem:[#allocation3 + $0x2e8] sm:$0xff] }
 0x1d8   : > { %3660 = vmatpush1.bf16.msra.mxu0 %v6537_v50  ;;  %v6506_v15 = vcombine.high %v1533_v9, %v1537_v10  ;;  %v1525_v17 = vld [vmem:[#allocation3 + $0x800] sm:$0xff]  ;;  %v6505_v21 = vcombine.low %v1533_v9, %v1537_v10  ;;  %v1350_v9 = vld [vmem:[#allocation3 + $0x288] sm:$0xff]  ;;  %v6331_v12 = vcombine.low %v1358_v63, %v1362_v0 }
 0x1d9   : > { %3701 = vmatpush1.bf16.msra.mxu1 %v6283_v51  ;;  %3661 = vmatprep.subr.bf16.mxu0 %v6530_v52  ;;  %v1529_v18 = vld [vmem:[#allocation3 + $0x820] sm:$0xff]  ;;  %v6348_v51 = vcombine.high %v1374_v46, %v1378_v47  ;;  %v1354_v10 = vld [vmem:[#allocation3 + $0x2a8] sm:$0xff] }
 0x1da   : > { %3702 = vmatprep.subr.bf16.mxu1 %v6276_v53  ;;  %v6498_v23 = vcombine.high %v1525_v17, %v1529_v18  ;;  %v1645_v25 = vld [vmem:[#allocation3 + $0xbc0] sm:$0xff]  ;;  %v6497_v41 = vcombine.low %v1525_v17, %v1529_v18  ;;  %v1342_v17 = vld [vmem:[#allocation3 + $0x248] sm:$0xff]  ;;  %v6323_v20 = vcombine.low %v1350_v9, %v1354_v10 }
 0x1db   : > { %v1649_v26 = vld [vmem:[#allocation3 + $0xbe0] sm:$0xff]  ;;  %v1346_v18 = vld [vmem:[#allocation3 + $0x268] sm:$0xff] }
 0x1dc   : > { %3662 = vmatpush1.bf16.msra.mxu0 %v6529_v59  ;;  %v6618_v33 = vcombine.high %v1645_v25, %v1649_v26  ;;  %v1637_v35 = vld [vmem:[#allocation3 + $0xb80] sm:$0xff]  ;;  %v6617_v57 = vcombine.low %v1645_v25, %v1649_v26  ;;  %v1334_v25 = vld [vmem:[#allocation3 + $0x208] sm:$0xff]  ;;  %v6315_v28 = vcombine.low %v1342_v17, %v1346_v18 }
 0x1dd   : > { %3703 = vmatpush1.bf16.msra.mxu1 %v6275_v60  ;;  %3663 = vmatprep.subr.bf16.mxu0 %v6522_v61  ;;  %v1641_v36 = vld [vmem:[#allocation3 + $0xba0] sm:$0xff]  ;;  %v6340_v60 = vcombine.high %v1366_v54, %v1370_v55  ;;  %v1338_v26 = vld [vmem:[#allocation3 + $0x228] sm:$0xff] }
 0x1de   : > { %3704 = vmatprep.subr.bf16.mxu1 %v6268_v62  ;;  %v6610_v42 = vcombine.high %v1637_v35, %v1641_v36  ;;  %v1629_v44 = vld [vmem:[#allocation3 + $0xb40] sm:$0xff]  ;;  %v6609_v48 = vcombine.low %v1637_v35, %v1641_v36  ;;  %v1582_v35 = vld [vmem:[#allocation3 + $0x9c8] sm:$0xff]  ;;  %v6307_v38 = vcombine.low %v1334_v25, %v1338_v26 }
 0x1df   : > { %v1633_v45 = vld [vmem:[#allocation3 + $0xb60] sm:$0xff]  ;;  %v1586_v36 = vld [vmem:[#allocation3 + $0x9e8] sm:$0xff] }
 0x1e0   : > { %3664 = vmatpush1.bf16.msra.mxu0 %v6521_v5  ;;  %v6602_v50 = vcombine.high %v1629_v44, %v1633_v45  ;;  %v1621_v52 = vld [vmem:[#allocation3 + $0xb00] sm:$0xff]  ;;  %v6601_v56 = vcombine.low %v1629_v44, %v1633_v45  ;;  %v8661_v44 = vpack.c.bf16 %v8641_v29, %v8641_v29  ;;  %v1574_v45 = vld [vmem:[#allocation3 + $0x988] sm:$0xff] }
 0x1e1   : > { %3705 = vmatpush1.bf16.msra.mxu1 %v6267_v6  ;;  %3665 = vmatprep.subr.bf16.mxu0 %v6514_v7  ;;  %v1625_v53 = vld [vmem:[#allocation3 + $0xb20] sm:$0xff]  ;;  %v6332_v6 = vcombine.high %v1358_v63, %v1362_v0  ;;  %v1578_v46 = vld [vmem:[#allocation3 + $0x9a8] sm:$0xff] }
 0x1e2   : > { %3706 = vmatprep.subr.bf16.mxu1 %v6260_v8  ;;  %v6594_v59 = vcombine.high %v1621_v52, %v1625_v53  ;;  %v1613_v61 = vld [vmem:[#allocation3 + $0xac0] sm:$0xff]  ;;  %v6593_v1 = vcombine.low %v1621_v52, %v1625_v53  ;;  %v1442_v52 = vld [vmem:[#allocation3 + $0x568] sm:$0xff]  ;;  %v6547_v55 = vcombine.low %v1574_v45, %v1578_v46 }
 0x1e3   : > { %v1617_v62 = vld [vmem:[#allocation3 + $0xae0] sm:$0xff]  ;;  %v1566_v53 = vld [vmem:[#allocation3 + $0x948] sm:$0xff] }
 0x1e4   : > { %3666 = vmatpush1.bf16.msra.mxu0 %v6513_v13  ;;  %v6586_v5 = vcombine.high %v1613_v61, %v1617_v62  ;;  %v1605_v7 = vld [vmem:[#allocation3 + $0xa80] sm:$0xff]  ;;  %v6585_v11 = vcombine.low %v1613_v61, %v1617_v62  ;;  %v1570_v54 = vld [vmem:[#allocation3 + $0x968] sm:$0xff] }
 0x1e5   : > { %3707 = vmatpush1.bf16.msra.mxu1 %v6259_v14  ;;  %3667 = vmatprep.subr.bf16.mxu0 %v6506_v15  ;;  %v1609_v8 = vld [vmem:[#allocation3 + $0xaa0] sm:$0xff]  ;;  %v6324_v14 = vcombine.high %v1350_v9, %v1354_v10  ;;  %v1558_v61 = vld [vmem:[#allocation3 + $0x908] sm:$0xff]  ;;  %v6539_v0 = vcombine.low %v1566_v53, %v1570_v54 }
 0x1e6   : > { %3708 = vmatprep.subr.bf16.mxu1 %v6252_v16  ;;  %v6578_v13 = vcombine.high %v1605_v7, %v1609_v8  ;;  %v1597_v15 = vld [vmem:[#allocation3 + $0xa40] sm:$0xff]  ;;  %v6577_v19 = vcombine.low %v1605_v7, %v1609_v8  ;;  %v1562_v62 = vld [vmem:[#allocation3 + $0x928] sm:$0xff] }
 0x1e7   : > { %v1601_v16 = vld [vmem:[#allocation3 + $0xa60] sm:$0xff]  ;;  %v1550_v7 = vld [vmem:[#allocation3 + $0x8c8] sm:$0xff]  ;;  %v6531_v10 = vcombine.low %v1558_v61, %v1562_v62 }
 0x1e8   : > { %3668 = vmatpush1.bf16.msra.mxu0 %v6505_v21  ;;  %v6570_v21 = vcombine.high %v1597_v15, %v1601_v16  ;;  %v6569_v27 = vcombine.low %v1597_v15, %v1601_v16  ;;  %v1554_v8 = vld [vmem:[#allocation3 + $0x8e8] sm:$0xff] }
 0x1e9   : > { %3709 = vmatpush1.bf16.msra.mxu1 %v6251_v22  ;;  %3669 = vmatprep.subr.bf16.mxu0 %v6498_v23  ;;  %v6316_v22 = vcombine.high %v1342_v17, %v1346_v18  ;;  %v1589_v23 = vld [vmem:[#allocation3 + $0xa00] sm:$0xff]  ;;  %v1542_v15 = vld [vmem:[#allocation3 + $0x888] sm:$0xff]  ;;  %v6523_v18 = vcombine.low %v1550_v7, %v1554_v8 }
 0x1ea   : > { %3710 = vmatprep.subr.bf16.mxu1 %v6244_v24  ;;  %v1593_v24 = vld [vmem:[#allocation3 + $0xa20] sm:$0xff]  ;;  %v1546_v16 = vld [vmem:[#allocation3 + $0x8a8] sm:$0xff] }
 0x1eb   : > { %v6561_v37 = vcombine.low %v1589_v23, %v1593_v24 }
 0x1ec   : > { %3670 = vmatpush1.bf16.msra.mxu0 %v6497_v41  ;;  %v6562_v41 = vcombine.high %v1589_v23, %v1593_v24  ;;  %v1534_v23 = vld [vmem:[#allocation3 + $0x848] sm:$0xff] }
 0x1ed   : > { %3711 = vmatpush1.bf16.msra.mxu1 %v6243_v31  ;;  %3671 = vmatprep.subr.bf16.mxu0 %v6618_v33  ;;  %v6308_v31 = vcombine.high %v1334_v25, %v1338_v26  ;;  %v1454_v33 = vld [vmem:[#allocation3 + $0x5c8] sm:$0xff]  ;;  %v6515_v26 = vcombine.low %v1542_v15, %v1546_v16 }
 0x1ee   : > { %3712 = vmatprep.subr.bf16.mxu1 %v6364_v34  ;;  %v1458_v34 = vld [vmem:[#allocation3 + $0x5e8] sm:$0xff] }
 0x1ef   : > { %v6427_v47 = vcombine.low %v1454_v33, %v1458_v34  ;;  %v1538_v24 = vld [vmem:[#allocation3 + $0x868] sm:$0xff] }
 0x1f0   : > { %3672 = vmatpush2.bf16.msra.mxu0 %v6617_v57  ;;  %v6428_v57 = vcombine.high %v1454_v33, %v1458_v34  ;;  %v1526_v33 = vld [vmem:[#allocation3 + $0x808] sm:$0xff] }
 0x1f1   : > { %3713 = vmatpush2.bf16.msra.mxu1 %v6363_v40  ;;  %3673 = vmatprep.subr.bf16.mxu0 %v6610_v42  ;;  %v6556_v40 = vcombine.high %v1582_v35, %v1586_v36  ;;  %v1446_v42 = vld [vmem:[#allocation3 + $0x588] sm:$0xff] }
 0x1f2   : > { %3714 = vmatprep.subr.bf16.mxu1 %v6356_v43  ;;  %v1450_v43 = vld [vmem:[#allocation3 + $0x5a8] sm:$0xff] }
 0x1f3   : > { %v6419_v29 = vcombine.low %v1446_v42, %v1450_v43  ;;  %v1530_v34 = vld [vmem:[#allocation3 + $0x828] sm:$0xff] }
 0x1f4   : > { %3674 = vmatpush2.bf16.msra.mxu0 %v6609_v48  ;;  %v6555_v48 = vcombine.low %v1582_v35, %v1586_v36  ;;  %v6507_v36 = vcombine.low %v1534_v23, %v1538_v24 }
 0x1f5   : > { %3715 = vmatpush2.bf16.msra.mxu1 %v6355_v49  ;;  %3675 = vmatprep.subr.bf16.mxu0 %v6602_v50  ;;  %v6420_v49 = vcombine.high %v1446_v42, %v1450_v43  ;;  %v6548_v50 = vcombine.high %v1574_v45, %v1578_v46  ;;  %v1646_v42 = vld [vmem:[#allocation3 + $0xbc8] sm:$0xff]  ;;  %v6499_v46 = vcombine.low %v1526_v33, %v1530_v34 }
 0x1f6   : > { %3716 = vmatprep.subr.bf16.mxu1 %v6348_v51  ;;  %v1438_v51 = vld [vmem:[#allocation3 + $0x548] sm:$0xff] }
 0x1f7   : > { %v6411_v63 = vcombine.low %v1438_v51, %v1442_v52  ;;  %v1650_v43 = vld [vmem:[#allocation3 + $0xbe8] sm:$0xff] }
 0x1f8   : > { %3676 = vmatpush2.bf16.msra.mxu0 %v6601_v56  ;;  %v6412_v56 = vcombine.high %v1438_v51, %v1442_v52  ;;  %v1638_v51 = vld [vmem:[#allocation3 + $0xb88] sm:$0xff] }
 0x1f9   : > { %3717 = vmatpush2.bf16.msra.mxu1 %v6347_v58  ;;  %3677 = vmatprep.subr.bf16.mxu0 %v6594_v59  ;;  %v6540_v58 = vcombine.high %v1566_v53, %v1570_v54  ;;  %v1430_v59 = vld [vmem:[#allocation3 + $0x508] sm:$0xff]  ;;  %v6619_v54 = vcombine.low %v1646_v42, %v1650_v43 }
 0x1fa   : > { %3718 = vmatprep.subr.bf16.mxu1 %v6340_v60  ;;  %v1434_v60 = vld [vmem:[#allocation3 + $0x528] sm:$0xff] }
 0x1fb   : > { %v6403_v9 = vcombine.low %v1430_v59, %v1434_v60  ;;  %v1642_v52 = vld [vmem:[#allocation3 + $0xba8] sm:$0xff] }
 0x1fc   : > { %3678 = vmatpush2.bf16.msra.mxu0 %v6593_v1  ;;  %v6404_v1 = vcombine.high %v1430_v59, %v1434_v60  ;;  %v1630_v59 = vld [vmem:[#allocation3 + $0xb48] sm:$0xff] }
 0x1fd   : > { %3719 = vmatpush2.bf16.msra.mxu1 %v6339_v4  ;;  %3679 = vmatprep.subr.bf16.mxu0 %v6586_v5  ;;  %v6532_v4 = vcombine.high %v1558_v61, %v1562_v62  ;;  %v1422_v5 = vld [vmem:[#allocation3 + $0x4c8] sm:$0xff]  ;;  %v6611_v62 = vcombine.low %v1638_v51, %v1642_v52 }
 0x1fe   : > { %3720 = vmatprep.subr.bf16.mxu1 %v6332_v6  ;;  %v1426_v6 = vld [vmem:[#allocation3 + $0x4e8] sm:$0xff] }
 0x1ff   : > { %v6395_v17 = vcombine.low %v1422_v5, %v1426_v6  ;;  %v1634_v60 = vld [vmem:[#allocation3 + $0xb68] sm:$0xff] }
 0x200   : > { %3680 = vmatpush2.bf16.msra.mxu0 %v6585_v11  ;;  %v6396_v11 = vcombine.high %v1422_v5, %v1426_v6  ;;  %v1622_v5 = vld [vmem:[#allocation3 + $0xb08] sm:$0xff] }
 0x201   : > { %3721 = vmatpush2.bf16.msra.mxu1 %v6331_v12  ;;  %3681 = vmatprep.subr.bf16.mxu0 %v6578_v13  ;;  %v6524_v12 = vcombine.high %v1550_v7, %v1554_v8  ;;  %v1414_v13 = vld [vmem:[#allocation3 + $0x488] sm:$0xff]  ;;  %v6603_v8 = vcombine.low %v1630_v59, %v1634_v60 }
 0x202   : > { %3722 = vmatprep.subr.bf16.mxu1 %v6324_v14  ;;  %v1418_v14 = vld [vmem:[#allocation3 + $0x4a8] sm:$0xff] }
 0x203   : > { %v6387_v25 = vcombine.low %v1414_v13, %v1418_v14  ;;  %v1626_v6 = vld [vmem:[#allocation3 + $0xb28] sm:$0xff] }
 0x204   : > { %3682 = vmatpush2.bf16.msra.mxu0 %v6577_v19  ;;  %v6388_v19 = vcombine.high %v1414_v13, %v1418_v14  ;;  %v1614_v13 = vld [vmem:[#allocation3 + $0xac8] sm:$0xff] }
 0x205   : > { %3723 = vmatpush2.bf16.msra.mxu1 %v6323_v20  ;;  %3683 = vmatprep.subr.bf16.mxu0 %v6570_v21  ;;  %v6516_v20 = vcombine.high %v1542_v15, %v1546_v16  ;;  %v1406_v21 = vld [vmem:[#allocation3 + $0x448] sm:$0xff]  ;;  %v6595_v16 = vcombine.low %v1622_v5, %v1626_v6 }
 0x206   : > { %3724 = vmatprep.subr.bf16.mxu1 %v6316_v22  ;;  %v1410_v22 = vld [vmem:[#allocation3 + $0x468] sm:$0xff] }
 0x207   : > { %v6379_v35 = vcombine.low %v1406_v21, %v1410_v22  ;;  %v1618_v14 = vld [vmem:[#allocation3 + $0xae8] sm:$0xff] }
 0x208   : > { %3684 = vmatpush2.bf16.msra.mxu0 %v6569_v27  ;;  %v6380_v27 = vcombine.high %v1406_v21, %v1410_v22  ;;  %v1606_v21 = vld [vmem:[#allocation3 + $0xa88] sm:$0xff] }
 0x209   : > { %3725 = vmatpush2.bf16.msra.mxu1 %v6315_v28  ;;  %3685 = vmatprep.subr.bf16.mxu0 %v6562_v41  ;;  %v6508_v28 = vcombine.high %v1534_v23, %v1538_v24  ;;  %v1398_v41 = vld [vmem:[#allocation3 + $0x408] sm:$0xff]  ;;  %v6587_v24 = vcombine.low %v1614_v13, %v1618_v14 }
 0x20a   : > { %3726 = vmatprep.subr.bf16.mxu1 %v6308_v31  ;;  %v1402_v31 = vld [vmem:[#allocation3 + $0x428] sm:$0xff] }
 0x20b   : > { %v6371_v45 = vcombine.low %v1398_v41, %v1402_v31  ;;  %v1610_v22 = vld [vmem:[#allocation3 + $0xaa8] sm:$0xff] }
 0x20c   : > { %3686 = vmatpush2.bf16.msra.mxu0 %v6561_v37  ;;  %v6372_v37 = vcombine.high %v1398_v41, %v1402_v31  ;;  %v1598_v41 = vld [vmem:[#allocation3 + $0xa48] sm:$0xff] }
 0x20d   : > { %3727 = vmatpush2.bf16.msra.mxu1 %v6307_v38  ;;  %3737 = vmatprep.subr.bf16.mxu0 %v6428_v57  ;;  %v6500_v38 = vcombine.high %v1526_v33, %v1530_v34  ;;  %v1518_v57 = vld [vmem:[#allocation3 + $0x7c8] sm:$0xff]  ;;  %v6579_v34 = vcombine.low %v1606_v21, %v1610_v22 }
 0x20e   : > { %3778 = vmatprep.subr.bf16.mxu1 %v6556_v40  ;;  %v1522_v40 = vld [vmem:[#allocation3 + $0x7e8] sm:$0xff] }
 0x20f   : > { %3688 = vmatmul.mubr.bf16.vlgmr.msra.gmra.mxu0 %v8661_v44  ;;  %v6491_v53 = vcombine.low %v1518_v57, %v1522_v40  ;;  %v1602_v31 = vld [vmem:[#allocation3 + $0xa68] sm:$0xff] }
 0x210   : > { %3729 = vmatmul.mubr.bf16.vlgmr.msra.gmra.mxu1 %v8649_v30  ;;  %3738 = vmatpush1.bf16.msra.mxu0 %v6427_v47  ;;  %v6492_v47 = vcombine.high %v1518_v57, %v1522_v40  ;;  %v1590_v57 = vld [vmem:[#allocation3 + $0xa08] sm:$0xff] }
 0x211   : > { %3779 = vmatpush1.bf16.msra.mxu1 %v6555_v48  ;;  %3739 = vmatprep.subr.bf16.mxu0 %v6420_v49  ;;  %v6620_v48 = vcombine.high %v1646_v42, %v1650_v43  ;;  %v1510_v49 = vld [vmem:[#allocation3 + $0x788] sm:$0xff]  ;;  %v6571_v43 = vcombine.low %v1598_v41, %v1602_v31 }
 0x212   : > { %3780 = vmatprep.subr.bf16.mxu1 %v6548_v50  ;;  %3769 = vmatprep.mubr.bf16.mxu0 %v8635_v3  ;;  %v1514_v50 = vld [vmem:[#allocation3 + $0x7a8] sm:$0xff] }
 0x213   : > { %3810 = vmatprep.mubr.bf16.mxu1 %v8653_v39  ;;  %v6483_v61 = vcombine.low %v1510_v49, %v1514_v50  ;;  %v1594_v40 = vld [vmem:[#allocation3 + $0xa28] sm:$0xff] }
 0x214   : > { %3740 = vmatpush1.bf16.msra.mxu0 %v6419_v29  ;;  %v6484_v29 = vcombine.high %v1510_v49, %v1514_v50  ;;  %v1455_v49 = vld [vmem:[#allocation3 + $0x5d0] sm:$0xff] }
 0x215   : > { %3781 = vmatpush1.bf16.msra.mxu1 %v6547_v55  ;;  %3741 = vmatprep.subr.bf16.mxu0 %v6412_v56  ;;  %v6612_v55 = vcombine.high %v1638_v51, %v1642_v52  ;;  %v1502_v56 = vld [vmem:[#allocation3 + $0x748] sm:$0xff]  ;;  %v1459_v50 = vld [vmem:[#allocation3 + $0x5f0] sm:$0xff]  ;;  %v6563_v52 = vcombine.low %v1590_v57, %v1594_v40 }
 0x216   : > { %3782 = vmatprep.subr.bf16.mxu1 %v6540_v58  ;;  %v1506_v58 = vld [vmem:[#allocation3 + $0x768] sm:$0xff] }
 0x217   : > { %v6475_v7 = vcombine.low %v1502_v56, %v1506_v58 }
 0x218   : > { %3742 = vmatpush1.bf16.msra.mxu0 %v6411_v63  ;;  %v6476_v63 = vcombine.high %v1502_v56, %v1506_v58  ;;  %v1447_v56 = vld [vmem:[#allocation3 + $0x590] sm:$0xff] }
 0x219   : > { %3783 = vmatpush1.bf16.msra.mxu1 %v6539_v0  ;;  %3743 = vmatprep.subr.bf16.mxu0 %v6404_v1  ;;  %v6604_v0 = vcombine.high %v1630_v59, %v1634_v60  ;;  %v1494_v1 = vld [vmem:[#allocation3 + $0x708] sm:$0xff]  ;;  %v1451_v58 = vld [vmem:[#allocation3 + $0x5b0] sm:$0xff]  ;;  %v6429_v60 = vcombine.low %v1455_v49, %v1459_v50 }
 0x21a   : > { %3784 = vmatprep.subr.bf16.mxu1 %v6532_v4  ;;  %v1498_v4 = vld [vmem:[#allocation3 + $0x728] sm:$0xff] }
 0x21b   : > { %v6467_v15 = vcombine.low %v1494_v1, %v1498_v4 }
 0x21c   : > { %3744 = vmatpush1.bf16.msra.mxu0 %v6403_v9  ;;  %v6468_v9 = vcombine.high %v1494_v1, %v1498_v4  ;;  %v1439_v1 = vld [vmem:[#allocation3 + $0x550] sm:$0xff] }
 0x21d   : > { %3785 = vmatpush1.bf16.msra.mxu1 %v6531_v10  ;;  %3745 = vmatprep.subr.bf16.mxu0 %v6396_v11  ;;  %v6596_v10 = vcombine.high %v1622_v5, %v1626_v6  ;;  %v1486_v11 = vld [vmem:[#allocation3 + $0x6c8] sm:$0xff]  ;;  %v1443_v4 = vld [vmem:[#allocation3 + $0x570] sm:$0xff]  ;;  %v6421_v6 = vcombine.low %v1447_v56, %v1451_v58 }
 0x21e   : > { %3786 = vmatprep.subr.bf16.mxu1 %v6524_v12  ;;  %v1490_v12 = vld [vmem:[#allocation3 + $0x6e8] sm:$0xff] }
 0x21f   : > { %v6459_v23 = vcombine.low %v1486_v11, %v1490_v12 }
 0x220   : > { %3746 = vmatpush1.bf16.msra.mxu0 %v6395_v17  ;;  %v6460_v17 = vcombine.high %v1486_v11, %v1490_v12  ;;  %v1307_v11 = vld [vmem:[#allocation3 + $0x130] sm:$0xff] }
 0x221   : > { %3787 = vmatpush1.bf16.msra.mxu1 %v6523_v18  ;;  %3747 = vmatprep.subr.bf16.mxu0 %v6388_v19  ;;  %v6588_v18 = vcombine.high %v1614_v13, %v1618_v14  ;;  %v1478_v19 = vld [vmem:[#allocation3 + $0x688] sm:$0xff]  ;;  %v1431_v12 = vld [vmem:[#allocation3 + $0x510] sm:$0xff] }
 0x222   : > { %3788 = vmatprep.subr.bf16.mxu1 %v6516_v20  ;;  %v1482_v20 = vld [vmem:[#allocation3 + $0x6a8] sm:$0xff]  ;;  %v1435_v13 = vld [vmem:[#allocation3 + $0x530] sm:$0xff] }
 0x223   : > { %v6451_v33 = vcombine.low %v1478_v19, %v1482_v20 }
 0x224   : > { %3748 = vmatpush1.bf16.msra.mxu0 %v6387_v25  ;;  %v6452_v25 = vcombine.high %v1478_v19, %v1482_v20  ;;  %v1299_v19 = vld [vmem:[#allocation3 + $0xf0] sm:$0xff] }
 0x225   : > { %3789 = vmatpush1.bf16.msra.mxu1 %v6515_v26  ;;  %3749 = vmatprep.subr.bf16.mxu0 %v6380_v27  ;;  %v6580_v26 = vcombine.high %v1606_v21, %v1610_v22  ;;  %v1470_v27 = vld [vmem:[#allocation3 + $0x648] sm:$0xff]  ;;  %v1423_v20 = vld [vmem:[#allocation3 + $0x4d0] sm:$0xff] }
 0x226   : > { %3790 = vmatprep.subr.bf16.mxu1 %v6508_v28  ;;  %v1474_v28 = vld [vmem:[#allocation3 + $0x668] sm:$0xff]  ;;  %v1427_v21 = vld [vmem:[#allocation3 + $0x4f0] sm:$0xff] }
 0x227   : > { %v6443_v42 = vcombine.low %v1470_v27, %v1474_v28 }
 0x228   : > { %3750 = vmatpush1.bf16.msra.mxu0 %v6379_v35  ;;  %v6444_v35 = vcombine.high %v1470_v27, %v1474_v28  ;;  %v1291_v27 = vld [vmem:[#allocation3 + $0xb0] sm:$0xff] }
 0x229   : > { %3791 = vmatpush1.bf16.msra.mxu1 %v6507_v36  ;;  %3751 = vmatprep.subr.bf16.mxu0 %v6372_v37  ;;  %v6572_v36 = vcombine.high %v1598_v41, %v1602_v31  ;;  %v1462_v37 = vld [vmem:[#allocation3 + $0x608] sm:$0xff]  ;;  %v1415_v28 = vld [vmem:[#allocation3 + $0x490] sm:$0xff] }
 0x22a   : > { %3792 = vmatprep.subr.bf16.mxu1 %v6500_v38  ;;  %v1466_v38 = vld [vmem:[#allocation3 + $0x628] sm:$0xff]  ;;  %v1419_v41 = vld [vmem:[#allocation3 + $0x4b0] sm:$0xff] }
 0x22b   : > { %v6435_v51 = vcombine.low %v1462_v37, %v1466_v38 }
 0x22c   : > { %3752 = vmatpush1.bf16.msra.mxu0 %v6371_v45  ;;  %v6436_v45 = vcombine.high %v1462_v37, %v1466_v38  ;;  %v1283_v37 = vld [vmem:[#allocation3 + $0x70] sm:$0xff] }
 0x22d   : > { %3793 = vmatpush1.bf16.msra.mxu1 %v6499_v46  ;;  %3753 = vmatprep.subr.bf16.mxu0 %v6492_v47  ;;  %v6564_v46 = vcombine.high %v1590_v57, %v1594_v40  ;;  %v1327_v47 = vld [vmem:[#allocation3 + $0x1d0] sm:$0xff] }
 0x22e   : > { %3794 = vmatprep.subr.bf16.mxu1 %v6620_v48  ;;  %v1331_v48 = vld [vmem:[#allocation3 + $0x1f0] sm:$0xff] }
 0x22f   : > { %v6301_v59 = vcombine.low %v1327_v47, %v1331_v48  ;;  %v1407_v38 = vld [vmem:[#allocation3 + $0x450] sm:$0xff] }
 0x230   : > { %3754 = vmatpush2.bf16.msra.mxu0 %v6491_v53  ;;  %v6302_v53 = vcombine.high %v1327_v47, %v1331_v48  ;;  %v1411_v57 = vld [vmem:[#allocation3 + $0x470] sm:$0xff] }
 0x231   : > { %3795 = vmatpush2.bf16.msra.mxu1 %v6619_v54  ;;  %3755 = vmatprep.subr.bf16.mxu0 %v6484_v29  ;;  %v6430_v54 = vcombine.high %v1455_v49, %v1459_v50  ;;  %v1319_v29 = vld [vmem:[#allocation3 + $0x190] sm:$0xff] }
 0x232   : > { %3796 = vmatprep.subr.bf16.mxu1 %v6612_v55  ;;  %v1323_v55 = vld [vmem:[#allocation3 + $0x1b0] sm:$0xff] }
 0x233   : > { %v6293_v5 = vcombine.low %v1319_v29, %v1323_v55  ;;  %v1275_v47 = vld [vmem:[#allocation3 + $0x30] sm:$0xff] }
 0x234   : > { %3756 = vmatpush2.bf16.msra.mxu0 %v6483_v61  ;;  %v6294_v61 = vcombine.high %v1319_v29, %v1323_v55  ;;  %v1399_v48 = vld [vmem:[#allocation3 + $0x410] sm:$0xff] }
 0x235   : > { %3797 = vmatpush2.bf16.msra.mxu1 %v6611_v62  ;;  %3757 = vmatprep.subr.bf16.mxu0 %v6476_v63  ;;  %v6422_v62 = vcombine.high %v1447_v56, %v1451_v58  ;;  %v1311_v63 = vld [vmem:[#allocation3 + $0x150] sm:$0xff] }
 0x236   : > { %3798 = vmatprep.subr.bf16.mxu1 %v6604_v0  ;;  %v1315_v0 = vld [vmem:[#allocation3 + $0x170] sm:$0xff] }
 0x237   : > { %v6285_v14 = vcombine.low %v1311_v63, %v1315_v0  ;;  %v1403_v49 = vld [vmem:[#allocation3 + $0x430] sm:$0xff] }
 0x238   : > { %3758 = vmatpush2.bf16.msra.mxu0 %v6475_v7  ;;  %v6286_v7 = vcombine.high %v1311_v63, %v1315_v0  ;;  %v1395_v29 = vld [vmem:[#allocation3 + $0x3f0] sm:$0xff] }
 0x239   : > { %3799 = vmatpush2.bf16.msra.mxu1 %v6603_v8  ;;  %3759 = vmatprep.subr.bf16.mxu0 %v6468_v9  ;;  %v8017_v8 = vmov 0.0   ;;  %v6414_v9 = vcombine.high %v1439_v1, %v1443_v4  ;;  %v1519_v55 = vld [vmem:[#allocation3 + $0x7d0] sm:$0xff] }
 0x23a   : > { %3800 = vmatprep.subr.bf16.mxu1 %v6596_v10  ;;  %4066 = vst.msk [vmem:[#allocation2] sm:$0xff] %vm4065_vm0, %v8017_v8  ;;  %4067 = vst.msk [vmem:[#allocation2 + $0x8] sm:$0xff] %vm4065_vm0, %v8017_v8  ;;  %v1303_v10 = vld [vmem:[#allocation3 + $0x110] sm:$0xff] }
 0x23b   : > { %4068 = vst.msk [vmem:[#allocation2 + $0x10] sm:$0xff] %vm4065_vm0, %v8017_v8  ;;  %v6277_v22 = vcombine.low %v1303_v10, %v1307_v11  ;;  %v1523_v56 = vld [vmem:[#allocation3 + $0x7f0] sm:$0xff] }
 0x23c   : > { %3760 = vmatpush2.bf16.msra.mxu0 %v6467_v15  ;;  %v6413_v15 = vcombine.low %v1439_v1, %v1443_v4  ;;  %v1387_v63 = vld [vmem:[#allocation3 + $0x3b0] sm:$0xff] }
 0x23d   : > { %3801 = vmatpush2.bf16.msra.mxu1 %v6595_v16  ;;  %3761 = vmatprep.subr.bf16.mxu0 %v6460_v17  ;;  %v6278_v16 = vcombine.high %v1303_v10, %v1307_v11  ;;  %v6406_v17 = vcombine.high %v1431_v12, %v1435_v13  ;;  %v1511_v0 = vld [vmem:[#allocation3 + $0x790] sm:$0xff] }
 0x23e   : > { %3802 = vmatprep.subr.bf16.mxu1 %v6588_v18  ;;  %v1295_v18 = vld [vmem:[#allocation3 + $0xd0] sm:$0xff] }
 0x23f   : > { %v6269_v31 = vcombine.low %v1295_v18, %v1299_v19  ;;  %v1515_v1 = vld [vmem:[#allocation3 + $0x7b0] sm:$0xff] }
 0x240   : > { %3762 = vmatpush2.bf16.msra.mxu0 %v6459_v23  ;;  %v6405_v23 = vcombine.low %v1431_v12, %v1435_v13  ;;  %v1375_v8 = vld [vmem:[#allocation3 + $0x350] sm:$0xff]  ;;  %v6485_v13 = vcombine.low %v1511_v0, %v1515_v1 }
 0x241   : > { %3803 = vmatpush2.bf16.msra.mxu1 %v6587_v24  ;;  %3763 = vmatprep.subr.bf16.mxu0 %v6452_v25  ;;  %v6270_v24 = vcombine.high %v1295_v18, %v1299_v19  ;;  %v6398_v25 = vcombine.high %v1423_v20, %v1427_v21  ;;  %v1503_v10 = vld [vmem:[#allocation3 + $0x750] sm:$0xff] }
 0x242   : > { %3804 = vmatprep.subr.bf16.mxu1 %v6580_v26  ;;  %v1287_v26 = vld [vmem:[#allocation3 + $0x90] sm:$0xff] }
 0x243   : > { %v6261_v40 = vcombine.low %v1287_v26, %v1291_v27  ;;  %v1507_v11 = vld [vmem:[#allocation3 + $0x770] sm:$0xff] }
 0x244   : > { %3764 = vmatpush2.bf16.msra.mxu0 %v6451_v33  ;;  %v6397_v33 = vcombine.low %v1423_v20, %v1427_v21  ;;  %v1495_v18 = vld [vmem:[#allocation3 + $0x710] sm:$0xff]  ;;  %v6477_v21 = vcombine.low %v1503_v10, %v1507_v11 }
 0x245   : > { %3805 = vmatpush2.bf16.msra.mxu1 %v6579_v34  ;;  %3765 = vmatprep.subr.bf16.mxu0 %v6444_v35  ;;  %v6262_v34 = vcombine.high %v1287_v26, %v1291_v27  ;;  %v6390_v35 = vcombine.high %v1415_v28, %v1419_v41  ;;  %v1499_v19 = vld [vmem:[#allocation3 + $0x730] sm:$0xff] }
 0x246   : > { %3806 = vmatprep.subr.bf16.mxu1 %v6572_v36  ;;  %v1279_v36 = vld [vmem:[#allocation3 + $0x50] sm:$0xff] }
 0x247   : > { %v6253_v50 = vcombine.low %v1279_v36, %v1283_v37  ;;  %v1487_v26 = vld [vmem:[#allocation3 + $0x6d0] sm:$0xff] }
 0x248   : > { %3766 = vmatpush2.bf16.msra.mxu0 %v6443_v42  ;;  %v6389_v42 = vcombine.low %v1415_v28, %v1419_v41  ;;  %v1491_v27 = vld [vmem:[#allocation3 + $0x6f0] sm:$0xff]  ;;  %v6469_v41 = vcombine.low %v1495_v18, %v1499_v19 }
 0x249   : > { %3807 = vmatpush2.bf16.msra.mxu1 %v6571_v43  ;;  %3767 = vmatprep.subr.bf16.mxu0 %v6436_v45  ;;  %v6254_v43 = vcombine.high %v1279_v36, %v1283_v37  ;;  %v6382_v45 = vcombine.high %v1407_v38, %v1411_v57  ;;  %v1479_v36 = vld [vmem:[#allocation3 + $0x690] sm:$0xff] }
 0x24a   : > { %3808 = vmatprep.subr.bf16.mxu1 %v6564_v46  ;;  %v1271_v46 = vld [vmem:[#allocation3 + $0x10] sm:$0xff] }
 0x24b   : > { %v6245_v58 = vcombine.low %v1271_v46, %v1275_v47  ;;  %v1483_v37 = vld [vmem:[#allocation3 + $0x6b0] sm:$0xff] }
 0x24c   : > { %3768 = vmatpush2.bf16.msra.mxu0 %v6435_v51  ;;  %v6381_v51 = vcombine.low %v1407_v38, %v1411_v57  ;;  %v6461_v57 = vcombine.low %v1487_v26, %v1491_v27 }
 0x24d   : > { %3809 = vmatpush2.bf16.msra.mxu1 %v6563_v52  ;;  %3819 = vmatprep.subr.bf16.mxu0 %v6302_v53  ;;  %v6246_v52 = vcombine.high %v1271_v46, %v1275_v47  ;;  %v6374_v53 = vcombine.high %v1399_v48, %v1403_v49  ;;  %v1471_v46 = vld [vmem:[#allocation3 + $0x650] sm:$0xff] }
 0x24e   : > { %3860 = vmatprep.subr.bf16.mxu1 %v6430_v54  ;;  %v1391_v54 = vld [vmem:[#allocation3 + $0x3d0] sm:$0xff] }
 0x24f   : > { %3770 = vmatmul.mubr.bf16.vlgmr.msra.gmra.mxu0 %v8651_v32  ;;  %v6365_v4 = vcombine.low %v1391_v54, %v1395_v29  ;;  %v1475_v47 = vld [vmem:[#allocation3 + $0x670] sm:$0xff] }
 0x250   : > { %3811 = vmatmul.mubr.bf16.vlgmr.msra.gmra.mxu1 %v8661_v44  ;;  %3820 = vmatpush1.bf16.msra.mxu0 %v6301_v59  ;;  %v6373_v59 = vcombine.low %v1399_v48, %v1403_v49  ;;  %v6453_v49 = vcombine.low %v1479_v36, %v1483_v37 }
 0x251   : > { %3861 = vmatpush1.bf16.msra.mxu1 %v6429_v60  ;;  %3821 = vmatprep.subr.bf16.mxu0 %v6294_v61  ;;  %v6366_v60 = vcombine.high %v1391_v54, %v1395_v29  ;;  %v6494_v61 = vcombine.high %v1519_v55, %v1523_v56  ;;  %v1463_v54 = vld [vmem:[#allocation3 + $0x610] sm:$0xff] }
 0x252   : > { %3862 = vmatprep.subr.bf16.mxu1 %v6422_v62  ;;  %3851 = vmatprep.mubr.bf16.mxu0 %v8633_v2  ;;  %v1383_v62 = vld [vmem:[#allocation3 + $0x390] sm:$0xff] }
 0x253   : > { %3892 = vmatprep.mubr.bf16.mxu1 %v8635_v3  ;;  %v6357_v12 = vcombine.low %v1383_v62, %v1387_v63  ;;  %v1467_v29 = vld [vmem:[#allocation3 + $0x630] sm:$0xff] }
 0x254   : > { %3822 = vmatpush1.bf16.msra.mxu0 %v6293_v5  ;;  %v6493_v5 = vcombine.low %v1519_v55, %v1523_v56  ;;  %v6445_v56 = vcombine.low %v1471_v46, %v1475_v47 }
 0x255   : > { %3863 = vmatpush1.bf16.msra.mxu1 %v6421_v6  ;;  %3823 = vmatprep.subr.bf16.mxu0 %v6286_v7  ;;  %v6358_v6 = vcombine.high %v1383_v62, %v1387_v63  ;;  %v6486_v7 = vcombine.high %v1511_v0, %v1515_v1  ;;  %v1328_v62 = vld [vmem:[#allocation3 + $0x1d8] sm:$0xff]  ;;  %v6437_v1 = vcombine.low %v1463_v54, %v1467_v29 }
 0x256   : > { %3864 = vmatprep.subr.bf16.mxu1 %v6414_v9  ;;  %v1379_v9 = vld [vmem:[#allocation3 + $0x370] sm:$0xff]  ;;  %v1332_v63 = vld [vmem:[#allocation3 + $0x1f8] sm:$0xff] }
 0x257   : > { %v6349_v20 = vcombine.low %v1375_v8, %v1379_v9 }
 0x258   : > { %3824 = vmatpush1.bf16.msra.mxu0 %v6285_v14  ;;  %v6350_v14 = vcombine.high %v1375_v8, %v1379_v9  ;;  %v1320_v8 = vld [vmem:[#allocation3 + $0x198] sm:$0xff] }
 0x259   : > { %3865 = vmatpush1.bf16.msra.mxu1 %v6413_v15  ;;  %3825 = vmatprep.subr.bf16.mxu0 %v6278_v16  ;;  %v6478_v15 = vcombine.high %v1503_v10, %v1507_v11  ;;  %v1367_v16 = vld [vmem:[#allocation3 + $0x310] sm:$0xff]  ;;  %v1324_v9 = vld [vmem:[#allocation3 + $0x1b8] sm:$0xff]  ;;  %v6303_v11 = vcombine.low %v1328_v62, %v1332_v63 }
 0x25a   : > { %3866 = vmatprep.subr.bf16.mxu1 %v6406_v17  ;;  %v1371_v17 = vld [vmem:[#allocation3 + $0x330] sm:$0xff] }
 0x25b   : > { %v6341_v28 = vcombine.low %v1367_v16, %v1371_v17 }
 0x25c   : > { %3826 = vmatpush1.bf16.msra.mxu0 %v6277_v22  ;;  %v6342_v22 = vcombine.high %v1367_v16, %v1371_v17  ;;  %v1312_v17 = vld [vmem:[#allocation3 + $0x158] sm:$0xff] }
 0x25d   : > { %3867 = vmatpush1.bf16.msra.mxu1 %v6405_v23  ;;  %3827 = vmatprep.subr.bf16.mxu0 %v6270_v24  ;;  %v6470_v23 = vcombine.high %v1495_v18, %v1499_v19  ;;  %v1359_v24 = vld [vmem:[#allocation3 + $0x2d0] sm:$0xff]  ;;  %v1316_v18 = vld [vmem:[#allocation3 + $0x178] sm:$0xff] }
 0x25e   : > { %3868 = vmatprep.subr.bf16.mxu1 %v6398_v25  ;;  %v1363_v25 = vld [vmem:[#allocation3 + $0x2f0] sm:$0xff] }
 0x25f   : > { %v6333_v38 = vcombine.low %v1359_v24, %v1363_v25 }
 0x260   : > { %3828 = vmatpush1.bf16.msra.mxu0 %v6269_v31  ;;  %v6334_v31 = vcombine.high %v1359_v24, %v1363_v25  ;;  %v6288_v25 = vcombine.high %v1312_v17, %v1316_v18 }
 0x261   : > { %3869 = vmatpush1.bf16.msra.mxu1 %v6397_v33  ;;  %3829 = vmatprep.subr.bf16.mxu0 %v6262_v34  ;;  %v6462_v33 = vcombine.high %v1487_v26, %v1491_v27  ;;  %v1351_v34 = vld [vmem:[#allocation3 + $0x290] sm:$0xff] }
 0x262   : > { %3870 = vmatprep.subr.bf16.mxu1 %v6390_v35  ;;  %v1355_v35 = vld [vmem:[#allocation3 + $0x2b0] sm:$0xff] }
 0x263   : > { %v6325_v48 = vcombine.low %v1351_v34, %v1355_v35  ;;  %v1559_v26 = vld [vmem:[#allocation3 + $0x910] sm:$0xff] }
 0x264   : > { %3830 = vmatpush1.bf16.msra.mxu0 %v6261_v40  ;;  %v6326_v40 = vcombine.high %v1351_v34, %v1355_v35  ;;  %v1563_v27 = vld [vmem:[#allocation3 + $0x930] sm:$0xff] }
 0x265   : > { %3871 = vmatpush1.bf16.msra.mxu1 %v6389_v42  ;;  %3831 = vmatprep.subr.bf16.mxu0 %v6254_v43  ;;  %v6454_v42 = vcombine.high %v1479_v36, %v1483_v37  ;;  %v1343_v43 = vld [vmem:[#allocation3 + $0x250] sm:$0xff]  ;;  %v6287_v36 = vcombine.low %v1312_v17, %v1316_v18  ;;  %v6534_v37 = vcombine.high %v1559_v26, %v1563_v27 }
 0x266   : > { %3872 = vmatprep.subr.bf16.mxu1 %v6382_v45  ;;  %v1347_v45 = vld [vmem:[#allocation3 + $0x270] sm:$0xff] }
 0x267   : > { %v6317_v55 = vcombine.low %v1343_v43, %v1347_v45 }
 0x268   : > { %3832 = vmatpush1.bf16.msra.mxu0 %v6253_v50  ;;  %v6318_v50 = vcombine.high %v1343_v43, %v1347_v45  ;;  %v1296_v43 = vld [vmem:[#allocation3 + $0xd8] sm:$0xff] }
 0x269   : > { %3873 = vmatpush1.bf16.msra.mxu1 %v6381_v51  ;;  %3833 = vmatprep.subr.bf16.mxu0 %v6246_v52  ;;  %v6446_v51 = vcombine.high %v1471_v46, %v1475_v47  ;;  %v1335_v52 = vld [vmem:[#allocation3 + $0x210] sm:$0xff]  ;;  %v1300_v45 = vld [vmem:[#allocation3 + $0xf8] sm:$0xff]  ;;  %v6533_v46 = vcombine.low %v1559_v26, %v1563_v27 }
 0x26a   : > { %3874 = vmatprep.subr.bf16.mxu1 %v6374_v53  ;;  %v1339_v53 = vld [vmem:[#allocation3 + $0x230] sm:$0xff]  ;;  %v1388_v26 = vld [vmem:[#allocation3 + $0x3b8] sm:$0xff] }
 0x26b   : > { %v6309_v0 = vcombine.low %v1335_v52, %v1339_v53 }
 0x26c   : > { %3834 = vmatpush1.bf16.msra.mxu0 %v6245_v58  ;;  %v6310_v58 = vcombine.high %v1335_v52, %v1339_v53  ;;  %v1292_v52 = vld [vmem:[#allocation3 + $0xb8] sm:$0xff] }
 0x26d   : > { %3875 = vmatpush1.bf16.msra.mxu1 %v6373_v59  ;;  %3835 = vmatprep.subr.bf16.mxu0 %v6366_v60  ;;  %v6438_v59 = vcombine.high %v1463_v54, %v1467_v29  ;;  %v1583_v60 = vld [vmem:[#allocation3 + $0x9d0] sm:$0xff]  ;;  %v6271_v54 = vcombine.low %v1296_v43, %v1300_v45 }
 0x26e   : > { %3876 = vmatprep.subr.bf16.mxu1 %v6494_v61  ;;  %v1587_v61 = vld [vmem:[#allocation3 + $0x9f0] sm:$0xff] }
 0x26f   : > { %v6557_v10 = vcombine.low %v1583_v60, %v1587_v61 }
 0x270   : > { %3836 = vmatpush2.bf16.msra.mxu0 %v6365_v4  ;;  %v6558_v4 = vcombine.high %v1583_v60, %v1587_v61  ;;  %v1284_v60 = vld [vmem:[#allocation3 + $0x78] sm:$0xff] }
 0x271   : > { %3877 = vmatpush2.bf16.msra.mxu1 %v6493_v5  ;;  %3837 = vmatprep.subr.bf16.mxu0 %v6358_v6  ;;  %v6304_v5 = vcombine.high %v1328_v62, %v1332_v63  ;;  %v1575_v6 = vld [vmem:[#allocation3 + $0x990] sm:$0xff] }
 0x272   : > { %3878 = vmatprep.subr.bf16.mxu1 %v6486_v7  ;;  %v1579_v7 = vld [vmem:[#allocation3 + $0x9b0] sm:$0xff] }
 0x274   : > { %3838 = vmatpush2.bf16.msra.mxu0 %v6357_v12  ;;  %v6550_v12 = vcombine.high %v1575_v6, %v1579_v7 }
 0x275   : > { %3879 = vmatpush2.bf16.msra.mxu1 %v6485_v13  ;;  %3839 = vmatprep.subr.bf16.mxu0 %v6350_v14  ;;  %v6296_v13 = vcombine.high %v1320_v8, %v1324_v9  ;;  %v1567_v14 = vld [vmem:[#allocation3 + $0x950] sm:$0xff] }
 0x276   : > { %3880 = vmatprep.subr.bf16.mxu1 %v6478_v15  ;;  %v1571_v15 = vld [vmem:[#allocation3 + $0x970] sm:$0xff] }
 0x277   : > { %v6541_v34 = vcombine.low %v1567_v14, %v1571_v15 }
 0x278   : > { %3840 = vmatpush2.bf16.msra.mxu0 %v6349_v20  ;;  %v6549_v20 = vcombine.low %v1575_v6, %v1579_v7  ;;  %v1276_v6 = vld [vmem:[#allocation3 + $0x38] sm:$0xff] }
 0x279   : > { %3881 = vmatpush2.bf16.msra.mxu1 %v6477_v21  ;;  %3841 = vmatprep.subr.bf16.mxu0 %v6342_v22  ;;  %v6295_v22 = vcombine.low %v1320_v8, %v1324_v9 }
 0x27a   : > { %3882 = vmatprep.subr.bf16.mxu1 %v6470_v23  ;;  %v6542_v23 = vcombine.high %v1567_v14, %v1571_v15  ;;  %v1396_v14 = vld [vmem:[#allocation3 + $0x3f8] sm:$0xff] }
 0x27c   : > { %3842 = vmatpush2.bf16.msra.mxu0 %v6341_v28 }
 0x27d   : > { %3883 = vmatpush2.bf16.msra.mxu1 %v6469_v41  ;;  %3843 = vmatprep.subr.bf16.mxu0 %v6334_v31  ;;  %v1304_v41 = vld [vmem:[#allocation3 + $0x118] sm:$0xff] }
 0x27e   : > { %3884 = vmatprep.subr.bf16.mxu1 %v6462_v33  ;;  %v1308_v31 = vld [vmem:[#allocation3 + $0x138] sm:$0xff] }
 0x280   : > { %3844 = vmatpush2.bf16.msra.mxu0 %v6333_v38 }
 0x281   : > { %3885 = vmatpush2.bf16.msra.mxu1 %v6461_v57  ;;  %3845 = vmatprep.subr.bf16.mxu0 %v6326_v40  ;;  %v6280_v57 = vcombine.high %v1304_v41, %v1308_v31  ;;  %v1551_v40 = vld [vmem:[#allocation3 + $0x8d0] sm:$0xff] }
 0x282   : > { %3886 = vmatprep.subr.bf16.mxu1 %v6454_v42  ;;  %v1555_v42 = vld [vmem:[#allocation3 + $0x8f0] sm:$0xff] }
 0x283   : > { %v6526_v47 = vcombine.high %v1551_v40, %v1555_v42  ;;  %v6525_v53 = vcombine.low %v1551_v40, %v1555_v42  ;;  %v1623_v42 = vld [vmem:[#allocation3 + $0xb10] sm:$0xff] }
 0x284   : > { %3846 = vmatpush2.bf16.msra.mxu0 %v6325_v48  ;;  %v6272_v48 = vcombine.high %v1296_v43, %v1300_v45  ;;  %v1627_v43 = vld [vmem:[#allocation3 + $0xb30] sm:$0xff]  ;;  %v1368_v45 = vld [vmem:[#allocation3 + $0x318] sm:$0xff] }
 0x285   : > { %3887 = vmatpush2.bf16.msra.mxu1 %v6453_v49  ;;  %3847 = vmatprep.subr.bf16.mxu0 %v6318_v50  ;;  %v1543_v49 = vld [vmem:[#allocation3 + $0x890] sm:$0xff] }
 0x286   : > { %3888 = vmatprep.subr.bf16.mxu1 %v6446_v51  ;;  %v1547_v50 = vld [vmem:[#allocation3 + $0x8b0] sm:$0xff]  ;;  %v1288_v51 = vld [vmem:[#allocation3 + $0x98] sm:$0xff] }
 0x287   : > { %v6518_v29 = vcombine.high %v1543_v49, %v1547_v50  ;;  %v6517_v61 = vcombine.low %v1543_v49, %v1547_v50  ;;  %v6263_v62 = vcombine.low %v1288_v51, %v1292_v52  ;;  %v1615_v50 = vld [vmem:[#allocation3 + $0xad0] sm:$0xff] }
 0x288   : > { %3848 = vmatpush2.bf16.msra.mxu0 %v6317_v55  ;;  %v6264_v55 = vcombine.high %v1288_v51, %v1292_v52  ;;  %v1619_v51 = vld [vmem:[#allocation3 + $0xaf0] sm:$0xff]  ;;  %v1360_v52 = vld [vmem:[#allocation3 + $0x2d8] sm:$0xff] }
 0x289   : > { %3889 = vmatpush2.bf16.msra.mxu1 %v6445_v56  ;;  %3849 = vmatprep.subr.bf16.mxu0 %v6310_v58  ;;  %v1535_v56 = vld [vmem:[#allocation3 + $0x850] sm:$0xff] }
 0x28a   : > { %3890 = vmatprep.subr.bf16.mxu1 %v6438_v59  ;;  %v1539_v58 = vld [vmem:[#allocation3 + $0x870] sm:$0xff]  ;;  %v1280_v59 = vld [vmem:[#allocation3 + $0x58] sm:$0xff] }
 0x28b   : > { %v6510_v63 = vcombine.high %v1535_v56, %v1539_v58  ;;  %v6509_v7 = vcombine.low %v1535_v56, %v1539_v58  ;;  %v6255_v8 = vcombine.low %v1280_v59, %v1284_v60  ;;  %v1607_v58 = vld [vmem:[#allocation3 + $0xa90] sm:$0xff] }
 0x28c   : > { %3850 = vmatpush2.bf16.msra.mxu0 %v6309_v0  ;;  %v6256_v0 = vcombine.high %v1280_v59, %v1284_v60  ;;  %v1611_v59 = vld [vmem:[#allocation3 + $0xab0] sm:$0xff]  ;;  %v1352_v60 = vld [vmem:[#allocation3 + $0x298] sm:$0xff] }
 0x28d   : > { %3891 = vmatpush2.bf16.msra.mxu1 %v6437_v1  ;;  %3901 = vmatprep.subr.bf16.mxu0 %v6558_v4  ;;  %v1527_v1 = vld [vmem:[#allocation3 + $0x810] sm:$0xff] }
 0x28e   : > { %3942 = vmatprep.subr.bf16.mxu1 %v6304_v5  ;;  %v1531_v4 = vld [vmem:[#allocation3 + $0x830] sm:$0xff]  ;;  %v1272_v5 = vld [vmem:[#allocation3 + $0x18] sm:$0xff] }
 0x28f   : > { %v8674_v16 = vpop.f32.mrf.mxu0  ;;  %3852 = vmatmul.mubr.bf16.vlgmr.msra.gmra.mxu0 %v8649_v30  ;;  %v6502_v9 = vcombine.high %v1527_v1, %v1531_v4  ;;  %v6501_v15 = vcombine.low %v1527_v1, %v1531_v4  ;;  %v6247_v17 = vcombine.low %v1272_v5, %v1276_v6  ;;  %v1599_v4 = vld [vmem:[#allocation3 + $0xa50] sm:$0xff] }
 0x290   : > { %v8677_v19 = vpop.f32.mrf.mxu1  ;;  %3893 = vmatmul.mubr.bf16.vlgmr.msra.gmra.mxu1 %v8651_v32  ;;  %3902 = vmatpush1.bf16.msra.mxu0 %v6557_v10  ;;  %v6248_v10 = vcombine.high %v1272_v5, %v1276_v6  ;;  %v1603_v5 = vld [vmem:[#allocation3 + $0xa70] sm:$0xff]  ;;  %v1344_v6 = vld [vmem:[#allocation3 + $0x258] sm:$0xff] }
 0x291   : > { %3943 = vmatpush1.bf16.msra.mxu1 %v6303_v11  ;;  %v8680_v21 = vpop.f32.mrf.mxu0  ;;  %3903 = vmatprep.subr.bf16.mxu0 %v6550_v12  ;;  %v1647_v11 = vld [vmem:[#allocation3 + $0xbd0] sm:$0xff] }
 0x292   : > { %v8682_v24 = vpop.f32.mrf.mxu1  ;;  %3944 = vmatprep.subr.bf16.mxu1 %v6296_v13  ;;  %3933 = vmatprep.mubr.bf16.mxu0 %v8653_v39  ;;  %v1651_v12 = vld [vmem:[#allocation3 + $0xbf0] sm:$0xff]  ;;  %v1392_v13 = vld [vmem:[#allocation3 + $0x3d8] sm:$0xff] }
 0x293   : > { %v3611_v28 = vpop.f32.mrf.mxu0  ;;  %3974 = vmatprep.mubr.bf16.mxu1 %v8633_v2  ;;  %v6279_v2 = vcombine.low %v1304_v41, %v1308_v31  ;;  %v6622_v18 = vcombine.high %v1647_v11, %v1651_v12  ;;  %v6621_v27 = vcombine.low %v1647_v11, %v1651_v12  ;;  %v1591_v12 = vld [vmem:[#allocation3 + $0xa10] sm:$0xff] }
 0x294   : > { %v3652_v33 = vpop.f32.mrf.mxu1  ;;  %3904 = vmatpush1.bf16.msra.mxu0 %v6549_v20  ;;  %v6368_v20 = vcombine.high %v1392_v13, %v1396_v14  ;;  %v6367_v28 = vcombine.low %v1392_v13, %v1396_v14  ;;  %v1595_v13 = vld [vmem:[#allocation3 + $0xa30] sm:$0xff]  ;;  %v1336_v14 = vld [vmem:[#allocation3 + $0x218] sm:$0xff] }
 0x295   : > { %3945 = vmatpush1.bf16.msra.mxu1 %v6295_v22  ;;  %v3612_v35 = vpop.f32.mrf.mxu0  ;;  %3905 = vmatprep.subr.bf16.mxu0 %v6542_v23  ;;  %v1639_v22 = vld [vmem:[#allocation3 + $0xb90] sm:$0xff] }
 0x296   : > { %v3653_v38 = vpop.f32.mrf.mxu1  ;;  %3946 = vmatprep.subr.bf16.mxu1 %v6288_v25  ;;  %v1643_v23 = vld [vmem:[#allocation3 + $0xbb0] sm:$0xff]  ;;  %v1384_v25 = vld [vmem:[#allocation3 + $0x398] sm:$0xff] }
 0x297   : > { %v6614_v41 = vcombine.high %v1639_v22, %v1643_v23  ;;  %v6360_v31 = vcombine.high %v1384_v25, %v1388_v26  ;;  %v1631_v33 = vld [vmem:[#allocation3 + $0xb50] sm:$0xff]  ;;  %v1376_v35 = vld [vmem:[#allocation3 + $0x358] sm:$0xff]  ;;  %v6359_v38 = vcombine.low %v1384_v25, %v1388_v26 }
 0x298   : > { %3906 = vmatpush1.bf16.msra.mxu0 %v6541_v34  ;;  %v1635_v34 = vld [vmem:[#allocation3 + $0xb70] sm:$0xff]  ;;  %v1460_v25 = vld [vmem:[#allocation3 + $0x5f8] sm:$0xff] }
 0x299   : > { %3947 = vmatpush1.bf16.msra.mxu1 %v6287_v36  ;;  %3907 = vmatprep.subr.bf16.mxu0 %v6534_v37  ;;  %v1380_v36 = vld [vmem:[#allocation3 + $0x378] sm:$0xff]  ;;  %v6613_v37 = vcombine.low %v1639_v22, %v1643_v23 }
 0x29a   : > { %3948 = vmatprep.subr.bf16.mxu1 %v6280_v57  ;;  %v6606_v57 = vcombine.high %v1631_v33, %v1635_v34  ;;  %v6352_v40 = vcombine.high %v1376_v35, %v1380_v36  ;;  %v1456_v23 = vld [vmem:[#allocation3 + $0x5d8] sm:$0xff] }
 0x29b   : > { %v1584_v26 = vld [vmem:[#allocation3 + $0x9d8] sm:$0xff] }
 0x29c   : > { %3908 = vmatpush1.bf16.msra.mxu0 %v6533_v46  ;;  %v1372_v46 = vld [vmem:[#allocation3 + $0x338] sm:$0xff] }
 0x29d   : > { %3949 = vmatpush1.bf16.msra.mxu1 %v6279_v2  ;;  %3909 = vmatprep.subr.bf16.mxu0 %v6526_v47  ;;  %v6605_v2 = vcombine.low %v1631_v33, %v1635_v34  ;;  %v6351_v47 = vcombine.low %v1376_v35, %v1380_v36  ;;  %v6344_v49 = vcombine.high %v1368_v45, %v1372_v46  ;;  %v1448_v34 = vld [vmem:[#allocation3 + $0x598] sm:$0xff] }
 0x29e   : > { %3950 = vmatprep.subr.bf16.mxu1 %v6272_v48  ;;  %v6598_v48 = vcombine.high %v1623_v42, %v1627_v43  ;;  %v1452_v35 = vld [vmem:[#allocation3 + $0x5b8] sm:$0xff] }
 0x29f   : > { %v1576_v36 = vld [vmem:[#allocation3 + $0x998] sm:$0xff] }
 0x2a0   : > { %3910 = vmatpush1.bf16.msra.mxu0 %v6525_v53  ;;  %v1364_v53 = vld [vmem:[#allocation3 + $0x2f8] sm:$0xff] }
 0x2a1   : > { %3951 = vmatpush1.bf16.msra.mxu1 %v6271_v54  ;;  %3911 = vmatprep.subr.bf16.mxu0 %v6518_v29  ;;  %v6597_v54 = vcombine.low %v1623_v42, %v1627_v43  ;;  %v6343_v29 = vcombine.low %v1368_v45, %v1372_v46  ;;  %v6336_v56 = vcombine.high %v1360_v52, %v1364_v53  ;;  %v1440_v45 = vld [vmem:[#allocation3 + $0x558] sm:$0xff] }
 0x2a2   : > { %3952 = vmatprep.subr.bf16.mxu1 %v6264_v55  ;;  %v6590_v55 = vcombine.high %v1615_v50, %v1619_v51  ;;  %v3649_v42 = vadd.f32 %v8677_v19, %v8674_v16  ;;  %v1444_v46 = vld [vmem:[#allocation3 + $0x578] sm:$0xff]  ;;  %v6423_v16 = vcombine.low %v1448_v34, %v1452_v35 }
 0x2a4   : > { %3912 = vmatpush1.bf16.msra.mxu0 %v6517_v61  ;;  %v1356_v61 = vld [vmem:[#allocation3 + $0x2b8] sm:$0xff] }
 0x2a5   : > { %3953 = vmatpush1.bf16.msra.mxu1 %v6263_v62  ;;  %3913 = vmatprep.subr.bf16.mxu0 %v6510_v63  ;;  %v6589_v62 = vcombine.low %v1615_v50, %v1619_v51  ;;  %v6335_v63 = vcombine.low %v1360_v52, %v1364_v53  ;;  %v6328_v1 = vcombine.high %v1352_v60, %v1356_v61 }
 0x2a6   : > { %3954 = vmatprep.subr.bf16.mxu1 %v6256_v0  ;;  %v6582_v0 = vcombine.high %v1607_v58, %v1611_v59  ;;  %v6416_v53 = vcombine.high %v1440_v45, %v1444_v46 }
 0x2a8   : > { %3914 = vmatpush1.bf16.msra.mxu0 %v6509_v7  ;;  %v1348_v7 = vld [vmem:[#allocation3 + $0x278] sm:$0xff] }
 0x2a9   : > { %3955 = vmatpush1.bf16.msra.mxu1 %v6255_v8  ;;  %3915 = vmatprep.subr.bf16.mxu0 %v6502_v9  ;;  %v6581_v8 = vcombine.low %v1607_v58, %v1611_v59  ;;  %v6327_v9 = vcombine.low %v1352_v60, %v1356_v61  ;;  %v6320_v11 = vcombine.high %v1344_v6, %v1348_v7  ;;  %v1564_v58 = vld [vmem:[#allocation3 + $0x938] sm:$0xff] }
 0x2aa   : > { %3956 = vmatprep.subr.bf16.mxu1 %v6248_v10  ;;  %v6574_v10 = vcombine.high %v1599_v4, %v1603_v5  ;;  %v6415_v60 = vcombine.low %v1440_v45, %v1444_v46  ;;  %v1652_v45 = vld [vmem:[#allocation3 + $0xbf8] sm:$0xff] }
 0x2ac   : > { %3916 = vmatpush1.bf16.msra.mxu0 %v6501_v15  ;;  %v1340_v15 = vld [vmem:[#allocation3 + $0x238] sm:$0xff] }
 0x2ad   : > { %3957 = vmatpush1.bf16.msra.mxu1 %v6247_v17  ;;  %3917 = vmatprep.subr.bf16.mxu0 %v6622_v18  ;;  %v6573_v17 = vcombine.low %v1599_v4, %v1603_v5  ;;  %v6319_v18 = vcombine.low %v1344_v6, %v1348_v7  ;;  %v6312_v22 = vcombine.high %v1336_v14, %v1340_v15  ;;  %v1424_v4 = vld [vmem:[#allocation3 + $0x4d8] sm:$0xff] }
 0x2ae   : > { %3958 = vmatprep.subr.bf16.mxu1 %v6368_v20  ;;  %v6566_v20 = vcombine.high %v1591_v12, %v1595_v13  ;;  %v1428_v5 = vld [vmem:[#allocation3 + $0x4f8] sm:$0xff] }
 0x2af   : > { %v1556_v6 = vld [vmem:[#allocation3 + $0x8f8] sm:$0xff] }
 0x2b0   : > { %3918 = vmatpush2.bf16.msra.mxu0 %v6621_v27  ;;  %v1588_v27 = vld [vmem:[#allocation3 + $0x9f8] sm:$0xff] }
 0x2b1   : > { %3959 = vmatpush2.bf16.msra.mxu1 %v6367_v28  ;;  %3919 = vmatprep.subr.bf16.mxu0 %v6614_v41  ;;  %v6565_v28 = vcombine.low %v1591_v12, %v1595_v13  ;;  %v6311_v41 = vcombine.low %v1336_v14, %v1340_v15  ;;  %v6560_v33 = vcombine.high %v1584_v26, %v1588_v27  ;;  %v1544_v12 = vld [vmem:[#allocation3 + $0x898] sm:$0xff] }
 0x2b2   : > { %3960 = vmatprep.subr.bf16.mxu1 %v6360_v31  ;;  %v6432_v31 = vcombine.high %v1456_v23, %v1460_v25  ;;  %v1548_v13 = vld [vmem:[#allocation3 + $0x8b8] sm:$0xff]  ;;  %v6399_v14 = vcombine.low %v1424_v4, %v1428_v5 }
 0x2b4   : > { %3920 = vmatpush2.bf16.msra.mxu0 %v6613_v37  ;;  %v1580_v37 = vld [vmem:[#allocation3 + $0x9b8] sm:$0xff] }
 0x2b5   : > { %3961 = vmatpush2.bf16.msra.mxu1 %v6359_v38  ;;  %3921 = vmatprep.subr.bf16.mxu0 %v6606_v57  ;;  %v6431_v38 = vcombine.low %v1456_v23, %v1460_v25  ;;  %v6559_v57 = vcombine.low %v1584_v26, %v1588_v27  ;;  %v6552_v43 = vcombine.high %v1576_v36, %v1580_v37  ;;  %v1536_v23 = vld [vmem:[#allocation3 + $0x858] sm:$0xff] }
 0x2b6   : > { %3962 = vmatprep.subr.bf16.mxu1 %v6352_v40  ;;  %v6424_v40 = vcombine.high %v1448_v34, %v1452_v35  ;;  %v6551_v52 = vcombine.low %v1576_v36, %v1580_v37  ;;  %v1540_v25 = vld [vmem:[#allocation3 + $0x878] sm:$0xff]  ;;  %v6519_v27 = vcombine.low %v1544_v12, %v1548_v13 }
 0x2b7   : > { %v1528_v34 = vld [vmem:[#allocation3 + $0x818] sm:$0xff]  ;;  %v6511_v37 = vcombine.low %v1536_v23, %v1540_v25 }
 0x2b8   : > { %3922 = vmatpush2.bf16.msra.mxu0 %v6605_v2  ;;  %v1532_v35 = vld [vmem:[#allocation3 + $0x838] sm:$0xff] }
 0x2b9   : > { %3963 = vmatpush2.bf16.msra.mxu1 %v6351_v47  ;;  %3923 = vmatprep.subr.bf16.mxu0 %v6598_v48  ;;  %v1568_v47 = vld [vmem:[#allocation3 + $0x958] sm:$0xff] }
 0x2ba   : > { %3964 = vmatprep.subr.bf16.mxu1 %v6344_v49  ;;  %v1572_v48 = vld [vmem:[#allocation3 + $0x978] sm:$0xff]  ;;  %v3651_v49 = vadd.f32 %v8682_v24, %v8680_v21 }
 0x2bb   : > { %v6544_v21 = vcombine.high %v1568_v47, %v1572_v48  ;;  %v1432_v24 = vld [vmem:[#allocation3 + $0x518] sm:$0xff] }
 0x2bc   : > { %3924 = vmatpush2.bf16.msra.mxu0 %v6597_v54 }
 0x2bd   : > { %3965 = vmatpush2.bf16.msra.mxu1 %v6343_v29  ;;  %3925 = vmatprep.subr.bf16.mxu0 %v6590_v55  ;;  %v1436_v55 = vld [vmem:[#allocation3 + $0x538] sm:$0xff] }
 0x2be   : > { %3966 = vmatprep.subr.bf16.mxu1 %v6336_v56  ;;  %v1560_v56 = vld [vmem:[#allocation3 + $0x918] sm:$0xff] }
 0x2bf   : > { %v6535_v7 = vcombine.low %v1560_v56, %v1564_v58 }
 0x2c0   : > { %3926 = vmatpush2.bf16.msra.mxu0 %v6589_v62  ;;  %v6543_v62 = vcombine.low %v1568_v47, %v1572_v48 }
 0x2c1   : > { %3967 = vmatpush2.bf16.msra.mxu1 %v6335_v63  ;;  %3927 = vmatprep.subr.bf16.mxu0 %v6582_v0  ;;  %v6408_v63 = vcombine.high %v1432_v24, %v1436_v55 }
 0x2c2   : > { %3968 = vmatprep.subr.bf16.mxu1 %v6328_v1  ;;  %v6536_v1 = vcombine.high %v1560_v56, %v1564_v58  ;;  %v1636_v56 = vld [vmem:[#allocation3 + $0xb78] sm:$0xff] }
 0x2c4   : > { %3928 = vmatpush2.bf16.msra.mxu0 %v6581_v8  ;;  %v6400_v8 = vcombine.high %v1424_v4, %v1428_v5 }
 0x2c5   : > { %3969 = vmatpush2.bf16.msra.mxu1 %v6327_v9  ;;  %3929 = vmatprep.subr.bf16.mxu0 %v6574_v10  ;;  %v1416_v10 = vld [vmem:[#allocation3 + $0x498] sm:$0xff] }
 0x2c6   : > { %3970 = vmatprep.subr.bf16.mxu1 %v6320_v11  ;;  %v1420_v11 = vld [vmem:[#allocation3 + $0x4b8] sm:$0xff] }
 0x2c7   : > { %v6391_v26 = vcombine.low %v1416_v10, %v1420_v11 }
 0x2c8   : > { %3930 = vmatpush2.bf16.msra.mxu0 %v6573_v17  ;;  %v6392_v17 = vcombine.high %v1416_v10, %v1420_v11 }
 0x2c9   : > { %3971 = vmatpush2.bf16.msra.mxu1 %v6319_v18  ;;  %3931 = vmatprep.subr.bf16.mxu0 %v6566_v20  ;;  %v6520_v18 = vcombine.high %v1544_v12, %v1548_v13  ;;  %v1408_v20 = vld [vmem:[#allocation3 + $0x458] sm:$0xff] }
 0x2ca   : > { %3972 = vmatprep.subr.bf16.mxu1 %v6312_v22  ;;  %v1412_v22 = vld [vmem:[#allocation3 + $0x478] sm:$0xff] }
 0x2cb   : > { %v6383_v36 = vcombine.low %v1408_v20, %v1412_v22 }
 0x2cc   : > { %3932 = vmatpush2.bf16.msra.mxu0 %v6565_v28  ;;  %v6384_v28 = vcombine.high %v1408_v20, %v1412_v22 }
 0x2cd   : > { %3973 = vmatpush2.bf16.msra.mxu1 %v6311_v41  ;;  %3983 = vmatprep.subr.bf16.mxu0 %v6432_v31  ;;  %v6512_v41 = vcombine.high %v1536_v23, %v1540_v25  ;;  %v1400_v31 = vld [vmem:[#allocation3 + $0x418] sm:$0xff] }
 0x2ce   : > { %4024 = vmatprep.subr.bf16.mxu1 %v6560_v33  ;;  %v1404_v33 = vld [vmem:[#allocation3 + $0x438] sm:$0xff] }
 0x2cf   : > { %v3689_v2 = vpop.f32.mrf.mxu0  ;;  %3934 = vmatmul.mubr.bf16.vlgmr.msra.gmra.mxu0 %v8661_v44  ;;  %v6375_v46 = vcombine.low %v1400_v31, %v1404_v33 }
 0x2d0   : > { %v3690_v50 = vadd.f32 %v3689_v2, %v3649_v42  ;;  %v8691_v51 = vpop.f32.mrf.mxu1  ;;  %3975 = vmatmul.mubr.bf16.vlgmr.msra.gmra.mxu1 %v8649_v30  ;;  %3984 = vmatpush1.bf16.msra.mxu0 %v6431_v38  ;;  %v6376_v38 = vcombine.high %v1400_v31, %v1404_v33  ;;  %v1524_v42 = vld [vmem:[#allocation3 + $0x7f8] sm:$0xff]  ;;  %v6503_v2 = vcombine.low %v1528_v34, %v1532_v35 }
 0x2d1   : > { %4025 = vmatpush1.bf16.msra.mxu1 %v6559_v57  ;;  %v3691_v19 = vpop.f32.mrf.mxu0  ;;  %3985 = vmatprep.subr.bf16.mxu0 %v6424_v40  ;;  %v6504_v57 = vcombine.high %v1528_v34, %v1532_v35  ;;  %v1520_v40 = vld [vmem:[#allocation3 + $0x7d8] sm:$0xff] }
 0x2d2   : > { %4070 = vst.msk [vmem:[#allocation2 + $0x1] sm:$0x1] %vm4069_vm1, %v3690_v50  ;;  %v3692_v54 = vadd.f32 %v3691_v19, %v3651_v49  ;;  %v8695_v29 = vpop.f32.mrf.mxu1  ;;  %4072 = vrot.lane.b32.xlu0 %v3690_v50, %s8018_s29  ;;  %4026 = vmatprep.subr.bf16.mxu1 %v6552_v43  ;;  %v1648_v43 = vld [vmem:[#allocation3 + $0xbd8] sm:$0xff]  ;;  %v6496_v47 = vcombine.high %v1520_v40, %v1524_v42 }
 0x2d3   : > { %v3693_v30 = vpop.f32.mrf.mxu0  ;;  %4015 = vmatprep.mubr.bf16.mxu0 %v8635_v3  ;;  %4056 = vmatprep.mubr.bf16.mxu1 %v8653_v39  ;;  %v1552_v3 = vld [vmem:[#allocation3 + $0x8d8] sm:$0xff]  ;;  %v6407_v39 = vcombine.low %v1432_v24, %v1436_v55  ;;  %v6624_v48 = vcombine.high %v1648_v43, %v1652_v45 }
 0x2d4   : > { %4076 = vst.msk [vmem:[#allocation2 + $0x3] sm:$0x1] %vm4069_vm1, %v3692_v54  ;;  %v3734_v59 = vpop.f32.mrf.mxu1  ;;  %3986 = vmatpush1.bf16.msra.mxu0 %v6423_v16  ;;  %v6528_v9 = vcombine.high %v1552_v3, %v1556_v6  ;;  %v6527_v15 = vcombine.low %v1552_v3, %v1556_v6  ;;  %v1512_v49 = vld [vmem:[#allocation3 + $0x798] sm:$0xff] }
 0x2d5   : > { %4027 = vmatpush1.bf16.msra.mxu1 %v6551_v52  ;;  %v3694_v61 = vpop.f32.mrf.mxu0  ;;  %3987 = vmatprep.subr.bf16.mxu0 %v6416_v53  ;;  %v1516_v50 = vld [vmem:[#allocation3 + $0x7b8] sm:$0xff]  ;;  %v6495_v52 = vcombine.low %v1520_v40, %v1524_v42  ;;  %v6623_v53 = vcombine.low %v1648_v43, %v1652_v45 }
 0x2d6   : > { %v3735_v0 = vpop.f32.mrf.mxu1  ;;  %4078 = vrot.lane.b32.xlu0 %v3692_v54, %s8018_s29  ;;  %4028 = vmatprep.subr.bf16.mxu1 %v6544_v21  ;;  %v1640_v16 = vld [vmem:[#allocation3 + $0xb98] sm:$0xff]  ;;  %v6488_v54 = vcombine.high %v1512_v49, %v1516_v50  ;;  %v6487_v58 = vcombine.low %v1512_v49, %v1516_v50 }
 0x2d7   : > { %v1644_v19 = vld [vmem:[#allocation3 + $0xbb8] sm:$0xff] }
 0x2d8   : > { %3988 = vmatpush1.bf16.msra.mxu0 %v6415_v60  ;;  %v6616_v21 = vcombine.high %v1640_v16, %v1644_v19  ;;  %v1504_v24 = vld [vmem:[#allocation3 + $0x758] sm:$0xff]  ;;  %v6615_v59 = vcombine.low %v1640_v16, %v1644_v19 }
 0x2d9   : > { %4029 = vmatpush1.bf16.msra.mxu1 %v6543_v62  ;;  %3989 = vmatprep.subr.bf16.mxu0 %v6408_v63  ;;  %v1508_v55 = vld [vmem:[#allocation3 + $0x778] sm:$0xff] }
 0x2da   : > { %4030 = vmatprep.subr.bf16.mxu1 %v6536_v1  ;;  %v1632_v30 = vld [vmem:[#allocation3 + $0xb58] sm:$0xff]  ;;  %v6480_v60 = vcombine.high %v1504_v24, %v1508_v55  ;;  %v6479_v4 = vcombine.low %v1504_v24, %v1508_v55 }
 0x2db   : > { %v6608_v61 = vcombine.high %v1632_v30, %v1636_v56  ;;  %v1496_v62 = vld [vmem:[#allocation3 + $0x718] sm:$0xff]  ;;  %v6607_v5 = vcombine.low %v1632_v30, %v1636_v56 }
 0x2dc   : > { %3990 = vmatpush1.bf16.msra.mxu0 %v6407_v39  ;;  %v1500_v63 = vld [vmem:[#allocation3 + $0x738] sm:$0xff] }
 0x2dd   : > { %4031 = vmatpush1.bf16.msra.mxu1 %v6535_v7  ;;  %3991 = vmatprep.subr.bf16.mxu0 %v6400_v8  ;;  %v1624_v0 = vld [vmem:[#allocation3 + $0xb18] sm:$0xff]  ;;  %v6472_v3 = vcombine.high %v1496_v62, %v1500_v63  ;;  %v6471_v10 = vcombine.low %v1496_v62, %v1500_v63 }
 0x2de   : > { %4032 = vmatprep.subr.bf16.mxu1 %v6528_v9  ;;  %v1628_v1 = vld [vmem:[#allocation3 + $0xb38] sm:$0xff] }
 0x2df   : > { %v6600_v6 = vcombine.high %v1624_v0, %v1628_v1  ;;  %v1488_v39 = vld [vmem:[#allocation3 + $0x6d8] sm:$0xff]  ;;  %v6599_v11 = vcombine.low %v1624_v0, %v1628_v1 }
 0x2e0   : > { %3992 = vmatpush1.bf16.msra.mxu0 %v6399_v14  ;;  %v1492_v7 = vld [vmem:[#allocation3 + $0x6f8] sm:$0xff] }
 0x2e1   : > { %4033 = vmatpush1.bf16.msra.mxu1 %v6527_v15  ;;  %3993 = vmatprep.subr.bf16.mxu0 %v6392_v17  ;;  %v1616_v8 = vld [vmem:[#allocation3 + $0xad8] sm:$0xff]  ;;  %v6464_v12 = vcombine.high %v1488_v39, %v1492_v7  ;;  %v6463_v20 = vcombine.low %v1488_v39, %v1492_v7 }
 0x2e2   : > { %4034 = vmatprep.subr.bf16.mxu1 %v6520_v18  ;;  %v1620_v9 = vld [vmem:[#allocation3 + $0xaf8] sm:$0xff] }
 0x2e3   : > { %v6592_v13 = vcombine.high %v1616_v8, %v1620_v9  ;;  %v1480_v14 = vld [vmem:[#allocation3 + $0x698] sm:$0xff]  ;;  %v6591_v22 = vcombine.low %v1616_v8, %v1620_v9 }
 0x2e4   : > { %3994 = vmatpush1.bf16.msra.mxu0 %v6391_v26  ;;  %v1484_v15 = vld [vmem:[#allocation3 + $0x6b8] sm:$0xff] }
 0x2e5   : > { %4035 = vmatpush1.bf16.msra.mxu1 %v6519_v27  ;;  %3995 = vmatprep.subr.bf16.mxu0 %v6384_v28  ;;  %v1608_v17 = vld [vmem:[#allocation3 + $0xa98] sm:$0xff]  ;;  %v6456_v23 = vcombine.high %v1480_v14, %v1484_v15  ;;  %v6455_v31 = vcombine.low %v1480_v14, %v1484_v15 }
 0x2e6   : > { %4036 = vmatprep.subr.bf16.mxu1 %v6512_v41  ;;  %v1612_v18 = vld [vmem:[#allocation3 + $0xab8] sm:$0xff] }
 0x2e7   : > { %v6584_v25 = vcombine.high %v1608_v17, %v1612_v18  ;;  %v1472_v26 = vld [vmem:[#allocation3 + $0x658] sm:$0xff]  ;;  %v6583_v33 = vcombine.low %v1608_v17, %v1612_v18 }
 0x2e8   : > { %3996 = vmatpush1.bf16.msra.mxu0 %v6383_v36  ;;  %v1476_v27 = vld [vmem:[#allocation3 + $0x678] sm:$0xff] }
 0x2e9   : > { %4037 = vmatpush1.bf16.msra.mxu1 %v6511_v37  ;;  %3997 = vmatprep.subr.bf16.mxu0 %v6376_v38  ;;  %v1600_v28 = vld [vmem:[#allocation3 + $0xa58] sm:$0xff]  ;;  %v6448_v34 = vcombine.high %v1472_v26, %v1476_v27  ;;  %v6447_v40 = vcombine.low %v1472_v26, %v1476_v27 }
 0x2ea   : > { %4038 = vmatprep.subr.bf16.mxu1 %v6504_v57  ;;  %v1604_v41 = vld [vmem:[#allocation3 + $0xa78] sm:$0xff] }
 0x2eb   : > { %v6576_v35 = vcombine.high %v1600_v28, %v1604_v41  ;;  %v1464_v36 = vld [vmem:[#allocation3 + $0x618] sm:$0xff]  ;;  %v6575_v42 = vcombine.low %v1600_v28, %v1604_v41  ;;  %v4121_v41 = vld [vmem:[#allocation6] sm:$0xff] }
 0x2ec   : > { %3998 = vmatpush1.bf16.msra.mxu0 %v6375_v46  ;;  %v1468_v37 = vld [vmem:[#allocation3 + $0x638] sm:$0xff] }
 0x2ed   : > { %4039 = vmatpush1.bf16.msra.mxu1 %v6503_v2  ;;  %3999 = vmatprep.subr.bf16.mxu0 %v6496_v47  ;;  %v1592_v38 = vld [vmem:[#allocation3 + $0xa18] sm:$0xff]  ;;  %v6440_v43 = vcombine.high %v1464_v36, %v1468_v37  ;;  %v6439_v46 = vcombine.low %v1464_v36, %v1468_v37 }
 0x2ee   : > { %4040 = vmatprep.subr.bf16.mxu1 %v6624_v48  ;;  %v1596_v57 = vld [vmem:[#allocation3 + $0xa38] sm:$0xff] }
 0x2ef   : > { %v6568_v45 = vcombine.high %v1592_v38, %v1596_v57  ;;  %v6567_v2 = vcombine.low %v1592_v38, %v1596_v57  ;;  %v4122_v38 = vld [vmem:[#allocation6 + $0x8] sm:$0xff] }
 0x2f0   : > { %4000 = vmatpush2.bf16.msra.mxu0 %v6495_v52 }
 0x2f1   : > { %4041 = vmatpush2.bf16.msra.mxu1 %v6623_v53  ;;  %4001 = vmatprep.subr.bf16.mxu0 %v6488_v54 }
 0x2f2   : > { %4042 = vmatprep.subr.bf16.mxu1 %v6616_v21 }
 0x2f4   : > { %4002 = vmatpush2.bf16.msra.mxu0 %v6487_v58 }
 0x2f5   : > { %4043 = vmatpush2.bf16.msra.mxu1 %v6615_v59  ;;  %4003 = vmatprep.subr.bf16.mxu0 %v6480_v60 }
 0x2f6   : > { %4044 = vmatprep.subr.bf16.mxu1 %v6608_v61 }
 0x2f8   : > { %4004 = vmatpush2.bf16.msra.mxu0 %v6479_v4 }
 0x2f9   : > { %4045 = vmatpush2.bf16.msra.mxu1 %v6607_v5  ;;  %4005 = vmatprep.subr.bf16.mxu0 %v6472_v3 }
 0x2fa   : > { %4046 = vmatprep.subr.bf16.mxu1 %v6600_v6 }
 0x2fc   : > { %4006 = vmatpush2.bf16.msra.mxu0 %v6471_v10 }
 0x2fd   : > { %4047 = vmatpush2.bf16.msra.mxu1 %v6599_v11  ;;  %4007 = vmatprep.subr.bf16.mxu0 %v6464_v12 }
 0x2fe   : > { %4048 = vmatprep.subr.bf16.mxu1 %v6592_v13 }
 0x300   : > { %4008 = vmatpush2.bf16.msra.mxu0 %v6463_v20 }
 0x301   : > { %4049 = vmatpush2.bf16.msra.mxu1 %v6591_v22  ;;  %4009 = vmatprep.subr.bf16.mxu0 %v6456_v23 }
 0x302   : > { %4050 = vmatprep.subr.bf16.mxu1 %v6584_v25 }
 0x304   : > { %4010 = vmatpush2.bf16.msra.mxu0 %v6455_v31 }
 0x305   : > { %4051 = vmatpush2.bf16.msra.mxu1 %v6583_v33  ;;  %4011 = vmatprep.subr.bf16.mxu0 %v6448_v34 }
 0x306   : > { %4052 = vmatprep.subr.bf16.mxu1 %v6576_v35 }
 0x308   : > { %4012 = vmatpush2.bf16.msra.mxu0 %v6447_v40  ;;  %v4123_v40 = vld [vmem:[#allocation6 + $0x10] sm:$0xff] }
 0x309   : > { %4053 = vmatpush2.bf16.msra.mxu1 %v6575_v42  ;;  %4013 = vmatprep.subr.bf16.mxu0 %v6440_v43 }
 0x30a   : > { %4054 = vmatprep.subr.bf16.mxu1 %v6568_v45 }
 0x30c   : > { %4014 = vmatpush2.bf16.msra.mxu0 %v6439_v46 }
 0x30d   : > { %4055 = vmatpush2.bf16.msra.mxu1 %v6567_v2 }
 0x30f   : > { %v3771_v47 = vpop.f32.mrf.mxu0  ;;  %4016 = vmatmul.mubr.bf16.vlgmr.msra.gmra.mxu0 %v8651_v32 }
 0x310   : > { %v3772_v48 = vadd.f32 %v3771_v47, %v8691_v51  ;;  %v3812_v49 = vpop.f32.mrf.mxu1  ;;  %4057 = vmatmul.mubr.bf16.vlgmr.msra.gmra.mxu1 %v8661_v44 }
 0x311   : > { %v3773_v50 = vpop.f32.mrf.mxu0 }
 0x312   : > { %v3813_v16 = vadd.f32 %v3812_v49, %v3772_v48  ;;  %v3774_v19 = vadd.f32 %v3773_v50, %v8695_v29  ;;  %v3814_v52 = vpop.f32.mrf.mxu1 }
 0x313   : > { %v3775_v53 = vpop.f32.mrf.mxu0 }
 0x314   : > { %4082 = vst.msk [vmem:[#allocation2 + $0x5] sm:$0x1] %vm4069_vm1, %v3813_v16  ;;  %v3815_v54 = vadd.f32 %v3814_v52, %v3774_v19  ;;  %v3816_v21 = vpop.f32.mrf.mxu1  ;;  %4084 = vrot.lane.b32.xlu1 %v3813_v16, %s8018_s29 }
 0x315   : > { %v3776_v24 = vpop.f32.mrf.mxu0 }
 0x316   : > { %4088 = vst.msk [vmem:[#allocation2 + $0x7] sm:$0x1] %vm4069_vm1, %v3815_v54  ;;  %v3817_v32 = vpop.f32.mrf.mxu1 }
 0x318   : > { %4090 = vrot.lane.b32.xlu1 %v3815_v54, %s8018_s29 }
 0x344   : > { %v4073_v51 = vpop.permute.xlu0 %4072 }
 0x345   : > { %4075 = vst.msk [vmem:[#allocation2 + $0x2] sm:$0x1] %vm4069_vm1, %v4073_v51 }
 0x348   : > { %v4079_v44 = vpop.permute.xlu0 %4078 }
 0x349   : > { %4081 = vst.msk [vmem:[#allocation2 + $0x4] sm:$0x1] %vm4069_vm1, %v4079_v44 }
 0x34f   : > { %v3853_v29 = vpop.f32.mrf.mxu0 }
 0x350   : > { %v3894_v55 = vpop.f32.mrf.mxu1 }
 0x351   : > { %v3855_v30 = vpop.f32.mrf.mxu0  ;;  %v3895_v0 = vadd.f32 %v3894_v55, %v3853_v29 }
 0x352   : > { %v3896_v56 = vpop.f32.mrf.mxu1 }
 0x353   : > { %v3857_v58 = vpop.f32.mrf.mxu0  ;;  %v3897_v4 = vadd.f32 %v3896_v56, %v3855_v30 }
 0x354   : > { %v3898_v59 = vpop.f32.mrf.mxu1 }
 0x355   : > { %v3858_v60 = vpop.f32.mrf.mxu0  ;;  %v6625_v59 = vld [vmem:[#allocation8] ss:$0 sm:$0xff] }
 0x356   : > { %v3899_v61 = vpop.f32.mrf.mxu1 }
 0x357   : > { %v6626_v61 = vld [vmem:[#allocation9] ss:$0 sm:$0xff] }
 0x386   : > { %v4085_v62 = vpop.permute.xlu1 %4084 }
 0x387   : > { %4087 = vst.msk [vmem:[#allocation2 + $0x6] sm:$0x1] %vm4069_vm1, %v4085_v62 }
 0x38a   : > { %v4091_v63 = vpop.permute.xlu1 %4090 }
 0x38b   : > { %4093 = vst.msk [vmem:[#allocation2 + $0x8] sm:$0x1] %vm4069_vm1, %v4091_v63 }
 0x38e   : > { %v4118_v28 = vld [vmem:[#allocation2] sm:$0xff] }
 0x38f   : > { %v3935_v1 = vpop.f32.mrf.mxu0  ;;  %v4124_v31 = vadd.f32 %v4121_v41, %v4118_v28 }
 0x390   : > { %v3936_v5 = vadd.f32 %v3935_v1, %v3895_v0  ;;  %v3976_v3 = vpop.f32.mrf.mxu1 }
 0x391   : > { %v3937_v6 = vpop.f32.mrf.mxu0  ;;  %v4129_v33 = vsel %vm4065_vm0, %v4124_v31, 0.0 }
 0x392   : > { %4094 = vst.msk [vmem:[#allocation2 + $0x9] sm:$0x1] %vm4069_vm1, %v3936_v5  ;;  %v3938_v39 = vadd.f32 %v3937_v6, %v3897_v4  ;;  %v3978_v7 = vpop.f32.mrf.mxu1  ;;  %4096 = vrot.lane.b32.xlu0 %v3936_v5, %s8018_s29 }
 0x393   : > { %v3939_v8 = vpop.f32.mrf.mxu0 }
 0x394   : > { %4100 = vst.msk [vmem:[#allocation2 + $0xb] sm:$0x1] %vm4069_vm1, %v3938_v39  ;;  %v3980_v9 = vpop.f32.mrf.mxu1  ;;  %4102 = vrot.lane.b32.xlu1 %v3938_v39, %s8018_s29 }
 0x395   : > { %v3940_v10 = vpop.f32.mrf.mxu0 }
 0x396   : > { %v3981_v11 = vpop.f32.mrf.mxu1 }
 0x3cf   : > { %v4017_v12 = vpop.f32.mrf.mxu0 }
 0x3d0   : > { %v4018_v13 = vadd.f32 %v4017_v12, %v3976_v3  ;;  %v4058_v14 = vpop.f32.mrf.mxu1 }
 0x3d1   : > { %v4019_v15 = vpop.f32.mrf.mxu0 }
 0x3d2   : > { %v4059_v17 = vadd.f32 %v4058_v14, %v4018_v13  ;;  %v4020_v18 = vadd.f32 %v4019_v15, %v3978_v7  ;;  %v4060_v20 = vpop.f32.mrf.mxu1 }
 0x3d3   : > { %v4021_v22 = vpop.f32.mrf.mxu0 }
 0x3d4   : > { %4106 = vst.msk [vmem:[#allocation2 + $0xd] sm:$0x1] %vm4069_vm1, %v4059_v17  ;;  %v4061_v23 = vadd.f32 %v4060_v20, %v4020_v18  ;;  %v4062_v25 = vpop.f32.mrf.mxu1  ;;  %4108 = vrot.lane.b32.xlu0 %v4059_v17, %s8018_s29 }
 0x3d5   : > { %v4022_v26 = vpop.f32.mrf.mxu0 }
 0x3d6   : > { %4112 = vst.msk [vmem:[#allocation2 + $0xf] sm:$0x1] %vm4069_vm1, %v4061_v23  ;;  %v4063_v27 = vpop.f32.mrf.mxu1  ;;  %4114 = vrot.lane.b32.xlu1 %v4061_v23, %s8018_s29 }
 0x3f3   : > { %4130 = vadd.xlane.f32.xlu0 %v4129_v33 }
 0x404   : > { %v4097_v34 = vpop.permute.xlu0 %4096 }
 0x405   : > { %4099 = vst.msk [vmem:[#allocation2 + $0xa] sm:$0x1] %vm4069_vm1, %v4097_v34 }
 0x406   : > { %v4103_v35 = vpop.permute.xlu1 %4102 }
 0x407   : > { %4105 = vst.msk [vmem:[#allocation2 + $0xc] sm:$0x1] %vm4069_vm1, %v4103_v35 }
 0x446   : > { %v4109_v36 = vpop.permute.xlu0 %4108 }
 0x447   : > { %4111 = vst.msk [vmem:[#allocation2 + $0xe] sm:$0x1] %vm4069_vm1, %v4109_v36 }
 0x448   : > { %v4115_v37 = vpop.permute.xlu1 %4114 }
 0x449   : > { %4117 = vst.msk [vmem:[#allocation2 + $0x10] sm:$0x1] %vm4069_vm1, %v4115_v37 }
 0x44e   : > { %v4119_v57 = vld [vmem:[#allocation2 + $0x8] sm:$0xff] }
 0x44f   : > { %v4125_v42 = vadd.f32 %v4122_v38, %v4119_v57 }
 0x450   : > { %v4120_v43 = vld [vmem:[#allocation2 + $0x10] sm:$0xff] }
 0x451   : > { %v4132_v45 = vsel %vm4065_vm0, %v4125_v42, 0.0  ;;  %v4126_v46 = vadd.f32 %v4123_v40, %v4120_v43 }
 0x452   : > { %4133 = vadd.xlane.f32.xlu1 %v4132_v45 }
 0x453   : > { %v4135_v2 = vsel %vm4065_vm0, %v4126_v46, 0.0 }
 0x454   : > { %4136 = vadd.xlane.f32.xlu0 %v4135_v2 }
 0x47c   : > { %v4131_v47 = vpop.xlane.xlu0 %4130 }
 0x47d   : > { %v4139_v48 = vmul.f32 0.015625, %v4131_v47 }
 0x47f   : > { %v4142_v49 = vsub.f32 %v4124_v31, %v4139_v48 }
 0x481   : > { %v4145_v50 = vmul.f32 %v4142_v49, %v4142_v49 }
 0x483   : > { %v4148_v16 = vsel %vm4065_vm0, %v4145_v50, 0.0 }
 0x484   : > { %4149 = vadd.xlane.f32.xlu0 %v4148_v16 }
 0x4db   : > { %v4134_v19 = vpop.xlane.xlu1 %4133 }
 0x4dc   : > { %v4140_v52 = vmul.f32 0.015625, %v4134_v19 }
 0x4dd   : > { %v4137_v53 = vpop.xlane.xlu0 %4136 }
 0x4de   : > { %v4143_v54 = vsub.f32 %v4125_v42, %v4140_v52  ;;  %v4141_v21 = vmul.f32 0.015625, %v4137_v53 }
 0x4e0   : > { %v4144_v24 = vsub.f32 %v4126_v46, %v4141_v21  ;;  %v4146_v32 = vmul.f32 %v4143_v54, %v4143_v54 }
 0x4e2   : > { %v4151_v51 = vsel %vm4065_vm0, %v4146_v32, 0.0  ;;  %v4147_v44 = vmul.f32 %v4144_v24, %v4144_v24 }
 0x4e3   : > { %4152 = vadd.xlane.f32.xlu1 %v4151_v51 }
 0x4e4   : > { %v4154_v29 = vsel %vm4065_vm0, %v4147_v44, 0.0 }
 0x4e5   : > { %4155 = vadd.xlane.f32.xlu0 %v4154_v29 }
 0x50d   : > { %v4150_v55 = vpop.xlane.xlu0 %4149 }
 0x50e   : > { %v4157_v30 = vmul.f32 0.015625, %v4150_v55 }
 0x510   : > { %v4160_v56 = vadd.f32 1e-05, %v4157_v30 }
 0x512   : > { %7160 = vrsqrt.f32 %v4160_v56 }
 0x51f   : > { %v7161_v58 = vpop.eup %7160 }
 0x520   : > { %v4166_v60 = vmul.f32 %v7161_v58, %v4142_v49 }
 0x522   : > { %v4175_v62 = vmul.f32 %v6625_v59, %v4166_v60 }
 0x524   : > { %v4184_v63 = vadd.f32 %v6626_v61, %v4175_v62 }
 0x526   : > { %4187 = vst.msk [vmem:[#allocation2] sm:$0xff] %vm4065_vm0, %v4184_v63 }
 0x56c   : > { %v4153_v0 = vpop.xlane.xlu1 %4152 }
 0x56d   : > { %v4158_v1 = vmul.f32 0.015625, %v4153_v0 }
 0x56e   : > { %v4156_v4 = vpop.xlane.xlu0 %4155 }
 0x56f   : > { %v4161_v5 = vadd.f32 1e-05, %v4158_v1  ;;  %v4159_v3 = vmul.f32 0.015625, %v4156_v4 }
 0x571   : > { %7162 = vrsqrt.f32 %v4161_v5  ;;  %v4162_v6 = vadd.f32 1e-05, %v4159_v3 }
 0x573   : > { %7164 = vrsqrt.f32 %v4162_v6 }
 0x57e   : > { %v7163_v39 = vpop.eup %7162 }
 0x57f   : > { %v4167_v7 = vmul.f32 %v7163_v39, %v4143_v54 }
 0x580   : > { %v7165_v8 = vpop.eup %7164 }
 0x581   : > { %v4176_v9 = vmul.f32 %v6625_v59, %v4167_v7  ;;  %v4168_v10 = vmul.f32 %v7165_v8, %v4144_v24 }
 0x583   : > { %v4185_v11 = vadd.f32 %v6626_v61, %v4176_v9  ;;  %v4177_v12 = vmul.f32 %v6625_v59, %v4168_v10 }
 0x585   : > { %4188 = vst.msk [vmem:[#allocation2 + $0x8] sm:$0xff] %vm4065_vm0, %v4185_v11  ;;  %v4186_v13 = vadd.f32 %v6626_v61, %v4177_v12 }
 0x587   : > { %4189 = vst.msk [vmem:[#allocation2 + $0x10] sm:$0xff] %vm4065_vm0, %v4186_v13 }
 0x588 PF: > { %v4190_v14 = vld [vmem:[#allocation2] sm:$0xff]  ;;  %vm4195_vm2 = vcmask 523264   ;;  %v7181_v42 = vld [vmem:[%s8556_s27 + $0x34] ss:$8 sps:$4 sm:$0xff]   ;;  %v7183_v43 = vld [vmem:[%s8556_s27 + $0x30] ss:$8 sps:$4 sm:$0xff]   ;;  %v4266_v6 = vlaneseq }
 0x589   : > { %v4196_v18 = vsel %vm4195_vm2, %v4190_v14, 0.0  ;;  %v7184_v45 = vld [vmem:[%s8556_s27 + $0x24] ss:$8 sps:$4 sm:$0xff]   ;;  %4330 = vmatprep.subr.bf16.mxu1 %v7181_v42  ;;  %v7186_v46 = vld [vmem:[%s8556_s27 + $0x20] ss:$8 sps:$4 sm:$0xff]   ;;  %v8019_v2 = vmov 0  }
 0x58a   : > { %4197 = vadd.xlane.f32.xlu0 %v4196_v18  ;;  %4331 = vmatpush1.bf16.msra.mxu1 %v7183_v43  ;;  %v7187_v47 = vld [vmem:[%s8556_s27 + $0x14] ss:$8 sps:$4 sm:$0xff]   ;;  %v7189_v48 = vld [vmem:[%s8556_s27 + $0x10] ss:$8 sps:$4 sm:$0xff]   ;;  %v7190_v49 = vld [vmem:[%s8556_s27 + $0x4] ss:$8 sps:$4 sm:$0xff]  }
 0x58b   : > { %4354 = vmatprep.mubr.bf16.mxu1 %v8019_v2  ;;  %4332 = vmatprep.subr.bf16.mxu1 %v7184_v45  ;;  %v7192_v50 = vld [vmem:[%s8556_s27] ss:$8 sps:$4 sm:$0xff]   ;;  %v6627_v55 = vld [vmem:[%s1005_s16] ss:$0 sm:$0xff]  ;;  %v8757_v39 = vshrl.u32 %v4266_v6, 7  ;;  %vm4390_vm3 = vcmask 130048  }
 0x58c   : > { %v4191_v17 = vld [vmem:[#allocation2 + $0x8] sm:$0xff]  ;;  %v6628_v60 = vld [vmem:[%s1013_s0] ss:$0 sm:$0xff]  ;;  %v4264_v8 = vld [vmem:[%s8564_s4] sm:$0x3]  ;;  %s8020_s16 = smov 48  }
 0x58d   : > { %v4199_v22 = vsel %vm4195_vm2, %v4191_v17, 0.0  ;;  %v4268_v7 = vsub.s32 0, %v8757_v39  ;;  %v4272_v9 = vsub.s32 1, %v8757_v39  ;;  %s8021_s0 = smov 64   ;;  %s8022_s27 = smov 112   ;;  %vm4496_vm4 = vcmask 1043456  }
 0x58e   : > { %v4192_v15 = vld [vmem:[#allocation2 + $0x10] sm:$0xff]  ;;  %4200 = vadd.xlane.f32.xlu0 %v4199_v22  ;;  %4333 = vmatpush1.bf16.msra.mxu1 %v7186_v46  ;;  %s8023_s4 = smov 96   ;;  %s8024_s2 = smov 32   ;;  %vm4451_vm5 = vcmask 195584   ;;  %vm5093_vm6 = vcmask 261120   ;;  %vm5097_vm7 = vcmask 392192  }
 0x58f   : > { %v4202_v20 = vsel %vm4195_vm2, %v4192_v15, 0.0  ;;  %4334 = vmatprep.subr.bf16.mxu1 %v7187_v47  ;;  %v4269_v11 = vrot.slane %v4264_v8, %v4268_v7  ;;  %v4273_v13 = vrot.slane %v4264_v8, %v4272_v9  ;;  %s8025_s23 = smov 16   ;;  %s8026_s13 = smov 80  }
 0x590   : > { %4203 = vadd.xlane.f32.xlu1 %v4202_v20 }
 0x592   : > { %4335 = vmatpush1.bf16.msra.mxu1 %v7189_v48 }
 0x593   : > { %4336 = vmatprep.subr.bf16.mxu1 %v7190_v49 }
 0x596   : > { %4337 = vmatpush1.bf16.msra.mxu1 %v7192_v50 }
 0x613   : > { %v4198_v23 = vpop.xlane.xlu0 %4197 }
 0x614   : > { %v4206_v26 = vmul.f32 0.015625, %v4198_v23 }
 0x616   : > { %v4209_v28 = vsub.f32 %v4190_v14, %v4206_v26 }
 0x617   : > { %v4201_v31 = vpop.xlane.xlu0 %4200 }
 0x618   : > { %v4207_v33 = vmul.f32 0.015625, %v4201_v31  ;;  %v4212_v34 = vmul.f32 %v4209_v28, %v4209_v28 }
 0x619   : > { %v4204_v25 = vpop.xlane.xlu1 %4203 }
 0x61a   : > { %v4208_v27 = vmul.f32 0.015625, %v4204_v25  ;;  %v4210_v36 = vsub.f32 %v4191_v17, %v4207_v33  ;;  %v4215_v37 = vsel %vm4195_vm2, %v4212_v34, 0.0 }
 0x61b   : > { %4216 = vadd.xlane.f32.xlu1 %v4215_v37 }
 0x61c   : > { %v4211_v41 = vsub.f32 %v4192_v15, %v4208_v27  ;;  %v4213_v57 = vmul.f32 %v4210_v36, %v4210_v36 }
 0x61e   : > { %v4214_v35 = vmul.f32 %v4211_v41, %v4211_v41  ;;  %v4218_v40 = vsel %vm4195_vm2, %v4213_v57, 0.0 }
 0x61f   : > { %4219 = vadd.xlane.f32.xlu0 %v4218_v40 }
 0x620   : > { %v4221_v38 = vsel %vm4195_vm2, %v4214_v35, 0.0 }
 0x621   : > { %4222 = vadd.xlane.f32.xlu1 %v4221_v38 }
 0x6a4   : > { %v4217_v16 = vpop.xlane.xlu1 %4216 }
 0x6a5   : > { %v4224_v19 = vmul.f32 0.015625, %v4217_v16 }
 0x6a7   : > { %v4227_v52 = vadd.f32 1e-05, %v4224_v19 }
 0x6a8   : > { %v4220_v54 = vpop.xlane.xlu0 %4219 }
 0x6a9   : > { %7225 = vrsqrt.f32 %v4227_v52  ;;  %v4225_v24 = vmul.f32 0.015625, %v4220_v54 }
 0x6aa   : > { %v4223_v53 = vpop.xlane.xlu1 %4222 }
 0x6ab   : > { %v4226_v21 = vmul.f32 0.015625, %v4223_v53  ;;  %v4228_v51 = vadd.f32 1e-05, %v4225_v24  ;;  %v8818_v24 = vld [vmem:[#allocation11] ss:$0 sm:$0xff] }
 0x6ad   : > { %v4229_v32 = vadd.f32 1e-05, %v4226_v21 }
 0x6af   : > { %7227 = vrsqrt.f32 %v4229_v32 }
 0x6b0   : > { %7229 = vrsqrt.f32 %v4228_v51 }
 0x6b6   : > { %v7226_v44 = vpop.eup %7225 }
 0x6b7   : > { %v4233_v29 = vmul.f32 %v7226_v44, %v4209_v28 }
 0x6b9   : > { %v4242_v59 = vmul.f32 %v6627_v55, %v4233_v29 }
 0x6bb   : > { %v4251_v63 = vadd.f32 %v6628_v60, %v4242_v59 }
 0x6bc   : > { %v7228_v30 = vpop.eup %7227 }
 0x6bd   : > { %v7230_v56 = vpop.eup %7229  ;;  %v4235_v62 = vmul.f32 %v7228_v30, %v4211_v41 }
 0x6be   : > { %v4234_v58 = vmul.f32 %v7230_v56, %v4210_v36 }
 0x6bf   : > { %v4244_v4 = vmul.f32 %v6627_v55, %v4235_v62 }
 0x6c0   : > { %v4243_v61 = vmul.f32 %v6627_v55, %v4234_v58 }
 0x6c1   : > { %v4253_v5 = vadd.f32 %v6628_v60, %v4244_v4 }
 0x6c2   : > { %v4252_v0 = vadd.f32 %v6628_v60, %v4243_v61 }
 0x6c3   : > { %v4255_v3 = vpack.c.bf16 %v4253_v5, %v4253_v5 }
 0x6c4   : > { %v4254_v1 = vpack.c.bf16 %v4252_v0, %v4251_v63 }
 0x6c6   : > { %6637 = vmatmul.mubr.msk.bf16.vlgmr.msra.gmra.mxu1 %vm4195_vm2, %v4254_v1 }
 0x6c7   : > { %4364 = vmatprep.mubr.bf16.mxu1 %v8019_v2 }
 0x6ce   : > { %6638 = vmatmul.mubr.msk.bf16.gmra.mxu1 %vm4195_vm2, %v4255_v3 }
 0x786   : > { %v4356_v10 = vpop.f32.mrf.mxu1 }
 0x787   : > { %v4357_v15 = vadd.f32 %v4356_v10, %v4269_v11 }
 0x788   : > { %v4358_v12 = vpop.f32.mrf.mxu1 }
 0x789   : > { %v4359_v20 = vadd.f32 %v4358_v12, %v4273_v13 }
 0x78a   : > { %v4360_v14 = vpop.f32.mrf.mxu1 }
 0x78b   : > { %v4361_v17 = vadd.f32 %v4360_v14, %v4269_v11 }
 0x78c   : > { %v4362_v18 = vpop.f32.mrf.mxu1 }
 0x78d   : > { %v8766_v22 = vpack.c.bf16 %v4361_v17, %v4357_v15  ;;  %v4363_v23 = vadd.f32 %v4362_v18, %v4273_v13 }
 0x78e   : > { %v4366_v25 = vpop.f32.mrf.mxu1 }
 0x78f   : > { %v8768_v26 = vpack.c.bf16 %v4363_v23, %v4359_v20  ;;  %v4367_v27 = vadd.f32 %v4366_v25, %v4269_v11  ;;  %6794 = vmatprep.mubr.msk.bf16.mxu1 %vm4390_vm3, %v8766_v22 }
 0x790   : > { %v4368_v28 = vpop.f32.mrf.mxu1 }
 0x791   : > { %v8772_v41 = vpack.c.bf16 %v4367_v27, %v4367_v27  ;;  %v4369_v40 = vadd.f32 %v4368_v28, %v4273_v13 }
 0x792   : > { %v4370_v31 = vpop.f32.mrf.mxu1 }
 0x793   : > { %4554 = vrot.lane.b32.xlu1 %v8772_v41, %s8020_s16  ;;  %4388 = vrot.lane.b32.xlu0 %v8772_v41, %s8021_s0  ;;  %v8798_v43 = vpack.c.bf16 %v4369_v40, %v4369_v40 }
 0x794   : > { %v4371_v33 = vpop.f32.mrf.mxu1 }
 0x795   : > { %v4498_v50 = vsel %vm4496_vm4, %v8798_v43, 0 }
 0x797   : > { %4548 = vrot.lane.b32.xlu0 %v8766_v22, %s8022_s27  ;;  %4386 = vrot.lane.b32.xlu1 %v8766_v22, %s8021_s0 }
 0x79b   : > { %4550 = vrot.lane.b32.xlu0 %v8772_v41, %s8022_s27  ;;  %4552 = vrot.lane.b32.xlu1 %v8766_v22, %s8020_s16 }
 0x79f   : > { %4718 = vrot.lane.b32.xlu0 %v8766_v22, %s8023_s4  ;;  %4724 = vrot.lane.b32.xlu1 %v8772_v41, %s8024_s2 }
 0x7a3   : > { %4722 = vrot.lane.b32.xlu1 %v8766_v22, %s8024_s2 }
 0x7a7   : > { %4720 = vrot.lane.b32.xlu1 %v8772_v41, %s8023_s4 }
 0x805   : > { %v4555_v34 = vpop.permute.xlu1 %4554  ;;  %v4389_v35 = vpop.permute.xlu0 %4388 }
 0x806   : > { %v4401_v36 = vsel %vm4390_vm3, %v4389_v35, 0  ;;  %6896 = vmatprep.subr.msk.bf16.mxu1 %vm4390_vm3, %v4389_v35  ;;  %6899 = vmatprep.subr.msk.bf16.mxu0 %vm4390_vm3, %v4555_v34  ;;  %v4566_v37 = vsel %vm4390_vm3, %v4555_v34, 0 }
 0x807   : > { %6791 = vmatpush3.bf16.xpose.msra.mxu1 %v4401_v36  ;;  %6807 = vmatpush3.bf16.xpose.msra.mxu0 %v4566_v37 }
 0x809   : > { %v4549_v38 = vpop.permute.xlu0 %4548  ;;  %v4387_v57 = vpop.permute.xlu1 %4386 }
 0x80a   : > { %6897 = vmatprep.subr.msk.bf16.mxu1 %vm4390_vm3, %v4387_v57  ;;  %6810 = vmatprep.mubr.msk.bf16.mxu0 %vm4390_vm3, %v4549_v38  ;;  %v4398_v45 = vsel %vm4390_vm3, %v4387_v57, 0 }
 0x80d   : > { %v4553_v42 = vpop.permute.xlu1 %4552  ;;  %v4551_v47 = vpop.permute.xlu0 %4550 }
 0x80e   : > { %6900 = vmatprep.subr.msk.bf16.mxu0 %vm4390_vm3, %v4553_v42  ;;  %v4563_v46 = vsel %vm4390_vm3, %v4553_v42, 0 }
 0x80f   : > { %6793 = vmatpush3.bf16.xpose.msra.mxu1 %v4398_v45  ;;  %6809 = vmatpush3.bf16.xpose.msra.mxu0 %v4563_v46 }
 0x810   : > { %6898 = vmatprep.subr.msk.bf16.mxu1 %vm4496_vm4, %v8798_v43 }
 0x811   : > { %v4725_v48 = vpop.permute.xlu1 %4724  ;;  %v4719_v16 = vpop.permute.xlu0 %4718 }
 0x812   : > { %6902 = vmatprep.subr.msk.bf16.mxu0 %vm4390_vm3, %v4725_v48  ;;  %v4736_v49 = vsel %vm4390_vm3, %v4725_v48, 0 }
 0x815   : > { %v4723_v19 = vpop.permute.xlu1 %4722 }
 0x816   : > { %6795 = vmatmul.mubr.msk.bf16.vlgmr.msra.gmra.mxu1 %vm4390_vm3, %v8772_v41  ;;  %6811 = vmatmul.mubr.msk.bf16.vlgmr.msra.gmra.mxu0 %vm4390_vm3, %v4551_v47  ;;  %v4733_v52 = vsel %vm4390_vm3, %v4723_v19, 0 }
 0x817   : > { %6799 = vmatpush3.bf16.msra.mxu1 %v4498_v50  ;;  %6823 = vmatpush3.bf16.xpose.msra.mxu0 %v4736_v49 }
 0x818   : > { %6826 = vmatprep.mubr.msk.bf16.mxu0 %vm4390_vm3, %v4719_v16  ;;  %6800 = vmatprep.subr.bf16.mxu1 %v8768_v26 }
 0x819   : > { %6903 = vmatprep.subr.msk.bf16.mxu0 %vm4390_vm3, %v4723_v19  ;;  %v4721_v53 = vpop.permute.xlu1 %4720 }
 0x81b   : > { %6801 = vmatpush3.bf16.msra.mxu1 %v8768_v26 }
 0x81f   : > { %6825 = vmatpush3.bf16.xpose.msra.mxu0 %v4733_v52 }
 0x826   : > { %6827 = vmatmul.mubr.msk.bf16.vlgmr.msra.gmra.mxu0 %vm4390_vm3, %v4721_v53 }
 0x8d6   : > { %v6796_v54 = vpop.f32.mrf.mxu1  ;;  %v6812_v21 = vpop.f32.mrf.mxu0 }
 0x8d7   : > { %v4446_v30 = vadd.f32 %v6796_v54, %v8818_v24  ;;  %v4611_v60 = vadd.f32 %v6812_v21, %v8818_v24 }
 0x8d8   : > { %v4437_v32 = vpop.f32.mrf.mxu1  ;;  %v4602_v51 = vpop.f32.mrf.mxu0 }
 0x8d9   : > { %v4438_v44 = vadd.f32 %v8818_v24, %v4437_v32  ;;  %v4603_v61 = vadd.f32 %v8818_v24, %v4602_v51  ;;  %v4458_v63 = vsel %vm4451_vm5, %v4446_v30, -inf  ;;  %v4622_v4 = vsel %vm4451_vm5, %v4611_v60, -inf }
 0x8da   : > { %v6797_v29 = vpop.f32.mrf.mxu1  ;;  %v6813_v55 = vpop.f32.mrf.mxu0 }
 0x8db   : > { %v4452_v56 = vsel %vm4451_vm5, %v4438_v44, -inf  ;;  %v4616_v5 = vsel %vm4451_vm5, %v4603_v61, -inf }
 0x8dc   : > { %v4440_v58 = vpop.f32.mrf.mxu1  ;;  %4453 = vmax.xlane.f32.xlu0 %v4452_v56  ;;  %v4605_v0 = vpop.f32.mrf.mxu0 }
 0x8dd   : > { %v4441_v59 = vadd.f32 %v8818_v24, %v4440_v58  ;;  %v8829_v1 = vadd.f32 %v8818_v24, %v4605_v0 }
 0x8df   : > { %v4455_v62 = vsel %vm4451_vm5, %v4441_v59, -inf  ;;  %v4619_v6 = vsel %vm4451_vm5, %v8829_v1, -inf }
 0x8e0   : > { %4456 = vmax.xlane.f32.xlu1 %v4455_v62  ;;  %4459 = vmax.xlane.f32.xlu0 %v4458_v63 }
 0x8e4   : > { %4623 = vmax.xlane.f32.xlu1 %v4622_v4  ;;  %4617 = vmax.xlane.f32.xlu0 %v4616_v5 }
 0x8e6   : > { %v6828_v3 = vpop.f32.mrf.mxu0 }
 0x8e7   : > { %v4781_v12 = vadd.f32 %v6828_v3, %v8818_v24 }
 0x8e8   : > { %v4772_v8 = vpop.f32.mrf.mxu0  ;;  %4620 = vmax.xlane.f32.xlu0 %v4619_v6 }
 0x8e9   : > { %v4773_v10 = vadd.f32 %v8818_v24, %v4772_v8  ;;  %v4792_v18 = vsel %vm4451_vm5, %v4781_v12, -inf }
 0x8ea   : > { %v6829_v11 = vpop.f32.mrf.mxu0 }
 0x8eb   : > { %v4786_v13 = vsel %vm4451_vm5, %v4773_v10, -inf }
 0x8ec   : > { %v4775_v14 = vpop.f32.mrf.mxu0  ;;  %4787 = vmax.xlane.f32.xlu0 %v4786_v13 }
 0x8ed   : > { %v4776_v15 = vadd.f32 %v8818_v24, %v4775_v14 }
 0x8ef   : > { %v4789_v17 = vsel %vm4451_vm5, %v4776_v15, -inf }
 0x8f0   : > { %4790 = vmax.xlane.f32.xlu1 %v4789_v17  ;;  %4793 = vmax.xlane.f32.xlu0 %v4792_v18 }
 0x965   : > { %v4454_v20 = vpop.xlane.xlu0 %4453 }
 0x966   : > { %v4461_v23 = vsub.f32 %v4438_v44, %v4454_v20 }
 0x968   : > { %v4464_v33 = vmul.f32 1.442695, %v4461_v23 }
 0x969   : > { %v4457_v25 = vpop.xlane.xlu1 %4456  ;;  %v4460_v27 = vpop.xlane.xlu0 %4459 }
 0x96a   : > { %v4463_v28 = vsub.f32 %v4446_v30, %v4460_v27  ;;  %v4462_v38 = vsub.f32 %v4441_v59, %v4457_v25 }
 0x96c   : > { %v4468_v31 = vmul.f32 1.442695, %v4463_v28  ;;  %v4466_v42 = vmul.f32 1.442695, %v4462_v38 }
 0x96d   : > { %v4624_v34 = vpop.xlane.xlu1 %4623  ;;  %v4618_v35 = vpop.xlane.xlu0 %4617 }
 0x96e   : > { %v4627_v36 = vsub.f32 %v4611_v60, %v4624_v34  ;;  %v4625_v37 = vsub.f32 %v4603_v61, %v4618_v35  ;;  %7231 = vpow2.f32 %v4468_v31 }
 0x96f   : > { %7233 = vpow2.f32 %v4464_v33 }
 0x970   : > { %v4632_v57 = vmul.f32 1.442695, %v4627_v36  ;;  %v4628_v40 = vmul.f32 1.442695, %v4625_v37 }
 0x971   : > { %v4621_v54 = vpop.xlane.xlu0 %4620 }
 0x972   : > { %7235 = vpow2.f32 %v4632_v57  ;;  %v4626_v32 = vsub.f32 %v8829_v1, %v4621_v54 }
 0x973   : > { %7237 = vpow2.f32 %v4628_v40 }
 0x974   : > { %7239 = vpow2.f32 %v4466_v42  ;;  %v4630_v55 = vmul.f32 1.442695, %v4626_v32 }
 0x975   : > { %v4788_v21 = vpop.xlane.xlu0 %4787 }
 0x976   : > { %7241 = vpow2.f32 %v4630_v55  ;;  %v4795_v58 = vsub.f32 %v4773_v10, %v4788_v21 }
 0x978   : > { %v4798_v60 = vmul.f32 1.442695, %v4795_v58 }
 0x979   : > { %v4791_v51 = vpop.xlane.xlu1 %4790  ;;  %v4794_v44 = vpop.xlane.xlu0 %4793 }
 0x97a   : > { %v4796_v29 = vsub.f32 %v4776_v15, %v4791_v51  ;;  %v4797_v30 = vsub.f32 %v4781_v12, %v4794_v44 }
 0x97b   : > { %v8841_v45 = vpop.eup %7231 }
 0x97c   : > { %v4476_v46 = vsel %vm4451_vm5, %v8841_v45, 0.0  ;;  %v8845_v47 = vpop.eup %7233  ;;  %v4800_v56 = vmul.f32 1.442695, %v4796_v29  ;;  %v4802_v59 = vmul.f32 1.442695, %v4797_v30 }
 0x97d   : > { %4477 = vadd.xlane.f32.xlu1 %v4476_v46  ;;  %v4470_v16 = vsel %vm4451_vm5, %v8845_v47, 0.0 }
 0x97e   : > { %7243 = vpow2.f32 %v4800_v56 }
 0x97f   : > { %v8847_v48 = vpop.eup %7235  ;;  %7245 = vpow2.f32 %v4802_v59 }
 0x980   : > { %v4640_v49 = vsel %vm4451_vm5, %v8847_v48, 0.0  ;;  %v8851_v50 = vpop.eup %7237  ;;  %7247 = vpow2.f32 %v4798_v60 }
 0x981   : > { %4641 = vadd.xlane.f32.xlu0 %v4640_v49  ;;  %4471 = vadd.xlane.f32.xlu1 %v4470_v16  ;;  %v4634_v19 = vsel %vm4451_vm5, %v8851_v50, 0.0  ;;  %v7240_v52 = vpop.eup %7239 }
 0x982   : > { %v4473_v53 = vsel %vm4451_vm5, %v7240_v52, 0.0 }
 0x983   : > { %v7242_v61 = vpop.eup %7241 }
 0x984   : > { %v4637_v63 = vsel %vm4451_vm5, %v7242_v61, 0.0 }
 0x985   : > { %4635 = vadd.xlane.f32.xlu0 %v4634_v19 }
 0x989   : > { %4474 = vadd.xlane.f32.xlu0 %v4473_v53 }
 0x98b   : > { %v8865_v62 = vpop.eup %7243 }
 0x98c   : > { %v8868_v0 = vpop.eup %7245  ;;  %v4807_v1 = vsel %vm4451_vm5, %v8865_v62, 0.0 }
 0x98d   : > { %v4810_v4 = vsel %vm4451_vm5, %v8868_v0, 0.0  ;;  %v8874_v5 = vpop.eup %7247 }
 0x98e   : > { %v4804_v3 = vsel %vm4451_vm5, %v8874_v5, 0.0 }
 0x992   : > { %4656 = vrot.lane.b32.xlu1 %v8768_v26, %s8022_s27 }
 0x996   : > { %4826 = vrot.lane.b32.xlu1 %v8798_v43, %s8023_s4 }
 0x99f   : > { %4658 = vrot.lane.b32.xlu0 %v8798_v43, %s8022_s27 }
 0x9ba   : > { %4638 = vadd.xlane.f32.xlu1 %v4637_v63 }
 0x9be   : > { %4808 = vadd.xlane.f32.xlu0 %v4807_v1  ;;  %4811 = vadd.xlane.f32.xlu1 %v4810_v4 }
 0x9c2   : > { %4805 = vadd.xlane.f32.xlu1 %v4804_v3 }
 0x9d3   : > { %4824 = vrot.lane.b32.xlu1 %v8768_v26, %s8023_s4 }
 0x9d4   : > { %4892 = vrot.lane.b32.xlu0 %v8772_v41, %s8025_s23 }
 0x9d7   : > { %4890 = vrot.lane.b32.xlu1 %v8766_v22, %s8025_s23 }
 0x9d8   : > { %4886 = vrot.lane.b32.xlu0 %v8766_v22, %s8026_s13 }
 0x9db   : > { %4888 = vrot.lane.b32.xlu1 %v8772_v41, %s8026_s13 }
 0xa06   : > { %v4478_v6 = vpop.xlane.xlu1 %4477 }
 0xa07   : > { %7249 = vrcp.f32 %v4478_v6 }
 0xa0a   : > { %v4642_v8 = vpop.xlane.xlu0 %4641  ;;  %v4472_v10 = vpop.xlane.xlu1 %4471 }
 0xa0b   : > { %7251 = vrcp.f32 %v4472_v10 }
 0xa0e   : > { %v4636_v11 = vpop.xlane.xlu0 %4635  ;;  %v4657_v25 = vpop.permute.xlu1 %4656 }
 0xa12   : > { %v4475_v12 = vpop.xlane.xlu0 %4474  ;;  %v4827_v28 = vpop.permute.xlu1 %4826 }
 0xa13   : > { %7253 = vrcp.f32 %v4475_v12  ;;  %v4836_v16 = vsel %vm4496_vm4, %v4827_v28, 0 }
 0xa14   : > { %v7250_v14 = vpop.eup %7249  ;;  %7255 = vrcp.f32 %v4642_v8 }
 0xa15   : > { %v4487_v18 = vmul.f32 %v7250_v14, %v8841_v45  ;;  %7257 = vrcp.f32 %v4636_v11 }
 0xa16   : > { %v4659_v13 = vpop.permute.xlu0 %4658 }
 0xa17   : > { %6901 = vmatprep.subr.msk.bf16.mxu1 %vm4496_vm4, %v4659_v13  ;;  %v4489_v23 = vpack.c.bf16 %v4487_v18, %v4487_v18  ;;  %v4668_v27 = vsel %vm4496_vm4, %v4659_v13, 0 }
 0xa18   : > { %v7252_v15 = vpop.eup %7251 }
 0xa19   : > { %v4485_v22 = vmul.f32 %v7252_v15, %v8845_v47 }
 0xa20   : > { %v7254_v17 = vpop.eup %7253 }
 0xa21   : > { %v4486_v20 = vmul.f32 %v7254_v17, %v7240_v52  ;;  %v7256_v36 = vpop.eup %7255 }
 0xa22   : > { %v7258_v37 = vpop.eup %7257  ;;  %v4651_v57 = vmul.f32 %v7256_v36, %v8847_v48 }
 0xa23   : > { %v4488_v41 = vpack.c.bf16 %v4486_v20, %v4485_v22  ;;  %v4649_v40 = vmul.f32 %v7258_v37, %v8851_v50 }
 0xa24   : > { %v4653_v46 = vpack.c.bf16 %v4651_v57, %v4651_v57 }
 0xa25   : > { %6802 = vmatprep.mubr.msk.bf16.mxu1 %vm4451_vm5, %v4488_v41 }
 0xa26   : > { %6803 = vmatmul.mubr.msk.bf16.vlgmr.msra.gmra.mxu1 %vm4451_vm5, %v4489_v23 }
 0xa27   : > { %6815 = vmatpush3.bf16.msra.mxu1 %v4668_v27 }
 0xa28   : > { %6816 = vmatprep.subr.bf16.mxu1 %v4657_v25 }
 0xa2b   : > { %6817 = vmatpush3.bf16.msra.mxu1 %v4657_v25 }
 0xa2c   : > { %6904 = vmatprep.subr.msk.bf16.mxu1 %vm4496_vm4, %v4827_v28 }
 0xa43   : > { %v4639_v31 = vpop.xlane.xlu1 %4638 }
 0xa44   : > { %7259 = vrcp.f32 %v4639_v31 }
 0xa47   : > { %v4812_v33 = vpop.xlane.xlu1 %4811  ;;  %v4809_v34 = vpop.xlane.xlu0 %4808 }
 0xa48   : > { %7261 = vrcp.f32 %v4812_v33 }
 0xa49   : > { %7263 = vrcp.f32 %v4809_v34 }
 0xa4b   : > { %v4806_v35 = vpop.xlane.xlu1 %4805  ;;  %v4893_v53 = vpop.permute.xlu0 %4892 }
 0xa4c   : > { %7265 = vrcp.f32 %v4806_v35  ;;  %v4904_v51 = vsel %vm4390_vm3, %v4893_v53, 0 }
 0xa4f   : > { %v4825_v19 = vpop.permute.xlu1 %4824  ;;  %v4887_v44 = vpop.permute.xlu0 %4886 }
 0xa51   : > { %v7260_v38 = vpop.eup %7259 }
 0xa52   : > { %v4650_v42 = vmul.f32 %v7260_v38, %v7242_v61 }
 0xa53   : > { %v4891_v29 = vpop.permute.xlu1 %4890 }
 0xa54   : > { %v4652_v45 = vpack.c.bf16 %v4650_v42, %v4649_v40  ;;  %v4901_v55 = vsel %vm4390_vm3, %v4891_v29, 0 }
 0xa55   : > { %v7262_v47 = vpop.eup %7261 }
 0xa56   : > { %6818 = vmatprep.mubr.msk.bf16.mxu1 %vm4451_vm5, %v4652_v45  ;;  %v7264_v49 = vpop.eup %7263  ;;  %v4821_v48 = vmul.f32 %v7262_v47, %v8868_v0 }
 0xa57   : > { %6819 = vmatmul.mubr.msk.bf16.vlgmr.msra.gmra.mxu1 %vm4451_vm5, %v4653_v46  ;;  %v4820_v54 = vmul.f32 %v7264_v49, %v8865_v62  ;;  %v4889_v30 = vpop.permute.xlu1 %4888 }
 0xa58   : > { %6831 = vmatpush3.bf16.msra.mxu1 %v4836_v16  ;;  %v4823_v32 = vpack.c.bf16 %v4821_v48, %v4821_v48 }
 0xa59   : > { %v7266_v52 = vpop.eup %7265  ;;  %6832 = vmatprep.subr.bf16.mxu1 %v4825_v19 }
 0xa5a   : > { %v4819_v50 = vmul.f32 %v7266_v52, %v8874_v5 }
 0xa5c   : > { %6833 = vmatpush3.bf16.msra.mxu1 %v4825_v19  ;;  %v4822_v21 = vpack.c.bf16 %v4820_v54, %v4819_v50 }
 0xa5d   : > { %6905 = vmatprep.subr.msk.bf16.mxu1 %vm4390_vm3, %v4893_v53 }
 0xa5e   : > { %6834 = vmatprep.mubr.msk.bf16.mxu1 %vm4451_vm5, %v4822_v21  ;;  %v7193_v21 = vld [vmem:[%s8567_s9 + $0x18] sm:$0xff]  }
 0xa5f   : > { %6835 = vmatmul.mubr.msk.bf16.vlgmr.msra.gmra.mxu1 %vm4451_vm5, %v4823_v32  ;;  %v7194_v32 = vld [vmem:[%s8567_s9 + $0x10] sm:$0xff]  }
 0xa60   : > { %6839 = vmatpush3.bf16.xpose.msra.mxu1 %v4904_v51  ;;  %6842 = vmatprep.mubr.msk.bf16.mxu1 %vm4390_vm3, %v4887_v44  ;;  %v7195_v51 = vld [vmem:[%s8567_s9 + $0x8] sm:$0xff]   ;;  %v7196_v44 = vld [vmem:[%s8567_s9] sm:$0xff]   ;;  %s9265_s9 = scalar_lea.vmem [#allocation27], %s8545_s15  ;;  %s9266_s15 = sld [smem:[#allocation49_spill]] }
 0xa61   : > { %6906 = vmatprep.subr.msk.bf16.mxu1 %vm4390_vm3, %v4891_v29 }
 0xa66   : > { %p6698_p6 = scmp.ne.s32.totalorder %s9266_s15, 1 }
 0xa68   : > { %6841 = vmatpush3.bf16.xpose.msra.mxu1 %v4901_v55 }
 0xa6f   : > { %6843 = vmatmul.mubr.msk.bf16.vlgmr.msra.gmra.mxu1 %vm4390_vm3, %v4889_v30 }
 0xa70   : > { %5358 = vmatprep.mubr.bf16.mxu1 %v8019_v2 }
 0xae6   : > { %v8912_v56 = vpop.f32.mrf.mxu1 }
 0xae8   : > { %v8914_v58 = vpop.f32.mrf.mxu1 }
 0xaea   : > { %v6805_v59 = vpop.f32.mrf.mxu1 }
 0xaec   : > { %v8916_v60 = vpop.f32.mrf.mxu1 }
 0xb17   : > { %v6820_v61 = vpop.f32.mrf.mxu1 }
 0xb19   : > { %v4704_v62 = vpop.f32.mrf.mxu1 }
 0xb1b   : > { %v6821_v63 = vpop.f32.mrf.mxu1 }
 0xb1d   : > { %v4707_v0 = vpop.f32.mrf.mxu1 }
 0xb1e   : > { %v7166_v1 = vpack.i.bf16 %v4707_v0, %v4704_v62 }
 0xb1f   : > { %v6836_v4 = vpop.f32.mrf.mxu1 }
 0xb21   : > { %v4872_v5 = vpop.f32.mrf.mxu1 }
 0xb23   : > { %v6837_v3 = vpop.f32.mrf.mxu1 }
 0xb25   : > { %v4875_v6 = vpop.f32.mrf.mxu1 }
 0xb26   : > { %v7171_v8 = vpack.i.bf16 %v4875_v6, %v4872_v5 }
 0xb2f   : > { %v6844_v10 = vpop.f32.mrf.mxu1 }
 0xb30   : > { %v4949_v14 = vadd.f32 %v6844_v10, %v8818_v24 }
 0xb31   : > { %v4940_v11 = vpop.f32.mrf.mxu1 }
 0xb32   : > { %v4941_v12 = vadd.f32 %v8818_v24, %v4940_v11  ;;  %v4960_v20 = vsel %vm4451_vm5, %v4949_v14, -inf }
 0xb33   : > { %v6845_v13 = vpop.f32.mrf.mxu1 }
 0xb34   : > { %v4954_v15 = vsel %vm4451_vm5, %v4941_v12, -inf }
 0xb35   : > { %v4943_v17 = vpop.f32.mrf.mxu1  ;;  %4955 = vmax.xlane.f32.xlu0 %v4954_v15 }
 0xb36   : > { %v4944_v18 = vadd.f32 %v8818_v24, %v4943_v17 }
 0xb38   : > { %v4957_v22 = vsel %vm4451_vm5, %v4944_v18, -inf }
 0xb39   : > { %4958 = vmax.xlane.f32.xlu1 %v4957_v22  ;;  %4961 = vmax.xlane.f32.xlu0 %v4960_v20 }
 0xbbe   : > { %v4956_v41 = vpop.xlane.xlu0 %4955 }
 0xbbf   : > { %v4963_v23 = vsub.f32 %v4941_v12, %v4956_v41 }
 0xbc1   : > { %v4966_v25 = vmul.f32 1.442695, %v4963_v23 }
 0xbc2   : > { %v4959_v27 = vpop.xlane.xlu1 %4958  ;;  %v4962_v28 = vpop.xlane.xlu0 %4961 }
 0xbc3   : > { %7267 = vpow2.f32 %v4966_v25  ;;  %v4964_v31 = vsub.f32 %v4944_v18, %v4959_v27  ;;  %v4965_v33 = vsub.f32 %v4949_v14, %v4962_v28 }
 0xbc5   : > { %v4968_v34 = vmul.f32 1.442695, %v4964_v31  ;;  %v4970_v35 = vmul.f32 1.442695, %v4965_v33 }
 0xbc7   : > { %7269 = vpow2.f32 %v4968_v34  ;;  %v7309_v34 = vld [vmem:[#allocation2] sm:$0xff] }
 0xbc8   : > { %7271 = vpow2.f32 %v4970_v35 }
 0xbd0   : > { %v7268_v36 = vpop.eup %7267 }
 0xbd1   : > { %v4972_v24 = vsel %vm4451_vm5, %v7268_v36, 0.0 }
 0xbd2   : > { %4973 = vadd.xlane.f32.xlu0 %v4972_v24  ;;  %v7310_v24 = vld [vmem:[#allocation2 + $0x10] sm:$0xff] }
 0xbd4   : > { %v7270_v37 = vpop.eup %7269 }
 0xbd5   : > { %v7272_v38 = vpop.eup %7271  ;;  %v4975_v57 = vsel %vm4451_vm5, %v7270_v37, 0.0 }
 0xbd6   : > { %4976 = vadd.xlane.f32.xlu0 %v4975_v57  ;;  %v4978_v40 = vsel %vm4451_vm5, %v7272_v38, 0.0 }
 0xbd7   : > { %4979 = vadd.xlane.f32.xlu1 %v4978_v40  ;;  %v7311_v40 = vld [vmem:[#allocation2 + $0x8] sm:$0xff] }
 0xbe8   : > { %4992 = vrot.lane.b32.xlu1 %v8768_v26, %s8026_s13 }
 0xbec   : > { %7167 = vrot.lane.b32.xlu1 %v7166_v1, %s8025_s23  ;;  %4994 = vrot.lane.b32.xlu0 %v8798_v43, %s8026_s13 }
 0xbf0   : > { %5061 = vrot.lane.b32.xlu1 %v6820_v61, %s8025_s23  ;;  %7172 = vrot.lane.b32.xlu0 %v7171_v8, %s8024_s2 }
 0xbf4   : > { %5073 = vrot.lane.b32.xlu1 %v6836_v4, %s8024_s2  ;;  %s9268_s2 = sld [smem:[#allocation80_spill]] (!%p6698_p6) }
 0xbfa   : > { %s9269_s23 = smov (!%p6698_p6), %s9268_s2 }
 0xc5b   : > { %v4974_v42 = vpop.xlane.xlu0 %4973 }
 0xc5c   : > { %7273 = vrcp.f32 %v4974_v42 }
 0xc5f   : > { %v4977_v45 = vpop.xlane.xlu0 %4976 }
 0xc60   : > { %v4980_v46 = vpop.xlane.xlu1 %4979  ;;  %7275 = vrcp.f32 %v4977_v45 }
 0xc61   : > { %7277 = vrcp.f32 %v4980_v46 }
 0xc63   : > { %v4995_v47 = vpop.permute.xlu0 %4994 }
 0xc64   : > { %v5004_v26 = vsel %vm4496_vm4, %v4995_v47, 0  ;;  %6907 = vmatprep.subr.msk.bf16.mxu0 %vm4496_vm4, %v4995_v47  ;;  %v4993_v49 = vpop.permute.xlu1 %4992 }
 0xc65   : > { %6847 = vmatpush3.bf16.msra.mxu0 %v5004_v26 }
 0xc66   : > { %6848 = vmatprep.subr.bf16.mxu0 %v4993_v49 }
 0xc67   : > { %v7173_v4 = vpop.permute.xlu0 %7172 }
 0xc68   : > { %v7168_v62 = vpop.permute.xlu1 %7167  ;;  %v7175_v3 = vunpack.i.h.bf16 %v7173_v4  ;;  %v7174_v6 = vunpack.i.l.bf16 %v7173_v4 }
 0xc69   : > { %6849 = vmatpush3.bf16.msra.mxu0 %v4993_v49  ;;  %v7274_v43 = vpop.eup %7273  ;;  %v7170_v0 = vunpack.i.h.bf16 %v7168_v62  ;;  %v7169_v1 = vunpack.i.l.bf16 %v7168_v62  ;;  %v7203_v62 = vld [vmem:[%s8582_s20 + $0x10] ss:$8 sps:$4 sm:$0xff]  }
 0xc6a   : > { %v4987_v52 = vmul.f32 %v7274_v43, %v7268_v36  ;;  %6854 = vmatprep.subr.bf16.mxu0 %v7193_v21 }
 0xc6b   : > { %v5091_v8 = vsel %vm4390_vm3, %v8916_v60, %v7170_v0  ;;  %v5090_v10 = vsel %vm4390_vm3, %v8914_v58, %v7169_v1  ;;  %v7206_v0 = vld [vmem:[%s8582_s20] ss:$8 sps:$4 sm:$0xff]  }
 0xc6c   : > { %v5062_v63 = vpop.permute.xlu1 %5061  ;;  %v5094_v18 = vsel %vm5093_vm6, %v5090_v10, %v7174_v6  ;;  %v5095_v22 = vsel %vm5093_vm6, %v5091_v8, %v7175_v3 }
 0xc6d   : > { %v7276_v16 = vpop.eup %7275  ;;  %v5092_v12 = vsel %vm4390_vm3, %v8912_v56, %v5062_v63  ;;  %v6656_v56 = vld [vmem:[%s1048_s10] ss:$0 sm:$0xff]  ;;  %v7208_v63 = vld [vmem:[%s8582_s20 + $0x4] ss:$8 sps:$4 sm:$0xff]  }
 0xc6e   : > { %v7278_v19 = vpop.eup %7277  ;;  %v4988_v53 = vmul.f32 %v7276_v16, %v7270_v37 }
 0xc6f   : > { %v4989_v48 = vmul.f32 %v7278_v19, %v7272_v38 }
 0xc70   : > { %v4990_v50 = vpack.c.bf16 %v4988_v53, %v4987_v52  ;;  %v5074_v5 = vpop.permute.xlu1 %5073 }
 0xc71   : > { %v4991_v54 = vpack.c.bf16 %v4989_v48, %v4989_v48  ;;  %v5096_v14 = vsel %vm5093_vm6, %v5092_v12, %v5074_v5 }
 0xc72   : > { %6850 = vmatprep.mubr.msk.bf16.mxu0 %vm4451_vm5, %v4990_v50 }
 0xc73   : > { %6851 = vmatmul.mubr.msk.bf16.vlgmr.msra.gmra.mxu0 %vm4451_vm5, %v4991_v54 }
 0xc74   : > { %6855 = vmatpush3.bf16.msra.mxu0 %v7193_v21 }
 0xc75   : > { %6856 = vmatprep.subr.bf16.mxu0 %v7194_v32 }
 0xc78   : > { %6857 = vmatpush3.bf16.msra.mxu0 %v7194_v32 }
 0xc79   : > { %6858 = vmatprep.subr.bf16.mxu0 %v7195_v51 }
 0xc7c   : > { %6859 = vmatpush3.bf16.msra.mxu0 %v7195_v51 }
 0xc7d   : > { %6860 = vmatprep.subr.bf16.mxu0 %v7196_v44 }
 0xc80   : > { %6861 = vmatpush3.bf16.msra.mxu0 %v7196_v44 }
 0xd33   : > { %v6852_v29 = vpop.f32.mrf.mxu0 }
 0xd34   : > { %5085 = vrot.lane.b32.xlu1 %v6852_v29, %s8020_s16  ;;  %v7199_v29 = vld [vmem:[%s8582_s20 + $0x34] ss:$8 sps:$4 sm:$0xff]  }
 0xd35   : > { %v5040_v55 = vpop.f32.mrf.mxu0  ;;  %5334 = vmatprep.subr.bf16.mxu1 %v7199_v29 }
 0xd37   : > { %v6853_v30 = vpop.f32.mrf.mxu0 }
 0xd38   : > { %v7202_v30 = vld [vmem:[%s8582_s20 + $0x24] ss:$8 sps:$4 sm:$0xff]  }
 0xd39   : > { %v5043_v59 = vpop.f32.mrf.mxu0 }
 0xd3a   : > { %v7176_v61 = vpack.i.bf16 %v5043_v59, %v5040_v55  ;;  %v7197_v55 = vld [vmem:[%s8582_s20 + $0x30] ss:$8 sps:$4 sm:$0xff]   ;;  %v7200_v59 = vld [vmem:[%s8582_s20 + $0x20] ss:$8 sps:$4 sm:$0xff]  }
 0xd3b   : > { %5335 = vmatpush1.bf16.msra.mxu1 %v7197_v55 }
 0xd3c   : > { %7177 = vrot.lane.b32.xlu0 %v7176_v61, %s8020_s16  ;;  %5336 = vmatprep.subr.bf16.mxu1 %v7202_v30  ;;  %v7205_v61 = vld [vmem:[%s8582_s20 + $0x14] ss:$8 sps:$4 sm:$0xff]  }
 0xd3f   : > { %5337 = vmatpush1.bf16.msra.mxu1 %v7200_v59 }
 0xd40   : > { %5338 = vmatprep.subr.bf16.mxu1 %v7205_v61 }
 0xd43   : > { %5339 = vmatpush1.bf16.msra.mxu1 %v7203_v62 }
 0xd44   : > { %5340 = vmatprep.subr.bf16.mxu1 %v7208_v63 }
 0xd47   : > { %5341 = vmatpush1.bf16.msra.mxu1 %v7206_v0 }
 0xda6   : > { %v5086_v11 = vpop.permute.xlu1 %5085 }
 0xda7   : > { %v5100_v60 = vsel %vm5097_vm7, %v5096_v14, %v5086_v11 }
 0xda8   : > { %v5102_v23 = vpack.c.bf16 %v5100_v60, %v5100_v60 }
 0xdae   : > { %v7178_v13 = vpop.permute.xlu0 %7177 }
 0xdaf   : > { %v7180_v15 = vunpack.i.h.bf16 %v7178_v13  ;;  %v7179_v17 = vunpack.i.l.bf16 %v7178_v13 }
 0xdb1   : > { %v5098_v20 = vsel %vm5097_vm7, %v5094_v18, %v7179_v17  ;;  %v5099_v41 = vsel %vm5097_vm7, %v5095_v22, %v7180_v15  ;;  %v6663_v15 = vld [vmem:[%s1056_s7] ss:$0 sm:$0xff] }
 0xdb2   : > { %v5101_v58 = vpack.c.bf16 %v5099_v41, %v5098_v20  ;;  %v6664_v20 = vld [vmem:[%s1064_s28] ss:$0 sm:$0xff]  ;;  %s9267_s28 = sld [smem:[#allocation79_spill]] (!%p6698_p6) }
 0xdb4   : > { %6862 = vmatprep.mubr.msk.bf16.mxu0 %vm4195_vm2, %v5101_v58 }
 0xdb5   : > { %6863 = vmatmul.mubr.msk.bf16.vlgmr.msra.gmra.mxu0 %vm4195_vm2, %v5102_v23 }
 0xe75   : > { %v6864_v25 = vpop.f32.mrf.mxu0 }
 0xe76   : > { %v5191_v28 = vadd.f32 %v6864_v25, %v6656_v56 }
 0xe77   : > { %v5182_v27 = vpop.f32.mrf.mxu0 }
 0xe78   : > { %v5183_v31 = vadd.f32 %v6656_v56, %v5182_v27  ;;  %v8960_v37 = vadd.f32 %v7310_v24, %v5191_v28  ;;  %v7212_v24 = vld [vmem:[%s8617_s18 + $0x30] sm:$0xff]  }
 0xe79   : > { %v6865_v33 = vpop.f32.mrf.mxu0 }
 0xe7a   : > { %v8958_v35 = vadd.f32 %v7309_v34, %v5183_v31  ;;  %v5207_v46 = vsel %vm4195_vm2, %v8960_v37, 0.0  ;;  %v7209_v33 = vld [vmem:[%s8617_s18 + $0x78] sm:$0xff]  }
 0xe7b   : > { %v5185_v36 = vpop.f32.mrf.mxu0  ;;  %v7210_v34 = vld [vmem:[%s8617_s18 + $0x38] sm:$0xff]   ;;  %6748 = vmatprep.subr.bf16.mxu0 %v7209_v33 }
 0xe7c   : > { %v5186_v38 = vadd.f32 %v6656_v56, %v5185_v36  ;;  %v5201_v57 = vsel %vm4195_vm2, %v8958_v35, 0.0  ;;  %6749 = vmatpush3.bf16.msra.mxu0 %v7210_v34  ;;  %v7211_v36 = vld [vmem:[%s8617_s18 + $0x70] sm:$0xff]  }
 0xe7d   : > { %5202 = vadd.xlane.f32.xlu0 %v5201_v57  ;;  %6750 = vmatprep.subr.bf16.mxu0 %v7211_v36  ;;  %v7215_v57 = vld [vmem:[%s8617_s18 + $0x60] sm:$0xff]  }
 0xe7e   : > { %v8964_v42 = vadd.f32 %v7311_v40, %v5186_v38  ;;  %v7213_v38 = vld [vmem:[%s8617_s18 + $0x68] sm:$0xff]   ;;  %v7216_v40 = vld [vmem:[%s8617_s18 + $0x20] sm:$0xff]  }
 0xe80   : > { %v5204_v45 = vsel %vm4195_vm2, %v8964_v42, 0.0  ;;  %6751 = vmatpush3.bf16.msra.mxu0 %v7212_v24 }
 0xe81   : > { %5205 = vadd.xlane.f32.xlu1 %v5204_v45  ;;  %5208 = vadd.xlane.f32.xlu0 %v5207_v46  ;;  %v7217_v45 = vld [vmem:[%s8617_s18 + $0x58] sm:$0xff]  }
 0xe82   : > { %6752 = vmatprep.subr.bf16.mxu0 %v7213_v38  ;;  %v7218_v46 = vld [vmem:[%s8617_s18 + $0x18] sm:$0xff]  }
 0xf06   : > { %v5203_v47 = vpop.xlane.xlu0 %5202 }
 0xf07   : > { %v5210_v26 = vmul.f32 0.015625, %v5203_v47  ;;  %v7219_v47 = vld [vmem:[%s8617_s18 + $0x50] sm:$0xff]  }
 0xf09   : > { %v5213_v49 = vsub.f32 %v8958_v35, %v5210_v26  ;;  %v7220_v26 = vld [vmem:[%s8617_s18 + $0x10] sm:$0xff]  }
 0xf0a   : > { %v5206_v43 = vpop.xlane.xlu1 %5205  ;;  %v5209_v16 = vpop.xlane.xlu0 %5208 }
 0xf0b   : > { %v5211_v19 = vmul.f32 0.015625, %v5206_v43  ;;  %v5212_v52 = vmul.f32 0.015625, %v5209_v16  ;;  %v5216_v53 = vmul.f32 %v5213_v49, %v5213_v49  ;;  %v7222_v43 = vld [vmem:[%s8617_s18 + $0x8] sm:$0xff]   ;;  %v7223_v16 = vld [vmem:[%s8617_s18 + $0x40] sm:$0xff]  }
 0xf0d   : > { %v5214_v48 = vsub.f32 %v8964_v42, %v5211_v19  ;;  %v5215_v50 = vsub.f32 %v8960_v37, %v5212_v52  ;;  %v5219_v54 = vsel %vm4195_vm2, %v5216_v53, 0.0  ;;  %v7224_v19 = vld [vmem:[%s8617_s18] sm:$0xff]  }
 0xf0e   : > { %5220 = vadd.xlane.f32.xlu0 %v5219_v54  ;;  %v5268_v52 = vld [vmem:[%s8588_s25] sm:$0x3] }
 0xf0f   : > { %v5217_v21 = vmul.f32 %v5214_v48, %v5214_v48  ;;  %v5218_v32 = vmul.f32 %v5215_v50, %v5215_v50  ;;  %v5273_v53 = vrot.slane %v5268_v52, %v4268_v7 }
 0xf11   : > { %v5222_v51 = vsel %vm4195_vm2, %v5217_v21, 0.0  ;;  %v5225_v44 = vsel %vm4195_vm2, %v5218_v32, 0.0 }
 0xf12   : > { %5223 = vadd.xlane.f32.xlu0 %v5222_v51  ;;  %5226 = vadd.xlane.f32.xlu1 %v5225_v44 }
 0xf97   : > { %v5221_v1 = vpop.xlane.xlu0 %5220 }
 0xf98   : > { %v5228_v4 = vmul.f32 0.015625, %v5221_v1 }
 0xf9a   : > { %v5231_v5 = vadd.f32 1e-05, %v5228_v4 }
 0xf9b   : > { %v5227_v3 = vpop.xlane.xlu1 %5226  ;;  %v5224_v6 = vpop.xlane.xlu0 %5223 }
 0xf9c   : > { %7279 = vrsqrt.f32 %v5231_v5  ;;  %v5230_v8 = vmul.f32 0.015625, %v5227_v3  ;;  %v5229_v10 = vmul.f32 0.015625, %v5224_v6 }
 0xf9e   : > { %v5233_v11 = vadd.f32 1e-05, %v5230_v8  ;;  %v5232_v12 = vadd.f32 1e-05, %v5229_v10 }
 0xfa0   : > { %7281 = vrsqrt.f32 %v5233_v11 }
 0xfa1   : > { %7283 = vrsqrt.f32 %v5232_v12 }
 0xfa9   : > { %v7280_v13 = vpop.eup %7279 }
 0xfaa   : > { %v5237_v14 = vmul.f32 %v7280_v13, %v5213_v49  ;;  %v7221_v49 = vld [vmem:[%s8617_s18 + $0x48] sm:$0xff]  }
 0xfac   : > { %v5246_v60 = vmul.f32 %v6663_v15, %v5237_v14 }
 0xfad   : > { %v7282_v17 = vpop.eup %7281 }
 0xfae   : > { %v7284_v18 = vpop.eup %7283  ;;  %v5239_v58 = vmul.f32 %v7282_v17, %v5215_v50  ;;  %v5255_v23 = vadd.f32 %v6664_v20, %v5246_v60 }
 0xfaf   : > { %v5238_v22 = vmul.f32 %v7284_v18, %v5214_v48  ;;  %v5277_v48 = vrot.slane %v5268_v52, %v4272_v9 }
 0xfb0   : > { %v5248_v27 = vmul.f32 %v6663_v15, %v5239_v58 }
 0xfb1   : > { %v5247_v41 = vmul.f32 %v6663_v15, %v5238_v22 }
 0xfb2   : > { %v5257_v28 = vadd.f32 %v6664_v20, %v5248_v27 }
 0xfb3   : > { %v5256_v25 = vadd.f32 %v6664_v20, %v5247_v41 }
 0xfb4   : > { %v5259_v31 = vpack.c.bf16 %v5257_v28, %v5257_v28 }
 0xfb5   : > { %v5258_v56 = vpack.c.bf16 %v5256_v25, %v5255_v23 }
 0xfb7   : > { %6673 = vmatmul.mubr.msk.bf16.vlgmr.msra.gmra.mxu1 %vm4195_vm2, %v5258_v56 }
 0xfb8   : > { %5368 = vmatprep.mubr.bf16.mxu1 %v8019_v2  ;;  %v7214_v2 = vld [vmem:[%s8617_s18 + $0x28] sm:$0xff]  }
 0xfb9   : > { %6753 = vmatpush3.bf16.msra.mxu0 %v7214_v2 }
 0xfba   : > { %6754 = vmatprep.subr.bf16.mxu0 %v7215_v57 }
 0xfbd   : > { %6755 = vmatpush3.bf16.msra.mxu0 %v7216_v40 }
 0xfbe   : > { %6756 = vmatprep.subr.bf16.mxu0 %v7217_v45 }
 0xfbf   : > { %6674 = vmatmul.mubr.msk.bf16.gmra.mxu1 %vm4195_vm2, %v5259_v31 }
 0xfc1   : > { %6757 = vmatpush3.bf16.msra.mxu0 %v7218_v46 }
 0xfc2   : > { %6758 = vmatprep.subr.bf16.mxu0 %v7219_v47 }
 0xfc5   : > { %6759 = vmatpush3.bf16.msra.mxu0 %v7220_v26 }
 0xfc6   : > { %6760 = vmatprep.subr.bf16.mxu0 %v7221_v49 }
 0xfc9   : > { %6761 = vmatpush3.bf16.msra.mxu0 %v7222_v43  ;;  %v6681_v43 = vld [vmem:[%s9265_s9] ss:$0 sm:$0xff] }
 0xfca   : > { %6762 = vmatprep.subr.bf16.mxu0 %v7223_v16 }
 0xfcd   : > { %6763 = vmatpush3.bf16.msra.mxu0 %v7224_v19 }
0x1077   : > { %v5360_v50 = vpop.f32.mrf.mxu1 }
0x1078   : > { %v5361_v54 = vadd.f32 %v5360_v50, %v5273_v53 }
0x1079   : > { %v5362_v21 = vpop.f32.mrf.mxu1 }
0x107a   : > { %v6675_v32 = vmul.f32 -1.702, %v5361_v54  ;;  %v5363_v51 = vadd.f32 %v5362_v21, %v5277_v48 }
0x107b   : > { %v5364_v44 = vpop.f32.mrf.mxu1 }
0x107c   : > { %v5389_v29 = vmul.f32 1.442695, %v6675_v32  ;;  %v6676_v55 = vmul.f32 -1.702, %v5363_v51  ;;  %v5365_v30 = vadd.f32 %v5364_v44, %v5273_v53 }
0x107d   : > { %v5366_v59 = vpop.f32.mrf.mxu1 }
0x107e   : > { %v5391_v61 = vmul.f32 1.442695, %v6676_v55  ;;  %v6677_v62 = vmul.f32 -1.702, %v5365_v30  ;;  %v5367_v63 = vadd.f32 %v5366_v59, %v5277_v48  ;;  %7285 = vpow2.f32 %v5389_v29 }
0x107f   : > { %v5370_v0 = vpop.f32.mrf.mxu1 }
0x1080   : > { %7287 = vpow2.f32 %v5391_v61  ;;  %v5393_v7 = vmul.f32 1.442695, %v6677_v62  ;;  %v6678_v1 = vmul.f32 -1.702, %v5367_v63  ;;  %v5371_v39 = vadd.f32 %v5370_v0, %v5273_v53 }
0x1081   : > { %v5372_v9 = vpop.f32.mrf.mxu1 }
0x1082   : > { %7289 = vpow2.f32 %v5393_v7  ;;  %v5395_v4 = vmul.f32 1.442695, %v6678_v1  ;;  %v6679_v5 = vmul.f32 -1.702, %v5371_v39  ;;  %v5373_v3 = vadd.f32 %v5372_v9, %v5277_v48 }
0x1083   : > { %v5374_v6 = vpop.f32.mrf.mxu1 }
0x1084   : > { %7291 = vpow2.f32 %v5395_v4  ;;  %v5397_v8 = vmul.f32 1.442695, %v6679_v5  ;;  %v6680_v10 = vmul.f32 -1.702, %v5373_v3 }
0x1085   : > { %v5375_v11 = vpop.f32.mrf.mxu1 }
0x1086   : > { %7293 = vpow2.f32 %v5397_v8  ;;  %v5399_v12 = vmul.f32 1.442695, %v6680_v10 }
0x1088   : > { %7295 = vpow2.f32 %v5399_v12 }
0x108b   : > { %v7286_v13 = vpop.eup %7285 }
0x108c   : > { %v5401_v18 = vadd.f32 1.0, %v7286_v13 }
0x108d   : > { %v7288_v14 = vpop.eup %7287 }
0x108e   : > { %v5402_v15 = vadd.f32 1.0, %v7288_v14 }
0x108f   : > { %v7290_v17 = vpop.eup %7289 }
0x1090   : > { %v5403_v22 = vadd.f32 1.0, %v7290_v17  ;;  %7297 = vrcp.f32 %v5402_v15 }
0x1091   : > { %v7292_v60 = vpop.eup %7291 }
0x1092   : > { %7299 = vrcp.f32 %v5403_v22  ;;  %v5404_v20 = vadd.f32 1.0, %v7292_v60 }
0x1093   : > { %v7294_v41 = vpop.eup %7293  ;;  %7301 = vrcp.f32 %v5401_v18 }
0x1094   : > { %7303 = vrcp.f32 %v5404_v20  ;;  %v5405_v23 = vadd.f32 1.0, %v7294_v41 }
0x1095   : > { %v7296_v58 = vpop.eup %7295 }
0x1096   : > { %v5406_v25 = vadd.f32 1.0, %v7296_v58 }
0x1098   : > { %7305 = vrcp.f32 %v5406_v25 }
0x1099   : > { %7307 = vrcp.f32 %v5405_v23 }
0x109d   : > { %v7298_v56 = vpop.eup %7297 }
0x109e   : > { %v5420_v34 = vmul.f32 %v7298_v56, %v5363_v51 }
0x109f   : > { %v7300_v27 = vpop.eup %7299 }
0x10a0   : > { %v7302_v28 = vpop.eup %7301  ;;  %v5421_v33 = vmul.f32 %v7300_v27, %v5365_v30 }
0x10a1   : > { %v7304_v31 = vpop.eup %7303  ;;  %v5419_v24 = vmul.f32 %v7302_v28, %v5361_v54 }
0x10a2   : > { %v5422_v36 = vmul.f32 %v7304_v31, %v5367_v63 }
0x10a3   : > { %v5425_v57 = vpack.c.bf16 %v5421_v33, %v5419_v24 }
0x10a4   : > { %v5426_v38 = vpack.c.bf16 %v5422_v36, %v5420_v34 }
0x10a5   : > { %v7306_v2 = vpop.eup %7305 }
0x10a6   : > { %v7308_v40 = vpop.eup %7307  ;;  %v5424_v45 = vmul.f32 %v7306_v2, %v5373_v3  ;;  %5596 = vmatprep.mubr.bf16.mxu0 %v5426_v38 }
0x10a7   : > { %5597 = vmatmul.mubr.bf16.vlgmr.msra.gmra.mxu0 %v5425_v57  ;;  %v5423_v47 = vmul.f32 %v7308_v40, %v5371_v39 }
0x10a8   : > { %v5428_v46 = vpack.c.bf16 %v5424_v45, %v5424_v45 }
0x10a9   : > { %v5427_v26 = vpack.c.bf16 %v5423_v47, %v5423_v47 }
0x10aa   : > { %5604 = vmatprep.mubr.bf16.mxu0 %v5428_v46 }
0x10af   : > { %5605 = vmatmul.mubr.bf16.gmra.mxu0 %v5427_v26 }
0x1167   : > { %v6764_v49 = vpop.f32.mrf.mxu0 }
0x1169   : > { %v6765_v16 = vpop.f32.mrf.mxu0 }
0x116a   : > { %v6766_v19 = vadd.f32 %v6765_v16, %v6764_v49 }
0x116b   : > { %v6767_v52 = vpop.f32.mrf.mxu0 }
0x116c   : > { %v5599_v53 = vadd.f32 %v6766_v19, %v6681_v43 }
0x116d   : > { %v6768_v48 = vpop.f32.mrf.mxu0 }
0x116e   : > { %v5612_v50 = vadd.f32 %v5599_v53, %v8958_v35  ;;  %v6769_v54 = vadd.f32 %v6768_v48, %v6767_v52 }
0x116f   : > { %v6770_v21 = vpop.f32.mrf.mxu0 }
0x1170   : > { %5615 = vst.msk [vmem:[#allocation2] sm:$0xff] %vm4195_vm2, %v5612_v50  ;;  %v5602_v32 = vadd.f32 %v6769_v54, %v6681_v43 }
0x1171   : > { %v6771_v51 = vpop.f32.mrf.mxu0 }
0x1172   : > { %v5613_v44 = vadd.f32 %v5602_v32, %v8964_v42  ;;  %v6772_v29 = vadd.f32 %v6771_v51, %v6770_v21 }
0x1173   : > { %v6773_v55 = vpop.f32.mrf.mxu0 }
0x1174   : > { %5616 = vst.msk [vmem:[#allocation2 + $0x8] sm:$0xff] %vm4195_vm2, %v5613_v44  ;;  %v5607_v30 = vadd.f32 %v6772_v29, %v6681_v43  ;;  %5621 = sbr.rel (%p6698_p6) target bundleno = 5173 (0x1435), region = 196 }
0x1175   : > { %v6774_v59 = vpop.f32.mrf.mxu0 }
0x1176   : > { %v5614_v61 = vadd.f32 %v5607_v30, %v8960_v37 }
0x1178   : > { %5617 = vst.msk [vmem:[#allocation2 + $0x10] sm:$0xff] %vm4195_vm2, %v5614_v61 }
0x1179   : > { %vm5624_vm8 = vcmask 516096   ;;  %v5647_v1 = vld [vmem:[%s9267_s28 + $0x38] sm:$0xff]  ;;  %v8027_v39 = vmov 0.0   ;;  %v5646_v37 = vld [vmem:[%s9267_s28 + $0x30] sm:$0xff]  ;;  %vm8028_vm9 = vmmov 0   ;;  %v5645_v9 = vld [vmem:[%s9267_s28 + $0x28] sm:$0xff] }
0x117a   : > { %v5625_v35 = vsel %vm5624_vm8, %v5612_v50, 0.0  ;;  %6866 = vmatprep.subr.mxu0 %v8027_v39  ;;  %6882 = vmatprep.mubr.msk.f32.mxu0 %vm8028_vm9, %v8027_v39  ;;  %v5644_v4 = vld [vmem:[%s9267_s28 + $0x20] sm:$0xff]  ;;  %v5643_v5 = vld [vmem:[%s9267_s28 + $0x18] sm:$0xff]  ;;  %v5642_v3 = vld [vmem:[%s9267_s28 + $0x10] sm:$0xff]  ;;  %vm5800_vm10 = vcmask 122880  }
0x117b   : > { %5626 = vadd.xlane.f32.xlu0 %v5625_v35  ;;  %6867 = vmatpush3.msra.mxu0 %v5647_v1  ;;  %v5641_v6 = vld [vmem:[%s9267_s28 + $0x8] sm:$0xff]  ;;  %v5640_v8 = vld [vmem:[%s9267_s28] sm:$0xff]  ;;  %v5724_v10 = vld [vmem:[%s9268_s2 + $0x18] sm:$0xff] }
0x117c   : > { %6885 = vmatprep.subr.mxu1 %v8027_v39  ;;  %6868 = vmatprep.subr.mxu0 %v8027_v39  ;;  %v5723_v11 = vld [vmem:[%s9269_s23 + $0x10] sm:$0xff]  ;;  %v5722_v12 = vld [vmem:[%s9269_s23 + $0x8] sm:$0xff]  ;;  %v5721_v58 = vld [vmem:[%s9269_s23] sm:$0xff] }
0x117d   : > { %6893 = vmatprep.mubr.msk.f32.mxu1 %vm8028_vm9, %v8027_v39  ;;  %6869 = vmatpush3.msra.mxu0 %v5646_v37  ;;  %v5622_v18 = vld [vmem:[#allocation29] sm:$0x1]  ;;  %v5623_v60 = vld [vmem:[#allocation30] sm:$0x1]  ;;  %v5725_v56 = vld [vmem:[#allocation32] sm:$0x1] }
0x117e   : > { %6870 = vmatprep.subr.mxu0 %v8027_v39  ;;  %6886 = vmatpush3.msra.mxu1 %v5724_v10 }
0x117f   : > { %6871 = vmatpush3.msra.mxu0 %v5645_v9  ;;  %6887 = vmatprep.subr.mxu1 %v8027_v39 }
0x1180   : > { %6872 = vmatprep.subr.mxu0 %v8027_v39  ;;  %6888 = vmatpush3.msra.mxu1 %v5723_v11 }
0x1181   : > { %6873 = vmatpush3.msra.mxu0 %v5644_v4  ;;  %6889 = vmatprep.subr.mxu1 %v8027_v39 }
0x1182   : > { %6874 = vmatprep.subr.mxu0 %v8027_v39  ;;  %6890 = vmatpush3.msra.mxu1 %v5722_v12 }
0x1183   : > { %6875 = vmatpush3.msra.mxu0 %v5643_v5  ;;  %6891 = vmatprep.subr.mxu1 %v8027_v39 }
0x1184   : > { %6876 = vmatprep.subr.mxu0 %v8027_v39  ;;  %6892 = vmatpush3.msra.mxu1 %v5721_v58 }
0x1185   : > { %6877 = vmatpush3.msra.mxu0 %v5642_v3 }
0x1186   : > { %6878 = vmatprep.subr.mxu0 %v8027_v39 }
0x1187   : > { %6879 = vmatpush3.msra.mxu0 %v5641_v6 }
0x1188   : > { %6880 = vmatprep.subr.mxu0 %v8027_v39 }
0x1189   : > { %6881 = vmatpush3.msra.mxu0 %v5640_v8 }
0x1204   : > { %v5627_v62 = vpop.xlane.xlu0 %5626 }
0x1205   : > { %v5628_v63 = vmul.f32 0.015625, %v5627_v62 }
0x1207   : > { %v5629_v0 = vsub.f32 %v5612_v50, %v5628_v63 }
0x1209   : > { %v5630_v42 = vmul.f32 %v5629_v0, %v5629_v0 }
0x120b   : > { %v5631_v7 = vsel %vm5624_vm8, %v5630_v42, 0.0 }
0x120c   : > { %5632 = vadd.xlane.f32.xlu0 %v5631_v7 }
0x1295   : > { %v5633_v13 = vpop.xlane.xlu0 %5632 }
0x1296   : > { %v5634_v14 = vmul.f32 0.015625, %v5633_v13 }
0x1298   : > { %v5635_v15 = vadd.f32 1e-05, %v5634_v14 }
0x129a   : > { %7312 = vrsqrt.f32 %v5635_v15 }
0x12a7   : > { %v7313_v17 = vpop.eup %7312 }
0x12a8   : > { %v5637_v22 = vmul.f32 %v7313_v17, %v5629_v0 }
0x12aa   : > { %v5638_v20 = vmul.f32 %v5637_v22, %v5622_v18 }
0x12ac   : > { %v5639_v41 = vadd.f32 %v5638_v20, %v5623_v60 }
0x12ae   : > { %6883 = vmatmul.mubr.msk.f32.vlgmr.msra.gmra.mxu0 %vm4195_vm2, %v5639_v41 }
0x136e   : > { %v5717_v23 = vpop.f32.mrf.mxu0 }
0x136f   : > { %6894 = vmatmul.mubr.msk.f32.vlgmr.msra.gmra.mxu1 %vm5093_vm6, %v5717_v23 }
0x1370   : > { %v6884_v25 = vpop.f32.mrf.mxu0 }
0x142f   : > { %v5795_v27 = vpop.f32.mrf.mxu1 }
0x1430   : > { %v5796_v28 = vadd.f32 %v5795_v27, %v5725_v56 }
0x1431   : > { %v6895_v31 = vpop.f32.mrf.mxu1 }
0x1432   : > { %v5799_v33 = vmax.f32 %v5796_v28, 0.0 }
0x1434   : > { %5801 = vst.msk [vmem:[%s8621_s19] sm:$0x1] %vm5800_vm10, %v5799_v33 }
0x1435 PF: > { %s9270_s25 = sld [smem:[#allocation50_spill]]  ;;  %s5815_s11 = sshll.u32 %s8621_s19, 4  ;;  %s5816_s11 = int_to_ptr.vmem [resolvable:$true] %s5815_s11 }
0x1436   : > { %s9271_s1 = sld [smem:[#allocation58_spill]]  ;;  %s5803_s21 = scalar_lea.sflag [#allocation5], %s1215_s14 }
0x1437   : > { %s9272_s17 = sld [smem:[#allocation82_spill]]  ;;  %s7830_s18 = scalar_lea.vmem %s5816_s11, 16 }
0x1438   : > { %p7831_p7 = scmp.ne.s32.totalorder %s5816_s11, %s7830_s18  ;;  %s8029_s29 = smov [#allocation33]  }
0x1439   : > { %s7834_s16 = sshll.u32 %s8029_s29, 4  ;;  %s7835_s16 = int_to_ptr.vmem [resolvable:$false] %s7834_s16 }
0x143a   : > { %s7836_s0 = scalar_lea.vmem %s7835_s16, 32  ;;  %p7837_p2 = scmp.lt.s32.totalorder %s5816_s11, %s7835_s16 }
0x143b   : > { %s6701_s8 = sshll.u32 %s9270_s25, 4  ;;  %p7838_p10 = scmp.lt.s32.totalorder %s7836_s0, %s7830_s18 }
0x143c   : > { %p9273_p5 = scmp.ne.s32.totalorder %s9271_s1, 0 }
0x143d   : > { %s5813_s3 = scalar_lea.hbm %s9272_s17, %s6701_s8  ;;  %p7839_p9 = por %p7838_p10, %p7837_p2 }
0x143e   : > { %p7832_p1 = pnand %p7831_p7, %p9273_p5 }
0x1440   : > { %p7833_p8 = pneg %p7832_p1 }
0x1442   : > { %p7840_p12 = pnand %p7839_p9, %p7833_p8 }
0x1444   : > { %7843 = shalt.err (!%p7840_p12)
}
0x1445   : > { %s7844_s27 = scalar_lea.hbm %s5813_s3, 16  ;;  %s7848_s4 = scalar_lea.hbm %s9272_s17, 32 }
0x1446   : > { %p7845_p11 = scmp.ne.s32.totalorder %s5813_s3, %s7844_s27  ;;  %p7849_p4 = scmp.lt.s32.totalorder %s5813_s3, %s9272_s17 }
0x1447   : > { %p7850_p3 = scmp.lt.s32.totalorder %s7848_s4, %s7844_s27 }
0x1448   : > { %p7846_p0 = pnand %p7845_p11, %p9273_p5 }
0x1449   : > { %p7851_p6 = por %p7850_p3, %p7849_p4 }
0x144a   : > { %p7847_p13 = pneg %p7846_p0 }
0x144c   : > { %p7852_p7 = pnand %p7851_p6, %p7847_p13 }
0x144e   : > { %7855 = shalt.err (!%p7852_p7)
}
0x144f   : > { %6963 = dma.vmem_to_hbm [thread:$0]  (%p9273_p5), %s5816_s11, 16, %s5813_s3, %s5803_s21  }
0x1450 PF: > { %s9274_s9 = sld [smem:[#allocation52_spill]] }
0x1451   : > { %s9275_s15 = sld [smem:[#allocation46_spill]] }
0x1452   : > { %s9276_s10 = sld [smem:[#allocation59_spill]] }
0x1456   : > { %p7045_p1 = scmp.ge.s32.totalorder %s9274_s9, 2 }
0x1457   : > { %s5827_s7 = sand.u32 1, %s9275_s15  }
0x1458   : > { %p9277_p8 = scmp.ne.s32.totalorder %s9276_s10, 0  ;;  %s5828_s20 = scalar_lea.sflag [#allocation5], %s5827_s7 }
0x145a   : > { %p7025_p2 = pnand %p7045_p1, %p9277_p8 }
0x145c   : > { %p7026_p10 = pneg %p7025_p2 }
0x145e   : > { %7945 = dma.done.wait (%p7026_p10), %s5828_s20, 16  }
0x145f   : > { %7947 = vsyncadd (%p7026_p10), %s5828_s20, 4294967280  ;;  %s58_s7 = sadd.s32 1, %s9274_s9   ;;  %s9278_s25 = sld [smem:[#allocation47_spill]] }
0x1460   : > { %p55_p9 = scmp.ge.s32.totalorder %s58_s7, 6   ;;  %s9279_s24 = sld [smem:[#allocation57_spill]] }
0x1461   : > { %s9280_s1 = sld [smem:[#allocation48_spill]]  ;;  %s9285_s4 = smov %s7954_s30 }
0x1462   : > { %s9281_s8 = sld [smem:[#allocation56_spill]]  ;;  %s9290_s26 = smov %s7982_s6 }
0x1463   : > { %s9282_s2 = sld [smem:[#allocation51_spill]] }
0x1464   : > { %s9283_s3 = sld [smem:[#allocation54_spill]] }
0x1465   : > { %s9284_s27 = sld [smem:[#allocation55_spill]]  ;;  %s9286_s30 = smov %s9278_s25 }
0x1466   : > { %s9287_s25 = smov %s7966_s5  ;;  %57 = sbr.rel (!%p55_p9) target bundleno = 47 (0x2f), region = 324 }
0x1467   : > { %s9288_s5 = smov %s9280_s1 }
0x1468   : > { %s9289_s1 = smov %s9281_s8 }
0x146a   : > { %s9291_s6 = smov %s9283_s3 }
0x146b   :  { %5832 = vsyncpa [#allocation4], 1 }
0x146c   :  { %5834 = vsyncpa [#allocation4 + $0x1], 1 }
0x146d   :  { %5835 = vsyncpa [#allocation7], 1 }
0x146e   :  { %5836 = vsyncpa [#allocation10], 1 }
0x146f   :  { %5837 = vsyncpa [#allocation13], 1 }
0x1470   :  { %5839 = vsyncpa [#allocation13 + $0x1], 1 }
0x1471   :  { %5840 = vsyncpa [#allocation16], 1 }
0x1472   :  { %5842 = vsyncpa [#allocation16 + $0x1], 1 }
0x1473   :  { %5843 = vsyncpa [#allocation19], 1 }
0x1474   :  { %5845 = vsyncpa [#allocation19 + $0x1], 1 }
0x1475   :  { %5846 = vsyncpa [#allocation22], 1 }
0x1476   :  { %5848 = vsyncpa [#allocation22 + $0x1], 1 }
0x1477   :  { %5849 = vsyncpa [#allocation25], 1 }
0x1478   :  { %5851 = vsyncpa [#allocation25 + $0x1], 1 }
0x1479   :  { %5852 = vsyncpa [#allocation28], 1 }
0x147a   :  { %5854 = vsyncpa [#allocation28 + $0x1], 1 }
0x147b   :  { %5855 = vsyncpa [#allocation31], 1 }
0x147c   :  { %5856 = vsyncpa [#allocation5], 1 }
0x147d   :  { %5858 = vsyncpa [#allocation5 + $0x1], 1 }

</bundles_post_ra>
